<compile_context>
chip_gen: v7x
topology: tpu7x:2x2x1
jax: 0.10.0
libtpu: 0.0.40
codegen_flags: <defaults>
</compile_context>

<pallas_src>
import functools
import numpy as np
import jax
import jax.numpy as jnp
from jax.experimental import pallas as pl
from jax.experimental.pallas import tpu as pltpu
from jax.scipy.linalg import block_diag

# ----------------------------------------------------------------------------
# Hyper-parameters: channel counts from ModelBaseline_SMNIST.__init__;
# bandwidths scaled down (module uses b_in=30, b_l1=10, b_l2=6) so the example
# runs at small shapes as requested.
F1, F2, F_OUT = 20, 40, 10
B_IN, B_L1, B_L2 = 8, 4, 2
N_GRID_S2 = 8 * 3            # s2_near_identity_grid()  (n_alpha * n_beta)
N_GRID_SO3 = 8 * 3 * 6       # so3_near_identity_grid() (n_alpha * n_beta * n_gamma)
BATCH = 2


# ----------------------------------------------------------------------------
# Kernel 1: single-K-block matmul with optional fused row-bias / col-bias / ReLU.
def _mm_kernel(*refs, relu, has_rb, has_cb):
    a_ref, b_ref = refs[0], refs[1]
    i = 2
    rb_ref = None
    cb_ref = None
    if has_rb:
        rb_ref = refs[i]; i += 1
    if has_cb:
        cb_ref = refs[i]; i += 1
    o_ref = refs[i]
    out = jnp.dot(a_ref[...], b_ref[...], preferred_element_type=jnp.float32)
    if has_rb:
        out = out + rb_ref[...]
    if has_cb:
        out = out + cb_ref[...]
    if relu:
        out = jnp.maximum(out, 0.0)
    o_ref[...] = out.astype(o_ref.dtype)


def pallas_matmul(a, b, row_bias=None, col_bias=None, relu=False):
    """act(a @ b (+ row_bias[:,None]) (+ col_bias[None,:])) as ONE pallas_call.

    No M/K padding (blocks equal full array dims), no K grid axis, no accumulator
    scratch. Grid is only over 128-lane output column tiles (when N is a multiple
    of 128), marked "parallel" for megacore sharding on v7x. Bias operands are
    only passed when present.
    """
    a = a.astype(jnp.float32)
    b = b.astype(jnp.float32)
    M, K = a.shape
    K2, N = b.shape
    assert K == K2
    tn = 128 if (N % 128 == 0) else N
    grid = (N // tn,)

    operands = [a, b]
    in_specs = [
        pl.BlockSpec((M, K), lambda j: (0, 0)),    # whole A, whole K (stays resident)
        pl.BlockSpec((K, tn), lambda j: (0, j)),   # column tile of B
    ]
    if row_bias is not None:
        operands.append(row_bias.astype(jnp.float32).reshape(M, 1))
        in_specs.append(pl.BlockSpec((M, 1), lambda j: (0, 0)))
    if col_bias is not None:
        operands.append(col_bias.astype(jnp.float32).reshape(1, N))
        in_specs.append(pl.BlockSpec((1, tn), lambda j: (0, j)))

    kernel = functools.partial(_mm_kernel, relu=relu,
                               has_rb=row_bias is not None,
                               has_cb=col_bias is not None)
    return pl.pallas_call(
        kernel,
        out_shape=jax.ShapeDtypeStruct((M, N), jnp.float32),
        grid_spec=pltpu.PrefetchScalarGridSpec(
            num_scalar_prefetch=0,
            grid=grid,
            in_specs=in_specs,
            out_specs=pl.BlockSpec((M, tn), lambda j: (0, j)),
        ),
        compiler_params=pltpu.CompilerParams(
            dimension_semantics=("parallel",)),
    )(*operands)


# ----------------------------------------------------------------------------
# Kernel 2: chained matmul  o = relu(a @ b1 + row_bias) @ b2  in ONE kernel.
# Used to fuse "inverse SO3 FFT + bias + ReLU" of layer 1 directly with the
# forward SO3 FFT of layer 2 (the spatial activation never leaves VMEM).
def _mm_chain_kernel(a_ref, b1_ref, rb_ref, b2_ref, o_ref):
    t = jnp.dot(a_ref[...], b1_ref[...], preferred_element_type=jnp.float32)
    t = jnp.maximum(t + rb_ref[...], 0.0)
    o_ref[...] = jnp.dot(t, b2_ref[...],
                         preferred_element_type=jnp.float32).astype(o_ref.dtype)


def pallas_matmul_chain(a, b1, row_bias, b2):
    a = a.astype(jnp.float32)
    b1 = b1.astype(jnp.float32)
    b2 = b2.astype(jnp.float32)
    M, K1 = a.shape
    _, P = b1.shape
    P2, N = b2.shape
    assert P == P2
    rb = row_bias.astype(jnp.float32).reshape(M, 1)
    return pl.pallas_call(
        _mm_chain_kernel,
        out_shape=jax.ShapeDtypeStruct((M, N), jnp.float32),
        grid_spec=pltpu.PrefetchScalarGridSpec(
            num_scalar_prefetch=0,
            grid=(1,),
            in_specs=[
                pl.BlockSpec((M, K1), lambda j: (0, 0)),
                pl.BlockSpec((K1, P), lambda j: (0, 0)),
                pl.BlockSpec((M, 1), lambda j: (0, 0)),
                pl.BlockSpec((P, N), lambda j: (0, 0)),
            ],
            out_specs=pl.BlockSpec((M, N), lambda j: (0, 0)),
        ),
        compiler_params=pltpu.CompilerParams(
            dimension_semantics=("arbitrary",)),
    )(a, b1, rb, b2)


# ----------------------------------------------------------------------------
# Kernel 3: inverse SO3 FFT + bias + ReLU + so3_integrate in ONE kernel:
#   v[r] = sum_s relu((a @ b)[r, s] + bias[r]) * w_quad[s]
def _inv_relu_integrate_kernel(a_ref, b_ref, rb_ref, w_ref, o_ref):
    t = jnp.dot(a_ref[...], b_ref[...], preferred_element_type=jnp.float32)
    t = jnp.maximum(t + rb_ref[...], 0.0)
    o_ref[...] = jnp.sum(t * w_ref[...], axis=-1, keepdims=True)


def pallas_inv_relu_integrate(a, b, row_bias, w_quad_row):
    a = a.astype(jnp.float32)
    b = b.astype(jnp.float32)
    M, K = a.shape
    K2, S = b.shape
    assert K == K2
    rb = row_bias.astype(jnp.float32).reshape(M, 1)
    w = w_quad_row.astype(jnp.float32).reshape(1, S)
    return pl.pallas_call(
        _inv_relu_integrate_kernel,
        out_shape=jax.ShapeDtypeStruct((M, 1), jnp.float32),
        grid_spec=pltpu.PrefetchScalarGridSpec(
            num_scalar_prefetch=0,
            grid=(1,),
            in_specs=[
                pl.BlockSpec((M, K), lambda j: (0, 0)),
                pl.BlockSpec((K, S), lambda j: (0, 0)),
                pl.BlockSpec((M, 1), lambda j: (0, 0)),
                pl.BlockSpec((1, S), lambda j: (0, 0)),
            ],
            out_specs=pl.BlockSpec((M, 1), lambda j: (0, 0)),
        ),
        compiler_params=pltpu.CompilerParams(
            dimension_semantics=("arbitrary",)),
    )(a, b, rb, w)


# ----------------------------------------------------------------------------
# Complex packing helpers:  conj(A) @ B  ==  [Ar Ai] @ [[Br Bi],[Bi -Br]] = [Cr Ci]
def _pack_complex_lhs(ar, ai):
    return jnp.concatenate([ar, ai], axis=1)


def _pack_complex_rhs(br, bi):
    return jnp.concatenate(
        [jnp.concatenate([br, bi], axis=1),
         jnp.concatenate([bi, -br], axis=1)], axis=0)


def _unpack_blockdiag(C_bd, Ls, B, f_out):
    """Extract per-degree diagonal blocks of the fused matmul output and
    reassemble z of shape (sum_l L*L, B, f_out, 2)."""
    z_parts, r0, c0 = [], 0, 0
    for L in Ls:
        blk = C_bd[r0:r0 + L * B, c0:c0 + 2 * L * f_out]
        cr = blk[:, :L * f_out]
        ci = blk[:, L * f_out:]
        z = jnp.stack([cr, ci], -1).reshape(L, B, L, f_out, 2)   # (m, b, n, o, ri)
        z = jnp.transpose(z, (0, 2, 1, 3, 4)).reshape(L * L, B, f_out, 2)
        z_parts.append(z)
        r0 += L * B
        c0 += 2 * L * f_out
    return jnp.concatenate(z_parts, axis=0)


def s2_mm_fused(xs, ys, b_out, B, C, f_out):
    """s2_mm: z[l,m,n,b,o] = sum_f conj(x[l,m,b,f]) y[l,n,f,o]
    All degrees packed into ONE block-diagonal real matmul (single pallas_call)."""
    xs_t = jnp.transpose(xs, (2, 0, 1, 3))            # (nspec_s2, B, C, 2)
    A_blocks, B_blocks, Ls = [], [], []
    for l in range(b_out):
        L = 2 * l + 1
        beg = l * l
        Fx = xs_t[beg:beg + L]                        # (m, B, C, 2)
        Fy = ys[beg:beg + L]                          # (n, C, f_out, 2)
        Ar = Fx[..., 0].reshape(L * B, C)
        Ai = Fx[..., 1].reshape(L * B, C)
        FyT = jnp.transpose(Fy, (1, 0, 2, 3)).reshape(C, L * f_out, 2)
        A_blocks.append(_pack_complex_lhs(Ar, Ai))                     # (L*B, 2C)
        B_blocks.append(_pack_complex_rhs(FyT[..., 0], FyT[..., 1]))   # (2C, 2*L*f_out)
        Ls.append(L)
    C_bd = pallas_matmul(block_diag(*A_blocks), block_diag(*B_blocks))
    return _unpack_blockdiag(C_bd, Ls, B, f_out)


def so3_mm_fused(xs, ys, b_out, B, C, f_out):
    """so3_mm: z[l,m,n,b,o] = sum_{k,f} conj(x[l,m,k,b,f]) y[l,k,n,f,o]
    All degrees packed into ONE block-diagonal real matmul (single pallas_call)."""
    xs_t = jnp.transpose(xs, (2, 0, 1, 3))            # (nspec, B, C, 2)
    A_blocks, B_blocks, Ls = [], [], []
    beg = 0
    for l in range(b_out):
        L = 2 * l + 1
        Fx = xs_t[beg:beg + L * L].reshape(L, L, B, C, 2)     # (m, k, B, C, 2)
        Fy = ys[beg:beg + L * L].reshape(L, L, C, f_out, 2)   # (k, n, C, f_out, 2)
        A = jnp.transpose(Fx, (0, 2, 1, 3, 4)).reshape(L * B, L * C, 2)
        Bm = jnp.transpose(Fy, (0, 2, 1, 3, 4)).reshape(L * C, L * f_out, 2)
        A_blocks.append(_pack_complex_lhs(A[..., 0], A[..., 1]))       # (L*B, 2LC)
        B_blocks.append(_pack_complex_rhs(Bm[..., 0], Bm[..., 1]))     # (2LC, 2*L*f_out)
        Ls.append(L)
        beg += L * L
    C_bd = pallas_matmul(block_diag(*A_blocks), block_diag(*B_blocks))
    return _unpack_blockdiag(C_bd, Ls, B, f_out)


# ----------------------------------------------------------------------------
# Deterministic parameter / basis construction (glue).
def so3_quadrature_weights(b):
    # SOFT-grid Driscoll–Healy style quadrature weights w(beta_j), j = 0..2b-1.
    # TODO(synk): exact lie_learn S3.quadrature_weights normalization constant
    # is not reproduced; the weight formula shape is.
    k = np.arange(b)
    j = np.arange(2 * b)
    s = np.array([np.sum(np.sin((2 * jj + 1) * (2 * k + 1) * np.pi / (4 * b))
                         / (2 * k + 1)) for jj in j])
    w = (2.0 / b) * np.sin(np.pi * (2 * j + 1) / (4 * b)) * s
    w = w * (np.pi / (b ** 2))
    return jnp.asarray(w, jnp.float32)


def synth_complex_basis(key, n_in, n_spec):
    # TODO(synk): the exact lie_learn Wigner-d / spherical-harmonic SOFT S2/SO3
    # FFT matrices are replaced by a deterministic synthetic complex basis of
    # the correct shape (n_in, n_spec, re/im).
    m = jax.random.normal(key, (n_in, n_spec, 2), jnp.float32)
    return m / np.sqrt(n_in)


def init_params(key):
    ks = jax.random.split(key, 10)
    nspec_s2 = B_L1 ** 2
    nspec_so3_1 = sum((2 * l + 1) ** 2 for l in range(B_L1))
    nspec_so3_2 = sum((2 * l + 1) ** 2 for l in range(B_L2))

    conv1 = dict(
        kernel=jax.random.uniform(ks[0], (1, F1, N_GRID_S2), jnp.float32, -1.0, 1.0),
        scaling=jnp.float32(1.0 / np.sqrt(N_GRID_S2 * 1 * (B_L1 ** 4) / (B_IN ** 2))),
        bias=jnp.zeros((F1,), jnp.float32),
        fwd_basis=synth_complex_basis(ks[1], (2 * B_IN) ** 2, nspec_s2),
        rft_basis=synth_complex_basis(ks[2], N_GRID_S2, nspec_s2),
        inv_basis=synth_complex_basis(ks[3], nspec_so3_1, (2 * B_L1) ** 3),
    )
    conv2 = dict(
        kernel=jax.random.uniform(ks[4], (F1, F2, N_GRID_SO3), jnp.float32, -1.0, 1.0),
        scaling=jnp.float32(1.0 / np.sqrt(N_GRID_SO3 * F1 * (B_L2 ** 3) / (B_L1 ** 3))),
        bias=jnp.zeros((F2,), jnp.float32),
        fwd_basis=synth_complex_basis(ks[5], (2 * B_L1) ** 3, nspec_so3_2),
        rft_basis=synth_complex_basis(ks[6], N_GRID_SO3, nspec_so3_2),
        inv_basis=synth_complex_basis(ks[7], nspec_so3_2, (2 * B_L2) ** 3),
    )
    bound = 1.0 / np.sqrt(F2)
    out_layer = dict(
        weight=jax.random.uniform(ks[8], (F_OUT, F2), jnp.float32, -bound, bound),
        bias=jax.random.uniform(ks[9], (F_OUT,), jnp.float32, -bound, bound),
    )
    return dict(conv1=conv1, conv2=conv2, out=out_layer,
                w_so3=so3_quadrature_weights(B_L2))


# ----------------------------------------------------------------------------
# Full forward pass (7 pallas_call launches).
def model_forward(params, x):
    p1, p2, po = params["conv1"], params["conv2"], params["out"]
    B = x.shape[0]
    C1 = 1
    H = W = 2 * B_IN
    nspec_s2 = B_L1 ** 2
    nspec_so3_1 = sum((2 * l + 1) ** 2 for l in range(B_L1))
    nspec_so3_2 = sum((2 * l + 1) ** 2 for l in range(B_L2))

    # ---- [call 1] conv1 front-end: signal S2-FFT + kernel S2-RFT, one matmul ----
    x_flat = x.reshape(B * C1, H * W)
    kern1 = (p1["kernel"] * p1["scaling"]).reshape(C1 * F1, N_GRID_S2)
    fwd1 = p1["fwd_basis"].reshape(H * W, nspec_s2 * 2)
    rft1 = p1["rft_basis"].reshape(N_GRID_S2, nspec_s2 * 2)
    both1 = pallas_matmul(block_diag(x_flat, kern1),
                          jnp.concatenate([fwd1, rft1], axis=0))
    xs1 = both1[:B * C1].reshape(B, C1, nspec_s2, 2)
    ys1 = both1[B * C1:].reshape(C1, F1, nspec_s2, 2)
    ys1 = jnp.transpose(ys1, (2, 0, 1, 3))               # (nspec_s2, C1, F1, 2)

    # ---- [call 2] conv1 spectral matmul: all degrees, one block-diagonal matmul ----
    z1 = s2_mm_fused(xs1, ys1, B_L1, B, C1, F1)          # (nspec_so3_1, B, F1, 2)

    # ---- [call 3] conv1 inverse SO3-FFT + bias + ReLU, CHAINED with conv2 SO3-FFT ----
    zt1 = jnp.transpose(z1, (1, 2, 0, 3))
    A_spec1 = jnp.concatenate([zt1[..., 0], zt1[..., 1]], -1).reshape(B * F1, 2 * nspec_so3_1)
    inv1 = p1["inv_basis"]
    Binv1 = jnp.concatenate([inv1[..., 0], -inv1[..., 1]], axis=0)   # real part
    rb1 = jnp.tile(p1["bias"], B)
    fwd2 = p2["fwd_basis"].reshape((2 * B_L1) ** 3, nspec_so3_2 * 2)
    xs2_flat = pallas_matmul_chain(A_spec1, Binv1, rb1, fwd2)        # (B*F1, 2*nspec_so3_2)
    xs2 = xs2_flat.reshape(B, F1, nspec_so3_2, 2)

    # ---- [call 4] conv2 kernel SO3-RFT ----
    kern2 = (p2["kernel"] * p2["scaling"]).reshape(F1 * F2, N_GRID_SO3)
    rft2 = p2["rft_basis"].reshape(N_GRID_SO3, nspec_so3_2 * 2)
    ys2 = pallas_matmul(kern2, rft2).reshape(F1, F2, nspec_so3_2, 2)
    ys2 = jnp.transpose(ys2, (2, 0, 1, 3))               # (nspec_so3_2, F1, F2, 2)

    # ---- [call 5] conv2 spectral matmul: all degrees, one block-diagonal matmul ----
    z2 = so3_mm_fused(xs2, ys2, B_L2, B, F1, F2)         # (nspec_so3_2, B, F2, 2)

    # ---- [call 6] conv2 inverse SO3-FFT + bias + ReLU, CHAINED with so3_integrate ----
    zt2 = jnp.transpose(z2, (1, 2, 0, 3))
    A_spec2 = jnp.concatenate([zt2[..., 0], zt2[..., 1]], -1).reshape(B * F2, 2 * nspec_so3_2)
    inv2 = p2["inv_basis"]
    Binv2 = jnp.concatenate([inv2[..., 0], -inv2[..., 1]], axis=0)
    rb2 = jnp.tile(p2["bias"], B)
    nb2 = 2 * B_L2
    w_full = jnp.broadcast_to(params["w_so3"][:, None, None],
                              (nb2, nb2, nb2)).reshape(1, nb2 ** 3)
    v = pallas_inv_relu_integrate(A_spec2, Binv2, rb2, w_full)       # (B*F2, 1)

    # ---- [call 7] final Linear(f2 -> 10) with fused column bias ----
    logits = pallas_matmul(v.reshape(B, F2), po["weight"].T, col_bias=po["bias"])
    return logits                                                     # (B, F_OUT)


if __name__ == "__main__":
    key = jax.random.PRNGKey(0)
    pkey, xkey = jax.random.split(key)
    params = init_params(pkey)
    x = jax.random.normal(xkey, (BATCH, 1, 2 * B_IN, 2 * B_IN), jnp.float32)

    out = jax.jit(model_forward)(params, x)
    out = jax.block_until_ready(out)

    assert out.shape == (BATCH, F_OUT)
    assert bool(jnp.all(jnp.isfinite(out)))
    print("KERNEL_OK")
</pallas_src>

<mosaic_0001>
module attributes {stable_mosaic.version = 11 : i64} {
  func.func @_mm_kernel(%arg0: i32, %arg1: memref<22x280xf32, #tpu.memory_space<vmem>>, %arg2: memref<280x32xf32, #tpu.memory_space<vmem>>, %arg3: memref<22x32xf32, #tpu.memory_space<vmem>>) attributes {dimension_semantics = [#tpu.dimension_semantics<parallel>], iteration_bounds = array<i64: 1>, scalar_prefetch = 0 : i64, scratch_operands = 0 : i64, tpu.core_type = #tpu.core_type<tc>, window_params = [{pipeline_mode = #tpu.pipeline_mode<synchronous>, transform_indices = @transform_0, window_bounds = array<i64: 22, 280>}, {transform_indices = @transform_1, window_bounds = array<i64: 280, 32>}, {transform_indices = @transform_2, window_bounds = array<i64: 22, 32>}]} {
    %c0 = arith.constant 0 : index
    %c0_0 = arith.constant 0 : index
    %0 = vector.load %arg1[%c0, %c0_0] : memref<22x280xf32, #tpu.memory_space<vmem>>, vector<22x280xf32>
    %c0_1 = arith.constant 0 : index
    %c0_2 = arith.constant 0 : index
    %1 = vector.load %arg2[%c0_1, %c0_2] : memref<280x32xf32, #tpu.memory_space<vmem>>, vector<280x32xf32>
    %cst = arith.constant dense<0.000000e+00> : vector<22x32xf32>
    %2 = tpu.matmul %0, %1, %cst {dimension_numbers = #tpu.dot_dimension_numbers<[1], [0], [0], [1], [0, 0, 1, 1], [], []>} : vector<22x280xf32>, vector<280x32xf32>, vector<22x32xf32> -> vector<22x32xf32>
    %c0_3 = arith.constant 0 : index
    %c0_4 = arith.constant 0 : index
    %3 = vector.load %arg3[%c0_3, %c0_4] : memref<22x32xf32, #tpu.memory_space<vmem>>, vector<22x32xf32>
    tpu.vector_store %arg3[%c0_3, %c0_4], %2 {strides = array<i32>} : memref<22x32xf32, #tpu.memory_space<vmem>>, vector<22x32xf32>,
    return
  }
  func.func @transform_0(%arg0: i32) -> (i32, i32) {
    %c0_i32 = arith.constant 0 : i32
    %c0_i32_0 = arith.constant 0 : i32
    %c0_i32_1 = arith.constant 0 : i32
    return %c0_i32, %c0_i32_0 : i32, i32
  }
  func.func @transform_1(%arg0: i32) -> (i32, i32) {
    %c0_i32 = arith.constant 0 : i32
    %c0_i32_0 = arith.constant 0 : i32
    return %c0_i32, %arg0 : i32, i32
  }
  func.func @transform_2(%arg0: i32) -> (i32, i32) {
    %c0_i32 = arith.constant 0 : i32
    %c0_i32_0 = arith.constant 0 : i32
    return %c0_i32, %arg0 : i32, i32
  }
}

module attributes {stable_mosaic.version = 11 : i64} {
  func.func @_mm_kernel(%arg0: i32, %arg1: memref<32x8xf32, #tpu.memory_space<vmem>>, %arg2: memref<8x128xf32, #tpu.memory_space<vmem>>, %arg3: memref<32x128xf32, #tpu.memory_space<vmem>>) attributes {dimension_semantics = [#tpu.dimension_semantics<parallel>], iteration_bounds = array<i64: 5>, scalar_prefetch = 0 : i64, scratch_operands = 0 : i64, tpu.core_type = #tpu.core_type<tc>, window_params = [{pipeline_mode = #tpu.pipeline_mode<synchronous>, transform_indices = @transform_0, window_bounds = array<i64: 32, 8>}, {transform_indices = @transform_1, window_bounds = array<i64: 8, 128>}, {transform_indices = @transform_2, window_bounds = array<i64: 32, 128>}]} {
    %c0 = arith.constant 0 : index
    %c0_0 = arith.constant 0 : index
    %0 = vector.load %arg1[%c0, %c0_0] : memref<32x8xf32, #tpu.memory_space<vmem>>, vector<32x8xf32>
    %c0_1 = arith.constant 0 : index
    %c0_2 = arith.constant 0 : index
    %1 = vector.load %arg2[%c0_1, %c0_2] : memref<8x128xf32, #tpu.memory_space<vmem>>, vector<8x128xf32>
    %cst = arith.constant dense<0.000000e+00> : vector<32x128xf32>
    %2 = tpu.matmul %0, %1, %cst {dimension_numbers = #tpu.dot_dimension_numbers<[1], [0], [0], [1], [0, 0, 1, 1], [], []>} : vector<32x8xf32>, vector<8x128xf32>, vector<32x128xf32> -> vector<32x128xf32>
    %c0_3 = arith.constant 0 : index
    %c0_4 = arith.constant 0 : index
    %3 = vector.load %arg3[%c0_3, %c0_4] : memref<32x128xf32, #tpu.memory_space<vmem>>, vector<32x128xf32>
    tpu.vector_store %arg3[%c0_3, %c0_4], %2 {strides = array<i32>} : memref<32x128xf32, #tpu.memory_space<vmem>>, vector<32x128xf32>,
    return
  }
  func.func @transform_0(%arg0: i32) -> (i32, i32) {
    %c0_i32 = arith.constant 0 : i32
    %c0_i32_0 = arith.constant 0 : i32
    %c0_i32_1 = arith.constant 0 : i32
    return %c0_i32, %c0_i32_0 : i32, i32
  }
  func.func @transform_1(%arg0: i32) -> (i32, i32) {
    %c0_i32 = arith.constant 0 : i32
    %c0_i32_0 = arith.constant 0 : i32
    return %c0_i32, %arg0 : i32, i32
  }
  func.func @transform_2(%arg0: i32) -> (i32, i32) {
    %c0_i32 = arith.constant 0 : i32
    %c0_i32_0 = arith.constant 0 : i32
    return %c0_i32, %arg0 : i32, i32
  }
}

module attributes {stable_mosaic.version = 11 : i64} {
  func.func @_mm_chain_kernel(%arg0: i32, %arg1: memref<40x168xf32, #tpu.memory_space<vmem>>, %arg2: memref<168x512xf32, #tpu.memory_space<vmem>>, %arg3: memref<40x1xf32, #tpu.memory_space<vmem>>, %arg4: memref<512x20xf32, #tpu.memory_space<vmem>>, %arg5: memref<40x20xf32, #tpu.memory_space<vmem>>) attributes {dimension_semantics = [#tpu.dimension_semantics<arbitrary>], iteration_bounds = array<i64: 1>, scalar_prefetch = 0 : i64, scratch_operands = 0 : i64, tpu.core_type = #tpu.core_type<tc>, window_params = [{pipeline_mode = #tpu.pipeline_mode<synchronous>, transform_indices = @transform_0, window_bounds = array<i64: 40, 168>}, {pipeline_mode = #tpu.pipeline_mode<synchronous>, transform_indices = @transform_1, window_bounds = array<i64: 168, 512>}, {pipeline_mode = #tpu.pipeline_mode<synchronous>, transform_indices = @transform_2, window_bounds = array<i64: 40, 1>}, {pipeline_mode = #tpu.pipeline_mode<synchronous>, transform_indices = @transform_3, window_bounds = array<i64: 512, 20>}, {pipeline_mode = #tpu.pipeline_mode<synchronous>, transform_indices = @transform_4, window_bounds = array<i64: 40, 20>}]} {
    %c0 = arith.constant 0 : index
    %c0_0 = arith.constant 0 : index
    %0 = vector.load %arg1[%c0, %c0_0] : memref<40x168xf32, #tpu.memory_space<vmem>>, vector<40x168xf32>
    %c0_1 = arith.constant 0 : index
    %c0_2 = arith.constant 0 : index
    %1 = vector.load %arg2[%c0_1, %c0_2] : memref<168x512xf32, #tpu.memory_space<vmem>>, vector<168x512xf32>
    %cst = arith.constant dense<0.000000e+00> : vector<40x512xf32>
    %2 = tpu.matmul %0, %1, %cst {dimension_numbers = #tpu.dot_dimension_numbers<[1], [0], [0], [1], [0, 0, 1, 1], [], []>} : vector<40x168xf32>, vector<168x512xf32>, vector<40x512xf32> -> vector<40x512xf32>
    %c0_3 = arith.constant 0 : index
    %c0_4 = arith.constant 0 : index
    %3 = vector.load %arg3[%c0_3, %c0_4] : memref<40x1xf32, #tpu.memory_space<vmem>>, vector<40x1xf32>
    %4 = vector.broadcast %3 : vector<40x1xf32> to vector<40x512xf32>
    %5 = arith.addf %2, %4 : vector<40x512xf32>
    %cst_5 = arith.constant 0.000000e+00 : f32
    %6 = vector.broadcast %cst_5 : f32 to vector<40x512xf32>
    %7 = arith.maximumf %5, %6 : vector<40x512xf32>
    %c0_6 = arith.constant 0 : index
    %c0_7 = arith.constant 0 : index
    %8 = vector.load %arg4[%c0_6, %c0_7] : memref<512x20xf32, #tpu.memory_space<vmem>>, vector<512x20xf32>
    %cst_8 = arith.constant dense<0.000000e+00> : vector<40x20xf32>
    %9 = tpu.matmul %7, %8, %cst_8 {dimension_numbers = #tpu.dot_dimension_numbers<[1], [0], [0], [1], [0, 0, 1, 1], [], []>} : vector<40x512xf32>, vector<512x20xf32>, vector<40x20xf32> -> vector<40x20xf32>
    %c0_9 = arith.constant 0 : index
    %c0_10 = arith.constant 0 : index
    %10 = vector.load %arg5[%c0_9, %c0_10] : memref<40x20xf32, #tpu.memory_space<vmem>>, vector<40x20xf32>
    tpu.vector_store %arg5[%c0_9, %c0_10], %9 {strides = array<i32>} : memref<40x20xf32, #tpu.memory_space<vmem>>, vector<40x20xf32>,
    return
  }
  func.func @transform_0(%arg0: i32) -> (i32, i32) {
    %c0_i32 = arith.constant 0 : i32
    %c0_i32_0 = arith.constant 0 : i32
    %c0_i32_1 = arith.constant 0 : i32
    return %c0_i32, %c0_i32_0 : i32, i32
  }
  func.func @transform_1(%arg0: i32) -> (i32, i32) {
    %c0_i32 = arith.constant 0 : i32
    %c0_i32_0 = arith.constant 0 : i32
    %c0_i32_1 = arith.constant 0 : i32
    return %c0_i32, %c0_i32_0 : i32, i32
  }
  func.func @transform_2(%arg0: i32) -> (i32, i32) {
    %c0_i32 = arith.constant 0 : i32
    %c0_i32_0 = arith.constant 0 : i32
    %c0_i32_1 = arith.constant 0 : i32
    return %c0_i32, %c0_i32_0 : i32, i32
  }
  func.func @transform_3(%arg0: i32) -> (i32, i32) {
    %c0_i32 = arith.constant 0 : i32
    %c0_i32_0 = arith.constant 0 : i32
    %c0_i32_1 = arith.constant 0 : i32
    return %c0_i32, %c0_i32_0 : i32, i32
  }
  func.func @transform_4(%arg0: i32) -> (i32, i32) {
    %c0_i32 = arith.constant 0 : i32
    %c0_i32_0 = arith.constant 0 : i32
    %c0_i32_1 = arith.constant 0 : i32
    return %c0_i32, %c0_i32_0 : i32, i32
  }
}

module attributes {stable_mosaic.version = 11 : i64} {
  func.func @_mm_kernel(%arg0: i32, %arg1: memref<800x144xf32, #tpu.memory_space<vmem>>, %arg2: memref<144x20xf32, #tpu.memory_space<vmem>>, %arg3: memref<800x20xf32, #tpu.memory_space<vmem>>) attributes {dimension_semantics = [#tpu.dimension_semantics<parallel>], iteration_bounds = array<i64: 1>, scalar_prefetch = 0 : i64, scratch_operands = 0 : i64, tpu.core_type = #tpu.core_type<tc>, window_params = [{pipeline_mode = #tpu.pipeline_mode<synchronous>, transform_indices = @transform_0, window_bounds = array<i64: 800, 144>}, {transform_indices = @transform_1, window_bounds = array<i64: 144, 20>}, {transform_indices = @transform_2, window_bounds = array<i64: 800, 20>}]} {
    %c0 = arith.constant 0 : index
    %c0_0 = arith.constant 0 : index
    %0 = vector.load %arg1[%c0, %c0_0] : memref<800x144xf32, #tpu.memory_space<vmem>>, vector<800x144xf32>
    %c0_1 = arith.constant 0 : index
    %c0_2 = arith.constant 0 : index
    %1 = vector.load %arg2[%c0_1, %c0_2] : memref<144x20xf32, #tpu.memory_space<vmem>>, vector<144x20xf32>
    %cst = arith.constant dense<0.000000e+00> : vector<800x20xf32>
    %2 = tpu.matmul %0, %1, %cst {dimension_numbers = #tpu.dot_dimension_numbers<[1], [0], [0], [1], [0, 0, 1, 1], [], []>} : vector<800x144xf32>, vector<144x20xf32>, vector<800x20xf32> -> vector<800x20xf32>
    %c0_3 = arith.constant 0 : index
    %c0_4 = arith.constant 0 : index
    %3 = vector.load %arg3[%c0_3, %c0_4] : memref<800x20xf32, #tpu.memory_space<vmem>>, vector<800x20xf32>
    tpu.vector_store %arg3[%c0_3, %c0_4], %2 {strides = array<i32>} : memref<800x20xf32, #tpu.memory_space<vmem>>, vector<800x20xf32>,
    return
  }
  func.func @transform_0(%arg0: i32) -> (i32, i32) {
    %c0_i32 = arith.constant 0 : i32
    %c0_i32_0 = arith.constant 0 : i32
    %c0_i32_1 = arith.constant 0 : i32
    return %c0_i32, %c0_i32_0 : i32, i32
  }
  func.func @transform_1(%arg0: i32) -> (i32, i32) {
    %c0_i32 = arith.constant 0 : i32
    %c0_i32_0 = arith.constant 0 : i32
    return %c0_i32, %arg0 : i32, i32
  }
  func.func @transform_2(%arg0: i32) -> (i32, i32) {
    %c0_i32 = arith.constant 0 : i32
    %c0_i32_0 = arith.constant 0 : i32
    return %c0_i32, %arg0 : i32, i32
  }
}

module attributes {stable_mosaic.version = 11 : i64} {
  func.func @_mm_kernel(%arg0: i32, %arg1: memref<8x160xf32, #tpu.memory_space<vmem>>, %arg2: memref<160x320xf32, #tpu.memory_space<vmem>>, %arg3: memref<8x320xf32, #tpu.memory_space<vmem>>) attributes {dimension_semantics = [#tpu.dimension_semantics<parallel>], iteration_bounds = array<i64: 1>, scalar_prefetch = 0 : i64, scratch_operands = 0 : i64, tpu.core_type = #tpu.core_type<tc>, window_params = [{pipeline_mode = #tpu.pipeline_mode<synchronous>, transform_indices = @transform_0, window_bounds = array<i64: 8, 160>}, {transform_indices = @transform_1, window_bounds = array<i64: 160, 320>}, {transform_indices = @transform_2, window_bounds = array<i64: 8, 320>}]} {
    %c0 = arith.constant 0 : index
    %c0_0 = arith.constant 0 : index
    %0 = vector.load %arg1[%c0, %c0_0] : memref<8x160xf32, #tpu.memory_space<vmem>>, vector<8x160xf32>
    %c0_1 = arith.constant 0 : index
    %c0_2 = arith.constant 0 : index
    %1 = vector.load %arg2[%c0_1, %c0_2] : memref<160x320xf32, #tpu.memory_space<vmem>>, vector<160x320xf32>
    %cst = arith.constant dense<0.000000e+00> : vector<8x320xf32>
    %2 = tpu.matmul %0, %1, %cst {dimension_numbers = #tpu.dot_dimension_numbers<[1], [0], [0], [1], [0, 0, 1, 1], [], []>} : vector<8x160xf32>, vector<160x320xf32>, vector<8x320xf32> -> vector<8x320xf32>
    %c0_3 = arith.constant 0 : index
    %c0_4 = arith.constant 0 : index
    %3 = vector.load %arg3[%c0_3, %c0_4] : memref<8x320xf32, #tpu.memory_space<vmem>>, vector<8x320xf32>
    tpu.vector_store %arg3[%c0_3, %c0_4], %2 {strides = array<i32>} : memref<8x320xf32, #tpu.memory_space<vmem>>, vector<8x320xf32>,
    return
  }
  func.func @transform_0(%arg0: i32) -> (i32, i32) {
    %c0_i32 = arith.constant 0 : i32
    %c0_i32_0 = arith.constant 0 : i32
    %c0_i32_1 = arith.constant 0 : i32
    return %c0_i32, %c0_i32_0 : i32, i32
  }
  func.func @transform_1(%arg0: i32) -> (i32, i32) {
    %c0_i32 = arith.constant 0 : i32
    %c0_i32_0 = arith.constant 0 : i32
    return %c0_i32, %arg0 : i32, i32
  }
  func.func @transform_2(%arg0: i32) -> (i32, i32) {
    %c0_i32 = arith.constant 0 : i32
    %c0_i32_0 = arith.constant 0 : i32
    return %c0_i32, %arg0 : i32, i32
  }
}

module attributes {stable_mosaic.version = 11 : i64} {
  func.func @_inv_relu_integrate_kernel(%arg0: i32, %arg1: memref<80x20xf32, #tpu.memory_space<vmem>>, %arg2: memref<20x64xf32, #tpu.memory_space<vmem>>, %arg3: memref<80x1xf32, #tpu.memory_space<vmem>>, %arg4: memref<1x64xf32, #tpu.memory_space<vmem>>, %arg5: memref<80x1xf32, #tpu.memory_space<vmem>>) attributes {dimension_semantics = [#tpu.dimension_semantics<arbitrary>], iteration_bounds = array<i64: 1>, scalar_prefetch = 0 : i64, scratch_operands = 0 : i64, tpu.core_type = #tpu.core_type<tc>, window_params = [{pipeline_mode = #tpu.pipeline_mode<synchronous>, transform_indices = @transform_0, window_bounds = array<i64: 80, 20>}, {pipeline_mode = #tpu.pipeline_mode<synchronous>, transform_indices = @transform_1, window_bounds = array<i64: 20, 64>}, {pipeline_mode = #tpu.pipeline_mode<synchronous>, transform_indices = @transform_2, window_bounds = array<i64: 80, 1>}, {pipeline_mode = #tpu.pipeline_mode<synchronous>, transform_indices = @transform_3, window_bounds = array<i64: 1, 64>}, {pipeline_mode = #tpu.pipeline_mode<synchronous>, transform_indices = @transform_4, window_bounds = array<i64: 80, 1>}]} {
    %c0 = arith.constant 0 : index
    %c0_0 = arith.constant 0 : index
    %0 = vector.load %arg1[%c0, %c0_0] : memref<80x20xf32, #tpu.memory_space<vmem>>, vector<80x20xf32>
    %c0_1 = arith.constant 0 : index
    %c0_2 = arith.constant 0 : index
    %1 = vector.load %arg2[%c0_1, %c0_2] : memref<20x64xf32, #tpu.memory_space<vmem>>, vector<20x64xf32>
    %cst = arith.constant dense<0.000000e+00> : vector<80x64xf32>
    %2 = tpu.matmul %0, %1, %cst {dimension_numbers = #tpu.dot_dimension_numbers<[1], [0], [0], [1], [0, 0, 1, 1], [], []>} : vector<80x20xf32>, vector<20x64xf32>, vector<80x64xf32> -> vector<80x64xf32>
    %c0_3 = arith.constant 0 : index
    %c0_4 = arith.constant 0 : index
    %3 = vector.load %arg3[%c0_3, %c0_4] : memref<80x1xf32, #tpu.memory_space<vmem>>, vector<80x1xf32>
    %4 = vector.broadcast %3 : vector<80x1xf32> to vector<80x64xf32>
    %5 = arith.addf %2, %4 : vector<80x64xf32>
    %cst_5 = arith.constant 0.000000e+00 : f32
    %6 = vector.broadcast %cst_5 : f32 to vector<80x64xf32>
    %7 = arith.maximumf %5, %6 : vector<80x64xf32>
    %c0_6 = arith.constant 0 : index
    %c0_7 = arith.constant 0 : index
    %8 = vector.load %arg4[%c0_6, %c0_7] : memref<1x64xf32, #tpu.memory_space<vmem>>, vector<1x64xf32>
    %9 = vector.broadcast %8 : vector<1x64xf32> to vector<80x64xf32>
    %10 = arith.mulf %7, %9 : vector<80x64xf32>
    %cst_8 = arith.constant dense<0.000000e+00> : vector<80xf32>
    %11 = vector.multi_reduction <add>, %10, %cst_8 [1] : vector<80x64xf32> to vector<80xf32>
    %12 = vector.shape_cast %11 : vector<80xf32> to vector<80x1xf32>
    %c0_9 = arith.constant 0 : index
    %c0_10 = arith.constant 0 : index
    %13 = vector.load %arg5[%c0_9, %c0_10] : memref<80x1xf32, #tpu.memory_space<vmem>>, vector<80x1xf32>
    tpu.vector_store %arg5[%c0_9, %c0_10], %12 {strides = array<i32>} : memref<80x1xf32, #tpu.memory_space<vmem>>, vector<80x1xf32>,
    return
  }
  func.func @transform_0(%arg0: i32) -> (i32, i32) {
    %c0_i32 = arith.constant 0 : i32
    %c0_i32_0 = arith.constant 0 : i32
    %c0_i32_1 = arith.constant 0 : i32
    return %c0_i32, %c0_i32_0 : i32, i32
  }
  func.func @transform_1(%arg0: i32) -> (i32, i32) {
    %c0_i32 = arith.constant 0 : i32
    %c0_i32_0 = arith.constant 0 : i32
    %c0_i32_1 = arith.constant 0 : i32
    return %c0_i32, %c0_i32_0 : i32, i32
  }
  func.func @transform_2(%arg0: i32) -> (i32, i32) {
    %c0_i32 = arith.constant 0 : i32
    %c0_i32_0 = arith.constant 0 : i32
    %c0_i32_1 = arith.constant 0 : i32
    return %c0_i32, %c0_i32_0 : i32, i32
  }
  func.func @transform_3(%arg0: i32) -> (i32, i32) {
    %c0_i32 = arith.constant 0 : i32
    %c0_i32_0 = arith.constant 0 : i32
    %c0_i32_1 = arith.constant 0 : i32
    return %c0_i32, %c0_i32_0 : i32, i32
  }
  func.func @transform_4(%arg0: i32) -> (i32, i32) {
    %c0_i32 = arith.constant 0 : i32
    %c0_i32_0 = arith.constant 0 : i32
    %c0_i32_1 = arith.constant 0 : i32
    return %c0_i32, %c0_i32_0 : i32, i32
  }
}

module attributes {stable_mosaic.version = 11 : i64} {
  func.func @_mm_kernel(%arg0: i32, %arg1: memref<2x40xf32, #tpu.memory_space<vmem>>, %arg2: memref<40x10xf32, #tpu.memory_space<vmem>>, %arg3: memref<1x10xf32, #tpu.memory_space<vmem>>, %arg4: memref<2x10xf32, #tpu.memory_space<vmem>>) attributes {dimension_semantics = [#tpu.dimension_semantics<parallel>], iteration_bounds = array<i64: 1>, scalar_prefetch = 0 : i64, scratch_operands = 0 : i64, tpu.core_type = #tpu.core_type<tc>, window_params = [{pipeline_mode = #tpu.pipeline_mode<synchronous>, transform_indices = @transform_0, window_bounds = array<i64: 2, 40>}, {transform_indices = @transform_1, window_bounds = array<i64: 40, 10>}, {transform_indices = @transform_2, window_bounds = array<i64: 1, 10>}, {transform_indices = @transform_3, window_bounds = array<i64: 2, 10>}]} {
    %c0 = arith.constant 0 : index
    %c0_0 = arith.constant 0 : index
    %0 = vector.load %arg1[%c0, %c0_0] : memref<2x40xf32, #tpu.memory_space<vmem>>, vector<2x40xf32>
    %c0_1 = arith.constant 0 : index
    %c0_2 = arith.constant 0 : index
    %1 = vector.load %arg2[%c0_1, %c0_2] : memref<40x10xf32, #tpu.memory_space<vmem>>, vector<40x10xf32>
    %cst = arith.constant dense<0.000000e+00> : vector<2x10xf32>
    %2 = tpu.matmul %0, %1, %cst {dimension_numbers = #tpu.dot_dimension_numbers<[1], [0], [0], [1], [0, 0, 1, 1], [], []>} : vector<2x40xf32>, vector<40x10xf32>, vector<2x10xf32> -> vector<2x10xf32>
    %c0_3 = arith.constant 0 : index
    %c0_4 = arith.constant 0 : index
    %3 = vector.load %arg3[%c0_3, %c0_4] : memref<1x10xf32, #tpu.memory_space<vmem>>, vector<1x10xf32>
    %4 = vector.broadcast %3 : vector<1x10xf32> to vector<2x10xf32>
    %5 = arith.addf %2, %4 : vector<2x10xf32>
    %c0_5 = arith.constant 0 : index
    %c0_6 = arith.constant 0 : index
    %6 = vector.load %arg4[%c0_5, %c0_6] : memref<2x10xf32, #tpu.memory_space<vmem>>, vector<2x10xf32>
    tpu.vector_store %arg4[%c0_5, %c0_6], %5 {strides = array<i32>} : memref<2x10xf32, #tpu.memory_space<vmem>>, vector<2x10xf32>,
    return
  }
  func.func @transform_0(%arg0: i32) -> (i32, i32) {
    %c0_i32 = arith.constant 0 : i32
    %c0_i32_0 = arith.constant 0 : i32
    %c0_i32_1 = arith.constant 0 : i32
    return %c0_i32, %c0_i32_0 : i32, i32
  }
  func.func @transform_1(%arg0: i32) -> (i32, i32) {
    %c0_i32 = arith.constant 0 : i32
    %c0_i32_0 = arith.constant 0 : i32
    return %c0_i32, %arg0 : i32, i32
  }
  func.func @transform_2(%arg0: i32) -> (i32, i32) {
    %c0_i32 = arith.constant 0 : i32
    %c0_i32_0 = arith.constant 0 : i32
    return %c0_i32, %arg0 : i32, i32
  }
  func.func @transform_3(%arg0: i32) -> (i32, i32) {
    %c0_i32 = arith.constant 0 : i32
    %c0_i32_0 = arith.constant 0 : i32
    return %c0_i32, %arg0 : i32, i32
  }
}

</mosaic_0001>

<bundles_post_ra>
// kernel: squeeze.36
= control target key start
LH: loop header
LB: loop body
LE: loop exit
PB: predicated region body
PF: predicated region fallthrough
CT: control target
= control target key end

     0   :  { %vm7_vm0 = vcmask 15360   ;;  %s30_s8 = smov 2   ;;  %vm13_vm1 = vcmask 48160   ;;  %vm19_vm2 = vcmask 31760   ;;  %s47_s0 = inlined_call_operand.vmem [shape: f32[3,2,1,1], index: 0, kind: input, shape index: {}]   ;;  %s48_s1 = inlined_call_operand.vmem [shape: f32[6,1], index: 1, kind: output, shape index: {}]  }
   0x1   :  { %v4_v0 = vld [vmem:[%s47_s0] sm:$0xf]  ;;  %s29_s0 = smov 4  }
   0x2   :  { %5 = vst [vmem:[#allocation1] sm:$0xf] %v4_v0 }
   0x9   :  { %v10_v1 = vld [vmem:[#allocation1 + $0x2] sm:$0x1]   ;;  %v6_v2 = vld [vmem:[#allocation1] sm:$0x1]   ;;  %v16_v3 = vld [vmem:[#allocation1 + $0x1] sm:$0x1]  }
   0xa   :  { %11 = vrot.lane.b32.xlu0 %v10_v1, %s29_s0  ;;  %8 = vst.msk [vmem:[#allocation0] sm:$0x1] %vm7_vm0, %v6_v2  }
   0xe   :  { %17 = vrot.lane.b32.xlu0 %v16_v3, %s30_s8 }
  0x7c   :  { %v12_v4 = vpop.permute.xlu0 %11  }
  0x7d   :  { %14 = vst.msk [vmem:[#allocation0] sm:$0x1] %vm13_vm1, %v12_v4  }
  0x80   :  { %v18_v5 = vpop.permute.xlu0 %17  }
  0x81   :  { %20 = vst.msk [vmem:[#allocation0] sm:$0x1] %vm19_vm2, %v18_v5  }
  0x88   :  { %v24_v6 = vld [vmem:[#allocation0] sm:$0x1] }
  0x89   :  { %26 = vst [vmem:[%s48_s1] sm:$0x1] %v24_v6 }

// kernel: squeeze.40
= control target key start
LH: loop header
LB: loop body
LE: loop exit
PB: predicated region body
PF: predicated region fallthrough
CT: control target
= control target key end

     0   :  { %s43_s10 = smov 8   ;;  %s44_s11 = smov 4   ;;  %vm3_vm0 = vcmask 15360   ;;  %vm9_vm1 = vcmask 80960   ;;  %vm15_vm2 = vcmask 64560   ;;  %vm21_vm3 = vcmask 48160   ;;  %s75_s0 = inlined_call_operand.vmem [shape: f32[5,2,1,1], index: 0, kind: input, shape index: {}]   ;;  %s76_s1 = inlined_call_operand.vmem [shape: f32[10,1], index: 1, kind: output, shape index: {}]  }
   0x1   :  { %v35_v0 = vld [vmem:[%s75_s0 + $0x4] sm:$0x1]   ;;  %v37_v1 = vld [vmem:[%s75_s0 + $0x2] sm:$0x1]   ;;  %v36_v2 = vld [vmem:[%s75_s0 + $0x3] sm:$0x1]  }
   0x2   :  { %7 = vrot.lane.b32.xlu0 %v35_v0, %s43_s10  ;;  %19 = vrot.lane.b32.xlu1 %v37_v1, %s44_s11  ;;  %v38_v3 = vld [vmem:[%s75_s0 + $0x1] sm:$0x1]   ;;  %v2_v4 = vld [vmem:[%s75_s0] sm:$0x1]   ;;  %s45_s0 = smov 6   ;;  %s46_s18 = smov 2  }
   0x3   :  { %4 = vst.msk [vmem:[#allocation0] sm:$0x1] %vm3_vm0, %v2_v4   ;;  %vm27_vm4 = vcmask 31760  }
   0x6   :  { %13 = vrot.lane.b32.xlu0 %v36_v2, %s45_s0  ;;  %25 = vrot.lane.b32.xlu1 %v38_v3, %s46_s18 }
  0x74   :  { %v8_v5 = vpop.permute.xlu0 %7   ;;  %v20_v6 = vpop.permute.xlu1 %19  }
  0x75   :  { %10 = vst.msk [vmem:[#allocation0] sm:$0x1] %vm9_vm1, %v8_v5  }
  0x78   :  { %v14_v7 = vpop.permute.xlu0 %13   ;;  %v26_v8 = vpop.permute.xlu1 %25  }
  0x79   :  { %16 = vst.msk [vmem:[#allocation0] sm:$0x1] %vm15_vm2, %v14_v7  }
  0x7a   :  { %22 = vst.msk [vmem:[#allocation0] sm:$0x1] %vm21_vm3, %v20_v6  }
  0x7b   :  { %28 = vst.msk [vmem:[#allocation0] sm:$0x1] %vm27_vm4, %v26_v8  }
  0x82   :  { %v32_v9 = vld [vmem:[#allocation0] sm:$0x1] }
  0x83   :  { %34 = vst [vmem:[%s76_s1] sm:$0x1] %v32_v9 }

// kernel: squeeze.44
= control target key start
LH: loop header
LB: loop body
LE: loop exit
PB: predicated region body
PF: predicated region fallthrough
CT: control target
= control target key end

     0   :  { %s59_s10 = smov 12   ;;  %s60_s11 = smov 8   ;;  %vm3_vm0 = vcmask 15360   ;;  %vm9_vm1 = vcmask 113760   ;;  %vm15_vm2 = vcmask 97360   ;;  %vm21_vm3 = vcmask 80960   ;;  %s99_s0 = inlined_call_operand.vmem [shape: f32[7,2,1,1], index: 0, kind: input, shape index: {}]   ;;  %s100_s1 = inlined_call_operand.vmem [shape: f32[14,1], index: 1, kind: output, shape index: {}]  }
   0x1   :  { %v47_v0 = vld [vmem:[%s99_s0 + $0x6] sm:$0x1]   ;;  %v49_v1 = vld [vmem:[%s99_s0 + $0x4] sm:$0x1]   ;;  %v48_v2 = vld [vmem:[%s99_s0 + $0x5] sm:$0x1]  }
   0x2   :  { %7 = vrot.lane.b32.xlu0 %v47_v0, %s59_s10  ;;  %19 = vrot.lane.b32.xlu1 %v49_v1, %s60_s11  ;;  %v50_v3 = vld [vmem:[%s99_s0 + $0x3] sm:$0x1]   ;;  %v2_v4 = vld [vmem:[%s99_s0] sm:$0x1]   ;;  %s61_s18 = smov 10   ;;  %s62_s19 = smov 6  }
   0x3   :  { %4 = vst.msk [vmem:[#allocation0] sm:$0x1] %vm3_vm0, %v2_v4   ;;  %v51_v5 = vld [vmem:[%s99_s0 + $0x2] sm:$0x1]   ;;  %v52_v6 = vld [vmem:[%s99_s0 + $0x1] sm:$0x1]  }
   0x4   :  { %s63_s0 = smov 4   ;;  %s64_s24 = smov 2   ;;  %vm27_vm4 = vcmask 64560   ;;  %vm33_vm5 = vcmask 48160   ;;  %vm39_vm6 = vcmask 31760  }
   0x6   :  { %13 = vrot.lane.b32.xlu0 %v48_v2, %s61_s18  ;;  %25 = vrot.lane.b32.xlu1 %v50_v3, %s62_s19 }
   0xa   :  { %31 = vrot.lane.b32.xlu0 %v51_v5, %s63_s0  ;;  %37 = vrot.lane.b32.xlu1 %v52_v6, %s64_s24 }
  0x74   :  { %v8_v7 = vpop.permute.xlu0 %7   ;;  %v20_v8 = vpop.permute.xlu1 %19  }
  0x75   :  { %10 = vst.msk [vmem:[#allocation0] sm:$0x1] %vm9_vm1, %v8_v7  }
  0x78   :  { %v14_v9 = vpop.permute.xlu0 %13   ;;  %v26_v10 = vpop.permute.xlu1 %25  }
  0x79   :  { %16 = vst.msk [vmem:[#allocation0] sm:$0x1] %vm15_vm2, %v14_v9  }
  0x7a   :  { %22 = vst.msk [vmem:[#allocation0] sm:$0x1] %vm21_vm3, %v20_v8  }
  0x7b   :  { %28 = vst.msk [vmem:[#allocation0] sm:$0x1] %vm27_vm4, %v26_v10  }
  0x7c   :  { %v32_v11 = vpop.permute.xlu0 %31   ;;  %v38_v12 = vpop.permute.xlu1 %37  }
  0x7d   :  { %34 = vst.msk [vmem:[#allocation0] sm:$0x1] %vm33_vm5, %v32_v11  }
  0x7e   :  { %40 = vst.msk [vmem:[#allocation0] sm:$0x1] %vm39_vm6, %v38_v12  }
  0x85   :  { %v44_v13 = vld [vmem:[#allocation0] sm:$0x1] }
  0x86   :  { %46 = vst [vmem:[%s100_s1] sm:$0x1] %v44_v13 }

// kernel: model_forward.8
= control target key start
LH: loop header
LB: loop body
LE: loop exit
PB: predicated region body
PF: predicated region fallthrough
CT: control target
= control target key end

     0   :  { %s438_s9 = smov 0   ;;  %s440_s10 = smov 0   ;;  %s501_s0 = inlined_call_operand.vmem [shape: f32[32,8], index: 0, kind: input, shape index: {}]   ;;  %s502_s1 = inlined_call_operand.vmem [shape: f32[8,640], index: 1, kind: input, shape index: {}]   ;;  %s503_s2 = inlined_call_operand.vmem [shape: f32[32,640], index: 2, kind: output, shape index: {}]  }
   0x1   :  { %s442_s11 = smov 0  }
   0x2 LB: > { %s451_s12 = sadd.s32 4294967295, %s421_s11   ;;  %s453_s13 = sadd.s32 1, %s421_s11   ;;  %s421_s11 = sphi %s442_s11, %s507_s11   ;;  %s417_s10 = sphi %s440_s10, %s506_s10   ;;  %s413_s9 = sphi %s438_s9, %s505_s9  }
   0x3   : > { %s63_s14 = ssub.s32 %s421_s11, %s453_s13  ;;  %s66_s15 = sadd.s32 1, %s417_s10 }
   0x4   : > { %p64_p0 = scmp.eq.s32.totalorder %s63_s14, 0  ;;  %p76_p1 = scmp.ne.s32.totalorder %s417_s10, %s413_s9 }
   0x5   : > { %p77_p2 = scmp.eq.s32.totalorder %s451_s12, 4  ;;  %p349_p3 = scmp.ge.s32.totalorder %s421_s11, 1 }
   0x6   : > { %s461_s16 = scalar_select %p64_p0, %s417_s10, %s66_s15  }
   0x7   : > { %p463_p4 = por %p77_p2, %p76_p1  ;;  %p111_p5 = scmp.lt.s32.totalorder %s421_s11, 6 }
   0x9   : > { %p112_p6 = pnand %p349_p3, %p111_p5 }
   0xa   : > { %p131_p7 = scmp.lt.s32.totalorder (!%p112_p6), %s451_s12, 4  ;;  %v135_v0 = vld [vmem:[%s501_s0] sm:$0xff] (!%p112_p6)  ;;  %vm140_vm0 = vcmask (!%p112_p6), 64512   ;;  %v137_v1 = vld [vmem:[%s501_s0 + $0x10] sm:$0xff] (!%p112_p6)  ;;  %v136_v3 = vld [vmem:[%s501_s0 + $0x8] sm:$0xff] (!%p112_p6)  ;;  %s128_s3 = sand.u32 (!%p112_p6), 1, %s413_s9  }
   0xb   : > { %115 = sbr.rel (%p112_p6) target bundleno = 247 (0xf7), region = 28  ;;  %367 = vmatprep.mubr.msk.f32.mxu0 (!%p112_p6), %vm140_vm0, %v135_v0  ;;  %370 = vmatprep.mubr.msk.f32.mxu1 (!%p112_p6), %vm140_vm0, %v137_v1  ;;  %v138_v4 = vld [vmem:[%s501_s0 + $0x18] sm:$0xff] (!%p112_p6)  ;;  %s350_s4 = sshll.u32 (!%p112_p6), %s128_s3, 5 }
   0xc   : > { %s130_s5 = scalar_lea.vmem (!%p112_p6), [#allocation2], %s350_s4 }
  0x12   : > { %s132_s22 = scalar_select %p131_p7, %s451_s12, 4 }
  0x13   : > { %s357_s6 = sshll.u32 (%p463_p4), %s451_s12, 3 }
  0x14   : > { %s351_s23 = sshll.u32 %s132_s22, 3  ;;  %s250_s9 = scalar_lea.vmem (%p463_p4), %s503_s2, %s357_s6 }
  0x15   : > { %s134_s26 = scalar_lea.vmem %s502_s1, %s351_s23 }
  0x16   : > { %v139_v2 = vld [vmem:[%s134_s26] sm:$0xff] }
  0x17   : > { %365 = vmatprep.subr.mxu0 %v139_v2  ;;  %373 = vmatprep.subr.mxu1 %v139_v2 }
  0x18   : > { %366 = vmatpush3.msra.mxu0 %v139_v2  ;;  %374 = vmatpush3.msra.mxu1 %v139_v2 }
  0x19   : > { %368 = vmatmul.mubr.msk.f32.vlgmr.msra.gmra.mrb[0].mxu0 %vm140_vm0, %v136_v3  ;;  %371 = vmatmul.mubr.msk.f32.vlgmr.msra.gmra.mrb[0].mxu1 %vm140_vm0, %v138_v4 }
  0xe8   : > { %248 = sbr.rel (!%p463_p4) target bundleno = 247 (0xf7), region = 32 }
  0xec   : > { %v369_v5 = vpop.f32.mrb[0].mxu0  ;;  %v372_v6 = vpop.f32.mrb[0].mxu1 }
  0xed   : > { %239 = vst [vmem:[%s130_s5 + $0x8] sm:$0xff] %v369_v5  ;;  %241 = vst [vmem:[%s130_s5 + $0x18] sm:$0xff] %v372_v6  ;;  %v219_v7 = vpop.f32.mrb[1].mxu0  ;;  %v229_v8 = vpop.f32.mrb[1].mxu1 }
  0xee   : > { %238 = vst [vmem:[%s130_s5] sm:$0xff] %v219_v7  ;;  %240 = vst [vmem:[%s130_s5 + $0x10] sm:$0xff] %v229_v8 }
  0xf4   : > { %v286_v10 = vld [vmem:[%s130_s5 + $0x8] sm:$0xff]  ;;  %v290_v12 = vld [vmem:[%s130_s5 + $0x18] sm:$0xff] }
  0xf5   : > { %v284_v9 = vld [vmem:[%s130_s5] sm:$0xff]  ;;  %v288_v11 = vld [vmem:[%s130_s5 + $0x10] sm:$0xff]  ;;  %287 = vst [vmem:[%s250_s9 + $0x28] sm:$0xff] %v286_v10  ;;  %291 = vst [vmem:[%s250_s9 + $0x78] sm:$0xff] %v290_v12 }
  0xf6   : > { %285 = vst [vmem:[%s250_s9] sm:$0xff] %v284_v9  ;;  %289 = vst [vmem:[%s250_s9 + $0x50] sm:$0xff] %v288_v11 }
  0xf7 PF: > { %p9_p8 = scmp.ge.s32.totalorder %s453_s13, 7   ;;  %s505_s9 = smov %s417_s10 }
  0xf8   : > { %s506_s10 = smov %s461_s16  ;;  %s507_s11 = smov %s453_s13 }
  0xf9   :  { %11 = sbr.rel (!%p9_p8) target bundleno = 2 (0x2), region = 96 }

// kernel: model_forward.7
= control target key start
LH: loop header
LB: loop body
LE: loop exit
PB: predicated region body
PF: predicated region fallthrough
CT: control target
= control target key end

     0   :  { %v337_v3 = vmov 0.0|0.0   ;;  %vm338_vm0 = vmmov 0   ;;  %v339_v4 = vmov 0.0   ;;  %vm55_vm1 = vcmask 195584   ;;  %s506_s1 = inlined_call_operand.vmem [shape: f32[280,32], index: 1, kind: input, shape index: {}]   ;;  %s507_s0 = inlined_call_operand.vmem [shape: f32[22,280], index: 0, kind: input, shape index: {}]   ;;  %s508_s2 = inlined_call_operand.vmem [shape: f32[22,32], index: 2, kind: output, shape index: {}]  }
   0x1   :  { %v36_v0 = vld [vmem:[%s506_s1 + $0x80] sm:$0xff]  ;;  %v37_v1 = vld [vmem:[%s506_s1 + $0x88] sm:$0xff]  ;;  %331 = vmatprep.subr.bf16.mxu1 %v337_v3  ;;  %290 = vmatprep.mubr.msk.f32.mxu1 %vm338_vm0, %v339_v4  ;;  %v38_v7 = vld [vmem:[%s506_s1 + $0x90] sm:$0xff]  ;;  %vm225_vm2 = vcmask 261120   ;;  %vm228_vm3 = vcmask 259072  }
   0x2   :  { %v20_v2 = vld [vmem:[%s506_s1] sm:$0xff]  ;;  %v299_v5 = vpack.c.bf16 %v37_v1, %v36_v0  ;;  %v21_v6 = vld [vmem:[%s506_s1 + $0x8] sm:$0xff]  ;;  %v39_v8 = vld [vmem:[%s506_s1 + $0x98] sm:$0xff] }
   0x3   :  { %v301_v9 = vpack.c.bf16 %v21_v6, %v20_v2  ;;  %v303_v10 = vpack.c.bf16 %v39_v8, %v38_v7  ;;  %v22_v11 = vld [vmem:[%s506_s1 + $0x10] sm:$0xff]  ;;  %v23_v12 = vld [vmem:[%s506_s1 + $0x18] sm:$0xff]  ;;  %v40_v13 = vld [vmem:[%s506_s1 + $0xa0] sm:$0xff] }
   0x4   :  { %300 = vmatprep.subr.bf16.mxu0 %v299_v5  ;;  %v41_v14 = vld [vmem:[%s506_s1 + $0xa8] sm:$0xff]  ;;  %v305_v15 = vpack.c.bf16 %v23_v12, %v22_v11  ;;  %v24_v17 = vld [vmem:[%s506_s1 + $0x20] sm:$0xff]  ;;  %v42_v19 = vld [vmem:[%s506_s1 + $0xb0] sm:$0xff] }
   0x5   :  { %302 = vmatpush3.bf16.msra.mxu0 %v301_v9  ;;  %v307_v16 = vpack.c.bf16 %v41_v14, %v40_v13  ;;  %v25_v18 = vld [vmem:[%s506_s1 + $0x28] sm:$0xff]  ;;  %v43_v20 = vld [vmem:[%s506_s1 + $0xb8] sm:$0xff]  ;;  %v26_v23 = vld [vmem:[%s506_s1 + $0x30] sm:$0xff] }
   0x6   :  { %304 = vmatprep.subr.bf16.mxu0 %v303_v10  ;;  %v309_v21 = vpack.c.bf16 %v25_v18, %v24_v17  ;;  %v311_v22 = vpack.c.bf16 %v43_v20, %v42_v19  ;;  %v27_v24 = vld [vmem:[%s506_s1 + $0x38] sm:$0xff]  ;;  %v44_v25 = vld [vmem:[%s506_s1 + $0xc0] sm:$0xff]  ;;  %v45_v26 = vld [vmem:[%s506_s1 + $0xc8] sm:$0xff] }
   0x7   :  { %v52_v27 = vld [vmem:[%s506_s1 + $0x100] sm:$0xff]  ;;  %v53_v28 = vld [vmem:[%s506_s1 + $0x108] sm:$0xff]  ;;  %v313_v30 = vpack.c.bf16 %v27_v24, %v26_v23  ;;  %v315_v32 = vpack.c.bf16 %v45_v26, %v44_v25  ;;  %v46_v35 = vld [vmem:[%s506_s1 + $0xd0] sm:$0xff] }
   0x8   :  { %v12_v29 = vld [vmem:[%s507_s0 + $0x8] sm:$0xff]  ;;  %v332_v31 = vpack.c.bf16 %v53_v28, %v52_v27  ;;  %v28_v33 = vld [vmem:[%s506_s1 + $0x40] sm:$0xff]  ;;  %v47_v36 = vld [vmem:[%s506_s1 + $0xd8] sm:$0xff] }
   0x9   :  { %306 = vmatpush3.bf16.msra.mxu0 %v305_v15  ;;  %129 = vmatprep.mubr.f32.mxu0 %v12_v29  ;;  %v29_v34 = vld [vmem:[%s506_s1 + $0x48] sm:$0xff]  ;;  %v54_v37 = vld [vmem:[%s506_s1 + $0x110] sm:$0xff]  ;;  %v319_v40 = vpack.c.bf16 %v47_v36, %v46_v35  ;;  %v31_v42 = vld [vmem:[%s506_s1 + $0x58] sm:$0xff] }
   0xa   :  { %308 = vmatprep.subr.bf16.mxu0 %v307_v16  ;;  %333 = vmatpush3.bf16.msra.mxu1 %v332_v31  ;;  %v317_v38 = vpack.c.bf16 %v29_v34, %v28_v33  ;;  %v13_v39 = vld [vmem:[%s507_s0 + $0x10] sm:$0xff]  ;;  %v48_v43 = vld [vmem:[%s506_s1 + $0xe0] sm:$0xff]  ;;  %v49_v44 = vld [vmem:[%s506_s1 + $0xe8] sm:$0xff] }
   0xb   :  { %288 = vmatprep.subr.mxu1 %v339_v4  ;;  %v30_v41 = vld [vmem:[%s506_s1 + $0x50] sm:$0xff]  ;;  %v16_v46 = vld [vmem:[%s507_s0 + $0x28] sm:$0xff]  ;;  %v323_v47 = vpack.c.bf16 %v49_v44, %v48_v43  ;;  %v32_v48 = vld [vmem:[%s506_s1 + $0x60] sm:$0xff] }
   0xc   :  { %v321_v45 = vpack.c.bf16 %v31_v42, %v30_v41  ;;  %v33_v49 = vld [vmem:[%s506_s1 + $0x68] sm:$0xff]  ;;  %v50_v50 = vld [vmem:[%s506_s1 + $0xf0] sm:$0xff]  ;;  %v51_v51 = vld [vmem:[%s506_s1 + $0xf8] sm:$0xff] }
   0xd   :  { %310 = vmatpush3.bf16.msra.mxu0 %v309_v21  ;;  %v325_v52 = vpack.c.bf16 %v33_v49, %v32_v48  ;;  %v19_v53 = vld [vmem:[%s507_s0 + $0x40] sm:$0x3f]  ;;  %v327_v54 = vpack.c.bf16 %v51_v51, %v50_v50  ;;  %v34_v55 = vld [vmem:[%s506_s1 + $0x70] sm:$0xff]  ;;  %v35_v56 = vld [vmem:[%s506_s1 + $0x78] sm:$0xff] }
   0xe   :  { %312 = vmatprep.subr.bf16.mxu0 %v311_v22  ;;  %289 = vmatpush3.msra.mxu1 %v54_v37  ;;  %v329_v57 = vpack.c.bf16 %v35_v56, %v34_v55  ;;  %v11_v58 = vld [vmem:[%s507_s0] sm:$0xff]  ;;  %v14_v60 = vld [vmem:[%s507_s0 + $0x18] sm:$0xff]  ;;  %v17_v62 = vld [vmem:[%s507_s0 + $0x30] sm:$0x3f] }
   0xf   :  { %291 = vmatmul.mubr.msk.f32.vlgmr.msra.gmra.mrb[0].mxu1 %vm55_vm1, %v13_v39  ;;  %v15_v59 = vld [vmem:[%s507_s0 + $0x20] sm:$0xff]  ;;  %v18_v61 = vld [vmem:[%s507_s0 + $0x38] sm:$0x3f] }
  0x10   :  { %293 = vmatprep.mubr.msk.f32.mxu1 %vm338_vm0, %v339_v4 }
  0x11   :  { %314 = vmatpush3.bf16.msra.mxu0 %v313_v30 }
  0x12   :  { %316 = vmatprep.subr.bf16.mxu0 %v315_v32 }
  0x13   :  { %294 = vmatmul.mubr.msk.f32.gmra.mrb[2].mxu1 %vm55_vm1, %v16_v46 }
  0x14   :  { %296 = vmatprep.mubr.msk.f32.mxu1 %vm338_vm0, %v339_v4 }
  0x15   :  { %318 = vmatpush3.bf16.msra.mxu0 %v317_v38 }
  0x16   :  { %320 = vmatprep.subr.bf16.mxu0 %v319_v40 }
  0x17   :  { %297 = vmatmul.mubr.msk.f32.gmra.mrb[4].mxu1 %vm55_vm1, %v19_v53 }
  0x19   :  { %322 = vmatpush3.bf16.msra.mxu0 %v321_v45 }
  0x1a   :  { %324 = vmatprep.subr.bf16.mxu0 %v323_v47 }
  0x1d   :  { %326 = vmatpush3.bf16.msra.mxu0 %v325_v52 }
  0x1e   :  { %328 = vmatprep.subr.bf16.mxu0 %v327_v54 }
  0x21   :  { %330 = vmatpush3.bf16.msra.mxu0 %v329_v57 }
  0x24   :  { %130 = vmatmul.mubr.f32.vlgmr.msra.gmra.mrb[0].mxu0 %v11_v58 }
  0x25   :  { %134 = vmatprep.mubr.f32.mxu0 %v15_v59 }
  0x28   :  { %135 = vmatmul.mubr.f32.gmra.mrb[2].mxu0 %v14_v60 }
  0x29   :  { %139 = vmatprep.mubr.f32.mxu0 %v18_v61 }
  0x2c   :  { %140 = vmatmul.mubr.f32.gmra.mrb[4].mxu0 %v17_v62 }
  0xe2   :  { %v211_v63 = vpop.f32.mrb[0].mxu1 }
  0xe3   :  { %v292_v0 = vpop.f32.mrb[1].mxu1 }
  0xe6   :  { %v216_v1 = vpop.f32.mrb[2].mxu1 }
  0xe7   :  { %v295_v2 = vpop.f32.mrb[3].mxu1 }
  0xea   :  { %v221_v3 = vpop.f32.mrb[4].mxu1 }
  0xeb   :  { %v298_v4 = vpop.f32.mrb[5].mxu1 }
  0xf7   :  { %v269_v5 = vpop.f32.mrb[0].mxu0 }
  0xf8   :  { %v270_v6 = vpop.f32.mrb[1].mxu0 }
  0xf9   :  { %v271_v7 = vadd.f32 %v270_v6, %v269_v5 }
  0xfb   :  { %v212_v8 = vadd.f32 %v271_v7, %v211_v63  ;;  %v272_v9 = vpop.f32.mrb[2].mxu0 }
  0xfc   :  { %v273_v10 = vpop.f32.mrb[3].mxu0 }
  0xfd   :  { %226 = vst.msk [vmem:[%s508_s2] sm:$0xff] %vm225_vm2, %v212_v8  ;;  %v274_v11 = vadd.f32 %v273_v10, %v272_v9 }
  0xff   :  { %v217_v12 = vadd.f32 %v274_v11, %v216_v1  ;;  %v275_v13 = vpop.f32.mrb[4].mxu0 }
 0x100   :  { %v276_v14 = vpop.f32.mrb[5].mxu0 }
 0x101   :  { %227 = vst.msk [vmem:[%s508_s2 + $0x8] sm:$0xff] %vm225_vm2, %v217_v12  ;;  %v277_v15 = vadd.f32 %v276_v14, %v275_v13 }
 0x103   :  { %v222_v16 = vadd.f32 %v277_v15, %v221_v3 }
 0x105   :  { %229 = vst.msk [vmem:[%s508_s2 + $0x10] sm:$0x3f] %vm228_vm3, %v222_v16 }

// kernel: tile.13
= control target key start
LH: loop header
LB: loop body
LE: loop exit
PB: predicated region body
PF: predicated region fallthrough
CT: control target
= control target key end

     0   :  { %s22_s0 = inlined_call_operand.vmem [shape: f32[20], index: 0, kind: input, shape index: {}]   ;;  %s23_s1 = inlined_call_operand.vmem [shape: f32[2,20], index: 1, kind: output, shape index: {}]  }
   0x1   :  { %v4_v0 = vld [vmem:[%s22_s0] ss:$0 sm:$0xff] }
   0x2   :  { %5 = vst [vmem:[%s23_s1] sm:$0x3] %v4_v0 }

// kernel: tile.0
= control target key start
LH: loop header
LB: loop body
LE: loop exit
PB: predicated region body
PF: predicated region fallthrough
CT: control target
= control target key end

     0   :  { %s178_s8 = smov 125   ;;  %s179_s9 = smov 126   ;;  %vm7_vm0 = vcmask 7168   ;;  %s289_s0 = inlined_call_operand.vmem [shape: f32[2,20], index: 0, kind: input, shape index: {}]   ;;  %s290_s1 = inlined_call_operand.vmem [shape: f32[40,1], index: 1, kind: output, shape index: {}]  }
   0x1   :  { %v4_v0 = vld [vmem:[%s289_s0] sm:$0x3]  ;;  %s177_s0 = smov 127   ;;  %s180_s10 = smov 124  }
   0x2   :  { %5 = vst [vmem:[#allocation0] sm:$0x3] %v4_v0  ;;  %s181_s11 = smov 123   ;;  %s182_s12 = smov 122  }
   0x3   :  { %s183_s13 = smov 121   ;;  %s184_s14 = smov 120  }
   0x4   :  { %s76_s15 = smov 3  ;;  %s185_s16 = smov 119  }
   0x5   :  { %s186_s17 = smov 118   ;;  %s84_s18 = smov 3 }
   0x6   :  { %s92_s19 = smov 3  ;;  %s187_s20 = smov 117  }
   0x7   :  { %s188_s21 = smov 116   ;;  %s100_s22 = smov 3 }
   0x8   :  { %s108_s23 = smov 3  ;;  %s189_s26 = smov 115  }
   0x9   :  { %v9_v1 = vld [vmem:[#allocation0] sm:$0x3]   ;;  %s190_s27 = smov 114   ;;  %s116_s28 = smov 3 }
   0xa   :  { %v21_v2 = vld [vmem:[#allocation0] sm:$0x3]   ;;  %10 = vrot.lane.b32.xlu0 %v9_v1, %s177_s0  ;;  %s124_s29 = smov 3  ;;  %s191_s30 = smov 113  }
   0xb   :  { %22 = vrot.lane.b32.xlu1 %v21_v2, %s178_s8  ;;  %v15_v3 = vld [vmem:[#allocation0] sm:$0x3]   ;;  %s192_s2 = smov 112   ;;  %s132_s3 = smov 3 }
   0xc   :  { %v27_v4 = vld [vmem:[#allocation0] sm:$0x3]   ;;  %s193_s4 = smov 111   ;;  %s194_s5 = smov 110  }
   0xd   :  { %v33_v5 = vld [vmem:[#allocation0] sm:$0x3]   ;;  %s195_s6 = smov 109  }
   0xe   :  { %16 = vrot.lane.b32.xlu0 %v15_v3, %s179_s9  ;;  %v39_v6 = vld [vmem:[#allocation0] sm:$0x3]  }
   0xf   :  { %28 = vrot.lane.b32.xlu1 %v27_v4, %s180_s10  ;;  %v45_v7 = vld [vmem:[#allocation0] sm:$0x3]  }
  0x10   :  { %v51_v8 = vld [vmem:[#allocation0] sm:$0x3]  }
  0x11   :  { %v57_v9 = vld [vmem:[#allocation0] sm:$0x3]  }
  0x12   :  { %34 = vrot.lane.b32.xlu0 %v33_v5, %s181_s11  ;;  %v63_v10 = vld [vmem:[#allocation0] sm:$0x3]  }
  0x13   :  { %40 = vrot.lane.b32.xlu1 %v39_v6, %s182_s12  ;;  %v69_v11 = vld [vmem:[#allocation0] sm:$0x3]  }
  0x14   :  { %v77_v12 = vld [vmem:[#allocation0 + $0x1] ss:$-1 sm:%s76_s15]  }
  0x15   :  { %v85_v13 = vld [vmem:[#allocation0 + $0x1] ss:$-1 sm:%s84_s18]  }
  0x16   :  { %46 = vrot.lane.b32.xlu0 %v45_v7, %s183_s13  ;;  %v93_v14 = vld [vmem:[#allocation0 + $0x1] ss:$-1 sm:%s92_s19]  }
  0x17   :  { %52 = vrot.lane.b32.xlu1 %v51_v8, %s184_s14  ;;  %v6_v15 = vld [vmem:[#allocation0] sm:$0x3]  }
  0x18   :  { %8 = vst.msk [vmem:[%s290_s1] ss:$20 sm:$0x3] %vm7_vm0, %v6_v15   ;;  %v101_v16 = vld [vmem:[#allocation0 + $0x1] ss:$-1 sm:%s100_s22]  }
  0x19   :  { %v109_v17 = vld [vmem:[#allocation0 + $0x1] ss:$-1 sm:%s108_s23]  }
  0x1a   :  { %58 = vrot.lane.b32.xlu0 %v57_v9, %s185_s16  ;;  %v117_v18 = vld [vmem:[#allocation0 + $0x1] ss:$-1 sm:%s116_s28]  }
  0x1b   :  { %64 = vrot.lane.b32.xlu1 %v63_v10, %s186_s17  ;;  %v125_v19 = vld [vmem:[#allocation0 + $0x1] ss:$-1 sm:%s124_s29]  }
  0x1c   :  { %v133_v20 = vld [vmem:[#allocation0 + $0x1] ss:$-1 sm:%s132_s3]  }
  0x1e   :  { %70 = vrot.lane.b32.xlu0 %v69_v11, %s187_s20 }
  0x1f   :  { %78 = vrot.lane.b32.xlu1 %v77_v12, %s188_s21 }
  0x22   :  { %86 = vrot.lane.b32.xlu0 %v85_v13, %s189_s26 }
  0x23   :  { %94 = vrot.lane.b32.xlu1 %v93_v14, %s190_s27 }
  0x26   :  { %102 = vrot.lane.b32.xlu0 %v101_v16, %s191_s30 }
  0x27   :  { %110 = vrot.lane.b32.xlu1 %v109_v17, %s192_s2 }
  0x2a   :  { %118 = vrot.lane.b32.xlu0 %v117_v18, %s193_s4 }
  0x2b   :  { %126 = vrot.lane.b32.xlu1 %v125_v19, %s194_s5 }
  0x2e   :  { %134 = vrot.lane.b32.xlu0 %v133_v20, %s195_s6 }
  0x7c   :  { %v11_v21 = vpop.permute.xlu0 %10  }
  0x7d   :  { %v23_v22 = vpop.permute.xlu1 %22   ;;  %139 = vst.msk [vmem:[%s290_s1 + $0x1] ss:$20 sm:$0x3] %vm7_vm0, %v11_v21  }
  0x7e   :  { %141 = vst.msk [vmem:[%s290_s1 + $0x3] ss:$20 sm:$0x3] %vm7_vm0, %v23_v22  }
  0x80   :  { %v17_v23 = vpop.permute.xlu0 %16  }
  0x81   :  { %v29_v24 = vpop.permute.xlu1 %28   ;;  %140 = vst.msk [vmem:[%s290_s1 + $0x2] ss:$20 sm:$0x3] %vm7_vm0, %v17_v23  }
  0x82   :  { %142 = vst.msk [vmem:[%s290_s1 + $0x4] ss:$20 sm:$0x3] %vm7_vm0, %v29_v24  }
  0x84   :  { %v35_v25 = vpop.permute.xlu0 %34  }
  0x85   :  { %v41_v26 = vpop.permute.xlu1 %40   ;;  %143 = vst.msk [vmem:[%s290_s1 + $0x5] ss:$20 sm:$0x3] %vm7_vm0, %v35_v25  }
  0x86   :  { %144 = vst.msk [vmem:[%s290_s1 + $0x6] ss:$20 sm:$0x3] %vm7_vm0, %v41_v26  }
  0x88   :  { %v47_v27 = vpop.permute.xlu0 %46  }
  0x89   :  { %v53_v28 = vpop.permute.xlu1 %52   ;;  %145 = vst.msk [vmem:[%s290_s1 + $0x7] ss:$20 sm:$0x3] %vm7_vm0, %v47_v27  }
  0x8a   :  { %146 = vst.msk [vmem:[%s290_s1 + $0x8] ss:$20 sm:$0x3] %vm7_vm0, %v53_v28  }
  0x8c   :  { %v59_v29 = vpop.permute.xlu0 %58  }
  0x8d   :  { %v65_v30 = vpop.permute.xlu1 %64   ;;  %147 = vst.msk [vmem:[%s290_s1 + $0x9] ss:$20 sm:$0x3] %vm7_vm0, %v59_v29  }
  0x8e   :  { %148 = vst.msk [vmem:[%s290_s1 + $0xa] ss:$20 sm:$0x3] %vm7_vm0, %v65_v30  }
  0x90   :  { %v71_v31 = vpop.permute.xlu0 %70  }
  0x91   :  { %v79_v32 = vpop.permute.xlu1 %78   ;;  %149 = vst.msk [vmem:[%s290_s1 + $0xb] ss:$20 sm:$0x3] %vm7_vm0, %v71_v31  }
  0x92   :  { %150 = vst.msk [vmem:[%s290_s1 + $0x20] ss:$-20 sm:$0x3] %vm7_vm0, %v79_v32  }
  0x94   :  { %v87_v33 = vpop.permute.xlu0 %86  }
  0x95   :  { %v95_v34 = vpop.permute.xlu1 %94   ;;  %151 = vst.msk [vmem:[%s290_s1 + $0x21] ss:$-20 sm:$0x3] %vm7_vm0, %v87_v33  }
  0x96   :  { %152 = vst.msk [vmem:[%s290_s1 + $0x22] ss:$-20 sm:$0x3] %vm7_vm0, %v95_v34  }
  0x98   :  { %v103_v35 = vpop.permute.xlu0 %102  }
  0x99   :  { %v111_v36 = vpop.permute.xlu1 %110   ;;  %153 = vst.msk [vmem:[%s290_s1 + $0x23] ss:$-20 sm:$0x3] %vm7_vm0, %v103_v35  }
  0x9a   :  { %154 = vst.msk [vmem:[%s290_s1 + $0x24] ss:$-20 sm:$0x3] %vm7_vm0, %v111_v36  }
  0x9c   :  { %v119_v37 = vpop.permute.xlu0 %118  }
  0x9d   :  { %v127_v38 = vpop.permute.xlu1 %126   ;;  %155 = vst.msk [vmem:[%s290_s1 + $0x25] ss:$-20 sm:$0x3] %vm7_vm0, %v119_v37  }
  0x9e   :  { %156 = vst.msk [vmem:[%s290_s1 + $0x26] ss:$-20 sm:$0x3] %vm7_vm0, %v127_v38  }
  0xa0   :  { %v135_v39 = vpop.permute.xlu0 %134  }
  0xa1   :  { %157 = vst.msk [vmem:[%s290_s1 + $0x27] ss:$-20 sm:$0x3] %vm7_vm0, %v135_v39  }

// kernel: model_forward.9
= control target key start
LH: loop header
LB: loop body
LE: loop exit
PB: predicated region body
PF: predicated region fallthrough
CT: control target
= control target key end

     0   :  { %v872_v3 = vmov 0   ;;  %vm141_vm0 = vcmask 326656   ;;  %vm611_vm1 = vcmask 162816   ;;  %s1417_s1 = inlined_call_operand.vmem [shape: f32[168,512], index: 1, kind: input, shape index: {}]   ;;  %s1418_s0 = inlined_call_operand.vmem [shape: f32[40,168], index: 0, kind: input, shape index: {}]   ;;  %s1419_s2 = inlined_call_operand.vmem [shape: f32[40,1], index: 2, kind: input, shape index: {}]   ;;  %s1420_s3 = inlined_call_operand.vmem [shape: f32[512,20], index: 3, kind: input, shape index: {}]   ;;  %s1421_s4 = inlined_call_operand.vmem [shape: f32[40,20], index: 4, kind: output, shape index: {}]  }
   0x1   :  { %v28_v0 = vld [vmem:[%s1417_s1 + $0x8] sm:$0xff]  ;;  %v30_v2 = vld [vmem:[%s1417_s1 + $0x18] sm:$0xff]  ;;  %870 = vset.pattern.permute.xlu0 %v872_v3  ;;  %871 = vset.pattern.permute.xlu1 %v872_v3  ;;  %v27_v6 = vld [vmem:[%s1417_s1] sm:$0xff] }
   0x2   :  { %v32_v1 = vld [vmem:[%s1417_s1 + $0x28] sm:$0xff]  ;;  %v34_v5 = vld [vmem:[%s1417_s1 + $0x38] sm:$0xff]  ;;  %v31_v7 = vld [vmem:[%s1417_s1 + $0x20] sm:$0xff] }
   0x3   :  { %v725_v4 = vpack.c.bf16 %v32_v1, %v28_v0  ;;  %v765_v8 = vpack.c.bf16 %v34_v5, %v30_v2  ;;  %v727_v9 = vpack.c.bf16 %v31_v7, %v27_v6  ;;  %v29_v10 = vld [vmem:[%s1417_s1 + $0x10] sm:$0xff]  ;;  %v36_v12 = vld [vmem:[%s1417_s1 + $0x48] sm:$0xff]  ;;  %v38_v15 = vld [vmem:[%s1417_s1 + $0x58] sm:$0xff] }
   0x4   :  { %v33_v11 = vld [vmem:[%s1417_s1 + $0x30] sm:$0xff]  ;;  %v40_v14 = vld [vmem:[%s1417_s1 + $0x68] sm:$0xff]  ;;  %v42_v16 = vld [vmem:[%s1417_s1 + $0x78] sm:$0xff] }
   0x5   :  { %726 = vmatprep.subr.bf16.mxu0 %v725_v4  ;;  %v767_v13 = vpack.c.bf16 %v33_v11, %v29_v10  ;;  %766 = vmatprep.subr.bf16.mxu1 %v765_v8  ;;  %v729_v17 = vpack.c.bf16 %v40_v14, %v36_v12  ;;  %v769_v18 = vpack.c.bf16 %v42_v16, %v38_v15  ;;  %v35_v19 = vld [vmem:[%s1417_s1 + $0x40] sm:$0xff]  ;;  %v37_v21 = vld [vmem:[%s1417_s1 + $0x50] sm:$0xff]  ;;  %v44_v24 = vld [vmem:[%s1417_s1 + $0x88] sm:$0xff] }
   0x6   :  { %728 = vmatpush1.bf16.msra.mxu0 %v727_v9  ;;  %v39_v20 = vld [vmem:[%s1417_s1 + $0x60] sm:$0xff]  ;;  %v41_v23 = vld [vmem:[%s1417_s1 + $0x70] sm:$0xff]  ;;  %v48_v25 = vld [vmem:[%s1417_s1 + $0xa8] sm:$0xff] }
   0x7   :  { %768 = vmatpush1.bf16.msra.mxu1 %v767_v13  ;;  %v731_v22 = vpack.c.bf16 %v39_v20, %v35_v19  ;;  %730 = vmatprep.subr.bf16.mxu0 %v729_v17  ;;  %v771_v26 = vpack.c.bf16 %v41_v23, %v37_v21  ;;  %v733_v27 = vpack.c.bf16 %v48_v25, %v44_v24  ;;  %v46_v28 = vld [vmem:[%s1417_s1 + $0x98] sm:$0xff]  ;;  %v43_v30 = vld [vmem:[%s1417_s1 + $0x80] sm:$0xff]  ;;  %v45_v33 = vld [vmem:[%s1417_s1 + $0x90] sm:$0xff] }
   0x8   :  { %770 = vmatprep.subr.bf16.mxu1 %v769_v18  ;;  %v50_v29 = vld [vmem:[%s1417_s1 + $0xb8] sm:$0xff]  ;;  %v47_v32 = vld [vmem:[%s1417_s1 + $0xa0] sm:$0xff]  ;;  %v49_v34 = vld [vmem:[%s1417_s1 + $0xb0] sm:$0xff] }
   0x9   :  { %v773_v31 = vpack.c.bf16 %v50_v29, %v46_v28  ;;  %v735_v35 = vpack.c.bf16 %v47_v32, %v43_v30  ;;  %v52_v36 = vld [vmem:[%s1417_s1 + $0xc8] sm:$0xff]  ;;  %v54_v38 = vld [vmem:[%s1417_s1 + $0xd8] sm:$0xff]  ;;  %v775_v39 = vpack.c.bf16 %v49_v34, %v45_v33  ;;  %v51_v42 = vld [vmem:[%s1417_s1 + $0xc0] sm:$0xff] }
   0xa   :  { %732 = vmatpush1.bf16.msra.mxu0 %v731_v22  ;;  %v56_v37 = vld [vmem:[%s1417_s1 + $0xe8] sm:$0xff]  ;;  %v58_v41 = vld [vmem:[%s1417_s1 + $0xf8] sm:$0xff]  ;;  %v55_v43 = vld [vmem:[%s1417_s1 + $0xe0] sm:$0xff] }
   0xb   :  { %772 = vmatpush1.bf16.msra.mxu1 %v771_v26  ;;  %734 = vmatprep.subr.bf16.mxu0 %v733_v27  ;;  %v737_v40 = vpack.c.bf16 %v56_v37, %v52_v36  ;;  %v777_v44 = vpack.c.bf16 %v58_v41, %v54_v38  ;;  %v53_v45 = vld [vmem:[%s1417_s1 + $0xd0] sm:$0xff]  ;;  %v60_v47 = vld [vmem:[%s1417_s1 + $0x108] sm:$0xff]  ;;  %v62_v49 = vld [vmem:[%s1417_s1 + $0x118] sm:$0xff]  ;;  %v739_v51 = vpack.c.bf16 %v55_v43, %v51_v42 }
   0xc   :  { %774 = vmatprep.subr.bf16.mxu1 %v773_v31  ;;  %v57_v46 = vld [vmem:[%s1417_s1 + $0xf0] sm:$0xff]  ;;  %v64_v48 = vld [vmem:[%s1417_s1 + $0x128] sm:$0xff]  ;;  %v66_v50 = vld [vmem:[%s1417_s1 + $0x138] sm:$0xff] }
   0xd   :  { %v779_v52 = vpack.c.bf16 %v57_v46, %v53_v45  ;;  %v741_v53 = vpack.c.bf16 %v64_v48, %v60_v47  ;;  %v59_v54 = vld [vmem:[%s1417_s1 + $0x100] sm:$0xff]  ;;  %v61_v56 = vld [vmem:[%s1417_s1 + $0x110] sm:$0xff]  ;;  %v781_v57 = vpack.c.bf16 %v66_v50, %v62_v49  ;;  %v68_v59 = vld [vmem:[%s1417_s1 + $0x148] sm:$0xff] }
   0xe   :  { %736 = vmatpush1.bf16.msra.mxu0 %v735_v35  ;;  %v63_v55 = vld [vmem:[%s1417_s1 + $0x120] sm:$0xff]  ;;  %v65_v58 = vld [vmem:[%s1417_s1 + $0x130] sm:$0xff]  ;;  %v72_v60 = vld [vmem:[%s1417_s1 + $0x168] sm:$0xff] }
   0xf   :  { %776 = vmatpush1.bf16.msra.mxu1 %v775_v39  ;;  %738 = vmatprep.subr.bf16.mxu0 %v737_v40  ;;  %v70_v61 = vld [vmem:[%s1417_s1 + $0x158] sm:$0xff]  ;;  %v743_v63 = vpack.c.bf16 %v63_v55, %v59_v54  ;;  %v783_v0 = vpack.c.bf16 %v65_v58, %v61_v56  ;;  %v745_v1 = vpack.c.bf16 %v72_v60, %v68_v59  ;;  %v67_v2 = vld [vmem:[%s1417_s1 + $0x140] sm:$0xff]  ;;  %v69_v4 = vld [vmem:[%s1417_s1 + $0x150] sm:$0xff] }
  0x10   :  { %778 = vmatprep.subr.bf16.mxu1 %v777_v44  ;;  %v74_v62 = vld [vmem:[%s1417_s1 + $0x178] sm:$0xff]  ;;  %v71_v3 = vld [vmem:[%s1417_s1 + $0x160] sm:$0xff]  ;;  %v73_v6 = vld [vmem:[%s1417_s1 + $0x170] sm:$0xff] }
  0x11   :  { %v785_v5 = vpack.c.bf16 %v74_v62, %v70_v61  ;;  %v76_v7 = vld [vmem:[%s1417_s1 + $0x188] sm:$0xff]  ;;  %v78_v9 = vld [vmem:[%s1417_s1 + $0x198] sm:$0xff]  ;;  %v747_v11 = vpack.c.bf16 %v71_v3, %v67_v2  ;;  %v787_v12 = vpack.c.bf16 %v73_v6, %v69_v4  ;;  %v75_v14 = vld [vmem:[%s1417_s1 + $0x180] sm:$0xff] }
  0x12   :  { %740 = vmatpush1.bf16.msra.mxu0 %v739_v51  ;;  %v80_v8 = vld [vmem:[%s1417_s1 + $0x1a8] sm:$0xff]  ;;  %v82_v10 = vld [vmem:[%s1417_s1 + $0x1b8] sm:$0xff]  ;;  %v79_v15 = vld [vmem:[%s1417_s1 + $0x1a0] sm:$0xff] }
  0x13   :  { %780 = vmatpush1.bf16.msra.mxu1 %v779_v52  ;;  %742 = vmatprep.subr.bf16.mxu0 %v741_v53  ;;  %v749_v13 = vpack.c.bf16 %v80_v8, %v76_v7  ;;  %v77_v16 = vld [vmem:[%s1417_s1 + $0x190] sm:$0xff]  ;;  %v789_v17 = vpack.c.bf16 %v82_v10, %v78_v9  ;;  %v84_v19 = vld [vmem:[%s1417_s1 + $0x1c8] sm:$0xff]  ;;  %v86_v21 = vld [vmem:[%s1417_s1 + $0x1d8] sm:$0xff]  ;;  %v751_v23 = vpack.c.bf16 %v79_v15, %v75_v14 }
  0x14   :  { %782 = vmatprep.subr.bf16.mxu1 %v781_v57  ;;  %v81_v18 = vld [vmem:[%s1417_s1 + $0x1b0] sm:$0xff]  ;;  %v88_v20 = vld [vmem:[%s1417_s1 + $0x1e8] sm:$0xff]  ;;  %v90_v22 = vld [vmem:[%s1417_s1 + $0x1f8] sm:$0xff] }
  0x15   :  { %v791_v24 = vpack.c.bf16 %v81_v18, %v77_v16  ;;  %v753_v25 = vpack.c.bf16 %v88_v20, %v84_v19  ;;  %v83_v26 = vld [vmem:[%s1417_s1 + $0x1c0] sm:$0xff]  ;;  %v85_v28 = vld [vmem:[%s1417_s1 + $0x1d0] sm:$0xff]  ;;  %v793_v29 = vpack.c.bf16 %v90_v22, %v86_v21  ;;  %v92_v31 = vld [vmem:[%s1417_s1 + $0x208] sm:$0xff] }
  0x16   :  { %744 = vmatpush1.bf16.msra.mxu0 %v743_v63  ;;  %v87_v27 = vld [vmem:[%s1417_s1 + $0x1e0] sm:$0xff]  ;;  %v89_v30 = vld [vmem:[%s1417_s1 + $0x1f0] sm:$0xff]  ;;  %v96_v32 = vld [vmem:[%s1417_s1 + $0x228] sm:$0xff] }
  0x17   :  { %784 = vmatpush1.bf16.msra.mxu1 %v783_v0  ;;  %746 = vmatprep.subr.bf16.mxu0 %v745_v1  ;;  %v94_v33 = vld [vmem:[%s1417_s1 + $0x218] sm:$0xff]  ;;  %v18_v35 = vld [vmem:[%s1418_s0 + $0x8] sm:$0xff]  ;;  %v755_v36 = vpack.c.bf16 %v87_v27, %v83_v26  ;;  %v795_v37 = vpack.c.bf16 %v89_v30, %v85_v28  ;;  %v757_v38 = vpack.c.bf16 %v96_v32, %v92_v31  ;;  %v91_v39 = vld [vmem:[%s1417_s1 + $0x200] sm:$0xff] }
  0x18   :  { %786 = vmatprep.subr.bf16.mxu1 %v785_v5  ;;  %v98_v34 = vld [vmem:[%s1417_s1 + $0x238] sm:$0xff]  ;;  %621 = vmatprep.mubr.msk.f32.mxu0 %vm141_vm0, %v18_v35  ;;  %v95_v40 = vld [vmem:[%s1417_s1 + $0x220] sm:$0xff]  ;;  %v93_v41 = vld [vmem:[%s1417_s1 + $0x210] sm:$0xff] }
  0x19   :  { %v797_v42 = vpack.c.bf16 %v98_v34, %v94_v33  ;;  %v97_v43 = vld [vmem:[%s1417_s1 + $0x230] sm:$0xff]  ;;  %v100_v44 = vld [vmem:[%s1417_s1 + $0x248] sm:$0xff]  ;;  %626 = vmatprep.mubr.msk.f32.mxu1 %vm141_vm0, %v18_v35  ;;  %v102_v46 = vld [vmem:[%s1417_s1 + $0x258] sm:$0xff]  ;;  %v759_v49 = vpack.c.bf16 %v95_v40, %v91_v39 }
  0x1a   :  { %748 = vmatpush1.bf16.msra.mxu0 %v747_v11  ;;  %v104_v45 = vld [vmem:[%s1417_s1 + $0x268] sm:$0xff]  ;;  %v106_v47 = vld [vmem:[%s1417_s1 + $0x278] sm:$0xff]  ;;  %v111_v48 = vld [vmem:[%s1419_s2] sm:$0xff]  ;;  %v799_v51 = vpack.c.bf16 %v97_v43, %v93_v41 }
  0x1b   :  { %788 = vmatpush1.bf16.msra.mxu1 %v787_v12  ;;  %750 = vmatprep.subr.bf16.mxu0 %v749_v13  ;;  %v113_v50 = vld [vmem:[%s1419_s2 + $0x10] sm:$0xff]  ;;  %v761_v52 = vpack.c.bf16 %v104_v45, %v100_v44  ;;  %v99_v53 = vld [vmem:[%s1417_s1 + $0x240] sm:$0xff]  ;;  %v112_v55 = vld [vmem:[%s1419_s2 + $0x8] sm:$0xff]  ;;  %v801_v56 = vpack.c.bf16 %v106_v47, %v102_v46 }
  0x1c   :  { %790 = vmatprep.subr.bf16.mxu1 %v789_v17  ;;  %118 = vperm.xlu0 %870, %v111_v48   ;;  %v103_v54 = vld [vmem:[%s1417_s1 + $0x260] sm:$0xff]  ;;  %v101_v57 = vld [vmem:[%s1417_s1 + $0x250] sm:$0xff]  ;;  %v114_v59 = vld [vmem:[%s1419_s2 + $0x18] sm:$0xff] }
  0x1d   :  { %v105_v58 = vld [vmem:[%s1417_s1 + $0x270] sm:$0xff]  ;;  %128 = vperm.xlu1 %871, %v113_v50   ;;  %v763_v60 = vpack.c.bf16 %v103_v54, %v99_v53  ;;  %v115_v62 = vld [vmem:[%s1419_s2 + $0x20] sm:$0xff]  ;;  %v108_v63 = vld [vmem:[%s1417_s1 + $0x288] sm:$0xff] }
  0x1e   :  { %752 = vmatpush1.bf16.msra.mxu0 %v751_v23  ;;  %v803_v61 = vpack.c.bf16 %v105_v58, %v101_v57  ;;  %v110_v0 = vld [vmem:[%s1417_s1 + $0x298] sm:$0xff]  ;;  %v107_v1 = vld [vmem:[%s1417_s1 + $0x280] sm:$0xff]  ;;  %v109_v2 = vld [vmem:[%s1417_s1 + $0x290] sm:$0xff] }
  0x1f   :  { %792 = vmatpush1.bf16.msra.mxu1 %v791_v24  ;;  %754 = vmatprep.subr.bf16.mxu0 %v753_v25  ;;  %v383_v3 = vld [vmem:[%s1420_s3 + $0x80] sm:$0xff]  ;;  %v384_v4 = vld [vmem:[%s1420_s3 + $0x88] sm:$0xff]  ;;  %v20_v12 = vld [vmem:[%s1418_s0 + $0x18] sm:$0xff] }
  0x20   :  { %794 = vmatprep.subr.bf16.mxu1 %v793_v29  ;;  %123 = vperm.xlu0 %870, %v112_v55   ;;  %v415_v5 = vld [vmem:[%s1420_s3 + $0x180] sm:$0xff]  ;;  %v416_v6 = vld [vmem:[%s1420_s3 + $0x188] sm:$0xff]  ;;  %v805_v13 = vpack.c.bf16 %v384_v4, %v383_v3  ;;  %v385_v16 = vld [vmem:[%s1420_s3 + $0x90] sm:$0xff] }
  0x21   :  { %133 = vperm.xlu1 %871, %v114_v59   ;;  %v367_v7 = vld [vmem:[%s1420_s3] sm:$0xff]  ;;  %v368_v8 = vld [vmem:[%s1420_s3 + $0x8] sm:$0xff]  ;;  %v837_v14 = vpack.c.bf16 %v416_v6, %v415_v5  ;;  %v386_v17 = vld [vmem:[%s1420_s3 + $0x98] sm:$0xff] }
  0x22   :  { %756 = vmatpush1.bf16.msra.mxu0 %v755_v36  ;;  %v17_v9 = vld [vmem:[%s1418_s0] sm:$0xff]  ;;  %v400_v11 = vld [vmem:[%s1420_s3 + $0x108] sm:$0xff]  ;;  %v807_v15 = vpack.c.bf16 %v368_v8, %v367_v7  ;;  %v417_v18 = vld [vmem:[%s1420_s3 + $0x190] sm:$0xff]  ;;  %v809_v27 = vpack.c.bf16 %v386_v17, %v385_v16 }
  0x23   :  { %796 = vmatpush1.bf16.msra.mxu1 %v795_v37  ;;  %758 = vmatprep.subr.bf16.mxu0 %v757_v38  ;;  %v399_v10 = vld [vmem:[%s1420_s3 + $0x100] sm:$0xff]  ;;  %v418_v20 = vld [vmem:[%s1420_s3 + $0x198] sm:$0xff]  ;;  %v369_v21 = vld [vmem:[%s1420_s3 + $0x10] sm:$0xff] }
  0x24   :  { %798 = vmatprep.subr.bf16.mxu1 %v797_v42  ;;  %138 = vperm.xlu0 %870, %v115_v62   ;;  %v839_v19 = vpack.c.bf16 %v400_v11, %v399_v10  ;;  %v370_v22 = vld [vmem:[%s1420_s3 + $0x18] sm:$0xff]  ;;  %v19_v23 = vld [vmem:[%s1418_s0 + $0x10] sm:$0xff]  ;;  %v22_v26 = vld [vmem:[%s1418_s0 + $0x28] sm:$0xff]  ;;  %v841_v28 = vpack.c.bf16 %v418_v20, %v417_v18 }
  0x25   :  { %v401_v24 = vld [vmem:[%s1420_s3 + $0x110] sm:$0xff]  ;;  %v402_v25 = vld [vmem:[%s1420_s3 + $0x118] sm:$0xff]  ;;  %v811_v29 = vpack.c.bf16 %v370_v22, %v369_v21  ;;  %v387_v30 = vld [vmem:[%s1420_s3 + $0xa0] sm:$0xff] }
  0x26   :  { %760 = vmatpush1.bf16.msra.mxu0 %v759_v49  ;;  %v388_v31 = vld [vmem:[%s1420_s3 + $0xa8] sm:$0xff]  ;;  %v419_v32 = vld [vmem:[%s1420_s3 + $0x1a0] sm:$0xff]  ;;  %v843_v33 = vpack.c.bf16 %v402_v25, %v401_v24  ;;  %v24_v40 = vld [vmem:[%s1418_s0 + $0x38] sm:$0xff] }
  0x27   :  { %800 = vmatpush1.bf16.msra.mxu1 %v799_v51  ;;  %762 = vmatprep.subr.bf16.mxu0 %v761_v52  ;;  %v420_v34 = vld [vmem:[%s1420_s3 + $0x1a8] sm:$0xff]  ;;  %v371_v35 = vld [vmem:[%s1420_s3 + $0x20] sm:$0xff]  ;;  %v813_v41 = vpack.c.bf16 %v388_v31, %v387_v30  ;;  %v389_v44 = vld [vmem:[%s1420_s3 + $0xb0] sm:$0xff] }
  0x28   :  { %802 = vmatprep.subr.bf16.mxu1 %v801_v56  ;;  %v372_v36 = vld [vmem:[%s1420_s3 + $0x28] sm:$0xff]  ;;  %v21_v37 = vld [vmem:[%s1418_s0 + $0x20] sm:$0xff]  ;;  %v845_v42 = vpack.c.bf16 %v420_v34, %v419_v32  ;;  %v390_v45 = vld [vmem:[%s1420_s3 + $0xb8] sm:$0xff] }
  0x29   :  { %v403_v38 = vld [vmem:[%s1420_s3 + $0x120] sm:$0xff]  ;;  %v404_v39 = vld [vmem:[%s1420_s3 + $0x128] sm:$0xff]  ;;  %v815_v43 = vpack.c.bf16 %v372_v36, %v371_v35  ;;  %v421_v46 = vld [vmem:[%s1420_s3 + $0x1b0] sm:$0xff]  ;;  %v817_v55 = vpack.c.bf16 %v390_v45, %v389_v44 }
  0x2a   :  { %764 = vmatpush1.bf16.msra.mxu0 %v763_v60  ;;  %v847_v47 = vpack.c.bf16 %v404_v39, %v403_v38  ;;  %v422_v48 = vld [vmem:[%s1420_s3 + $0x1b8] sm:$0xff]  ;;  %v373_v49 = vld [vmem:[%s1420_s3 + $0x30] sm:$0xff]  ;;  %v26_v54 = vld [vmem:[%s1418_s0 + $0x48] sm:$0xff] }
  0x2b   :  { %804 = vmatpush1.bf16.msra.mxu1 %v803_v61  ;;  %197 = vmatprep.subr.mxu0 %v108_v63  ;;  %v374_v50 = vld [vmem:[%s1420_s3 + $0x38] sm:$0xff]  ;;  %v23_v51 = vld [vmem:[%s1418_s0 + $0x30] sm:$0xff]  ;;  %v391_v56 = vld [vmem:[%s1420_s3 + $0xc0] sm:$0xff]  ;;  %v849_v59 = vpack.c.bf16 %v422_v48, %v421_v46 }
  0x2c   :  { %292 = vmatprep.subr.mxu1 %v110_v0  ;;  %v405_v52 = vld [vmem:[%s1420_s3 + $0x130] sm:$0xff]  ;;  %v406_v53 = vld [vmem:[%s1420_s3 + $0x138] sm:$0xff]  ;;  %v392_v57 = vld [vmem:[%s1420_s3 + $0xc8] sm:$0xff]  ;;  %v819_v60 = vpack.c.bf16 %v374_v50, %v373_v49 }
  0x2d   :  { %v25_v58 = vld [vmem:[%s1418_s0 + $0x40] sm:$0xff]  ;;  %v424_v62 = vld [vmem:[%s1420_s3 + $0x1c8] sm:$0xff]  ;;  %v851_v63 = vpack.c.bf16 %v406_v53, %v405_v52  ;;  %v821_v3 = vpack.c.bf16 %v392_v57, %v391_v56  ;;  %v393_v5 = vld [vmem:[%s1420_s3 + $0xd0] sm:$0xff] }
  0x2e   :  { %198 = vmatpush1.msra.mxu0 %v107_v1  ;;  %v423_v61 = vld [vmem:[%s1420_s3 + $0x1c0] sm:$0xff]  ;;  %v376_v1 = vld [vmem:[%s1420_s3 + $0x48] sm:$0xff]  ;;  %v394_v6 = vld [vmem:[%s1420_s3 + $0xd8] sm:$0xff] }
  0x2f   :  { %293 = vmatpush1.msra.mxu1 %v109_v2  ;;  %222 = vmatmul.mubr.f32.vlgmr.msra.gmra.mrb[0].mxu0 %v17_v9  ;;  %v375_v0 = vld [vmem:[%s1420_s3 + $0x40] sm:$0xff]  ;;  %v408_v4 = vld [vmem:[%s1420_s3 + $0x148] sm:$0xff]  ;;  %v853_v7 = vpack.c.bf16 %v424_v62, %v423_v61  ;;  %v425_v8 = vld [vmem:[%s1420_s3 + $0x1d0] sm:$0xff] }
  0x30   :  { %317 = vmatmul.mubr.f32.vlgmr.msra.gmra.mrb[0].mxu1 %v17_v9  ;;  %622 = vmatprep.mubr.msk.f32.mxu0 %vm141_vm0, %v20_v12  ;;  %v407_v2 = vld [vmem:[%s1420_s3 + $0x140] sm:$0xff]  ;;  %v426_v9 = vld [vmem:[%s1420_s3 + $0x1d8] sm:$0xff]  ;;  %v823_v10 = vpack.c.bf16 %v376_v1, %v375_v0  ;;  %v428_v21 = vld [vmem:[%s1420_s3 + $0x1e8] sm:$0xff] }
  0x31   :  { %627 = vmatprep.mubr.msk.f32.mxu1 %vm141_vm0, %v20_v12  ;;  %806 = vmatprep.subr.bf16.mxu0 %v805_v13  ;;  %v855_v11 = vpack.c.bf16 %v408_v4, %v407_v2  ;;  %v825_v12 = vpack.c.bf16 %v394_v6, %v393_v5  ;;  %v377_v13 = vld [vmem:[%s1420_s3 + $0x50] sm:$0xff]  ;;  %v857_v16 = vpack.c.bf16 %v426_v9, %v425_v8  ;;  %v410_v17 = vld [vmem:[%s1420_s3 + $0x158] sm:$0xff]  ;;  %v395_v18 = vld [vmem:[%s1420_s3 + $0xe0] sm:$0xff] }
  0x32   :  { %838 = vmatprep.subr.bf16.mxu1 %v837_v14  ;;  %808 = vmatpush3.bf16.msra.mxu0 %v807_v15  ;;  %v378_v14 = vld [vmem:[%s1420_s3 + $0x58] sm:$0xff]  ;;  %v409_v15 = vld [vmem:[%s1420_s3 + $0x150] sm:$0xff]  ;;  %v427_v20 = vld [vmem:[%s1420_s3 + $0x1e0] sm:$0xff] }
  0x33   :  { %228 = vmatmul.mubr.f32.gmra.mrb[2].mxu0 %v19_v23  ;;  %840 = vmatpush3.bf16.msra.mxu1 %v839_v19  ;;  %v396_v19 = vld [vmem:[%s1420_s3 + $0xe8] sm:$0xff]  ;;  %v827_v22 = vpack.c.bf16 %v378_v14, %v377_v13  ;;  %v861_v25 = vpack.c.bf16 %v428_v21, %v427_v20  ;;  %v397_v32 = vld [vmem:[%s1420_s3 + $0xf0] sm:$0xff]  ;;  %v430_v36 = vld [vmem:[%s1420_s3 + $0x1f8] sm:$0xff] }
  0x34   :  { %323 = vmatmul.mubr.f32.gmra.mrb[2].mxu1 %v19_v23  ;;  %623 = vmatprep.mubr.msk.f32.mxu0 %vm141_vm0, %v22_v26  ;;  %v859_v23 = vpack.c.bf16 %v410_v17, %v409_v15  ;;  %v829_v24 = vpack.c.bf16 %v396_v19, %v395_v18  ;;  %v412_v30 = vld [vmem:[%s1420_s3 + $0x168] sm:$0xff]  ;;  %v429_v34 = vld [vmem:[%s1420_s3 + $0x1f0] sm:$0xff]  ;;  %v382_v38 = vld [vmem:[%s1420_s3 + $0x78] sm:$0xff] }
  0x35   :  { %628 = vmatprep.mubr.msk.f32.mxu1 %vm141_vm0, %v22_v26  ;;  %810 = vmatprep.subr.bf16.mxu0 %v809_v27  ;;  %v379_v26 = vld [vmem:[%s1420_s3 + $0x60] sm:$0xff]  ;;  %v380_v27 = vld [vmem:[%s1420_s3 + $0x68] sm:$0xff]  ;;  %v865_v39 = vpack.c.bf16 %v430_v36, %v429_v34 }
  0x36   :  { %842 = vmatprep.subr.bf16.mxu1 %v841_v28  ;;  %812 = vmatpush3.bf16.msra.mxu0 %v811_v29  ;;  %v411_v28 = vld [vmem:[%s1420_s3 + $0x160] sm:$0xff]  ;;  %v831_v29 = vpack.c.bf16 %v380_v27, %v379_v26 }
  0x37   :  { %234 = vmatmul.mubr.f32.gmra.mrb[4].mxu0 %v21_v37  ;;  %844 = vmatpush3.bf16.msra.mxu1 %v843_v33  ;;  %v863_v31 = vpack.c.bf16 %v412_v30, %v411_v28  ;;  %v398_v33 = vld [vmem:[%s1420_s3 + $0xf8] sm:$0xff] }
  0x38   :  { %329 = vmatmul.mubr.f32.gmra.mrb[4].mxu1 %v21_v37  ;;  %624 = vmatprep.mubr.msk.f32.mxu0 %vm141_vm0, %v24_v40  ;;  %v833_v35 = vpack.c.bf16 %v398_v33, %v397_v32  ;;  %v381_v37 = vld [vmem:[%s1420_s3 + $0x70] sm:$0xff] }
  0x39   :  { %629 = vmatprep.mubr.msk.f32.mxu1 %vm141_vm0, %v24_v40  ;;  %814 = vmatprep.subr.bf16.mxu0 %v813_v41  ;;  %v835_v40 = vpack.c.bf16 %v382_v38, %v381_v37  ;;  %v413_v41 = vld [vmem:[%s1420_s3 + $0x170] sm:$0xff] }
  0x3a   :  { %846 = vmatprep.subr.bf16.mxu1 %v845_v42  ;;  %816 = vmatpush3.bf16.msra.mxu0 %v815_v43  ;;  %v414_v42 = vld [vmem:[%s1420_s3 + $0x178] sm:$0xff] }
  0x3b   :  { %240 = vmatmul.mubr.f32.gmra.mrb[6].mxu0 %v23_v51  ;;  %848 = vmatpush3.bf16.msra.mxu1 %v847_v47  ;;  %v867_v43 = vpack.c.bf16 %v414_v42, %v413_v41 }
  0x3c   :  { %335 = vmatmul.mubr.f32.gmra.mrb[6].mxu1 %v23_v51  ;;  %625 = vmatprep.mubr.msk.f32.mxu0 %vm141_vm0, %v26_v54 }
  0x3d   :  { %630 = vmatprep.mubr.msk.f32.mxu1 %vm141_vm0, %v26_v54  ;;  %818 = vmatprep.subr.bf16.mxu0 %v817_v55 }
  0x3e   :  { %850 = vmatprep.subr.bf16.mxu1 %v849_v59  ;;  %820 = vmatpush3.bf16.msra.mxu0 %v819_v60 }
  0x3f   :  { %246 = vmatmul.mubr.f32.gmra.mrb[8].mxu0 %v25_v58  ;;  %852 = vmatpush3.bf16.msra.mxu1 %v851_v63 }
  0x40   :  { %341 = vmatmul.mubr.f32.gmra.mrb[8].mxu1 %v25_v58  ;;  %822 = vmatprep.subr.bf16.mxu0 %v821_v3 }
  0x41   :  { %854 = vmatprep.subr.bf16.mxu1 %v853_v7 }
  0x42   :  { %824 = vmatpush3.bf16.msra.mxu0 %v823_v10 }
  0x43   :  { %856 = vmatpush3.bf16.msra.mxu1 %v855_v11  ;;  %826 = vmatprep.subr.bf16.mxu0 %v825_v12 }
  0x44   :  { %858 = vmatprep.subr.bf16.mxu1 %v857_v16 }
  0x46   :  { %828 = vmatpush3.bf16.msra.mxu0 %v827_v22 }
  0x47   :  { %860 = vmatpush3.bf16.msra.mxu1 %v859_v23  ;;  %830 = vmatprep.subr.bf16.mxu0 %v829_v24 }
  0x48   :  { %862 = vmatprep.subr.bf16.mxu1 %v861_v25 }
  0x4a   :  { %832 = vmatpush3.bf16.msra.mxu0 %v831_v29 }
  0x4b   :  { %864 = vmatpush3.bf16.msra.mxu1 %v863_v31  ;;  %834 = vmatprep.subr.bf16.mxu0 %v833_v35 }
  0x4c   :  { %866 = vmatprep.subr.bf16.mxu1 %v865_v39 }
  0x4e   :  { %836 = vmatpush3.bf16.msra.mxu0 %v835_v40 }
  0x4f   :  { %868 = vmatpush3.bf16.msra.mxu1 %v867_v43 }
  0x9b   :  { %v119_v44 = vpop.permute.xlu0 %118 }
  0x9c   :  { %v129_v63 = vpop.permute.xlu1 %128 }
  0x9f   :  { %v124_v53 = vpop.permute.xlu0 %123 }
  0xa0   :  { %v134_v15 = vpop.permute.xlu1 %133 }
  0xa3   :  { %v139_v28 = vpop.permute.xlu0 %138 }
 0x102   :  { %v223_v45 = vpop.f32.mrb[0].mxu0 }
 0x103   :  { %v224_v46 = vadd.f32 %v223_v45, %v119_v44  ;;  %v318_v47 = vpop.f32.mrb[0].mxu1  ;;  %v225_v48 = vpop.f32.mrb[1].mxu0 }
 0x104   :  { %v319_v49 = vadd.f32 %v318_v47, %v119_v44  ;;  %v226_v50 = vadd.f32 %v225_v48, %v119_v44  ;;  %v320_v51 = vpop.f32.mrb[1].mxu1 }
 0x105   :  { %v321_v52 = vadd.f32 %v320_v51, %v119_v44  ;;  %v347_v56 = vmax.f32 %v224_v46, 0.0 }
 0x106   :  { %v348_v54 = vmax.f32 %v226_v50, 0.0  ;;  %v229_v55 = vpop.f32.mrb[2].mxu0  ;;  %v349_v61 = vmax.f32 %v319_v49, 0.0 }
 0x107   :  { %v350_v57 = vmax.f32 %v321_v52, 0.0  ;;  %v230_v58 = vadd.f32 %v229_v55, %v124_v53  ;;  %v324_v59 = vpop.f32.mrb[2].mxu1  ;;  %v231_v60 = vpop.f32.mrb[3].mxu0 }
 0x108   :  { %v325_v62 = vadd.f32 %v324_v59, %v124_v53  ;;  %v232_v0 = vadd.f32 %v231_v60, %v124_v53  ;;  %v326_v1 = vpop.f32.mrb[3].mxu1  ;;  %495 = vmatprep.mubr.f32.mxu0 %v348_v54 }
 0x109   :  { %v327_v2 = vadd.f32 %v326_v1, %v124_v53  ;;  %585 = vmatprep.mubr.f32.mxu1 %v350_v57  ;;  %496 = vmatmul.mubr.f32.vlgmr.msra.gmra.mrb[10].mxu0 %v347_v56  ;;  %v351_v5 = vmax.f32 %v230_v58, 0.0 }
 0x10a   :  { %v352_v3 = vmax.f32 %v232_v0, 0.0  ;;  %586 = vmatmul.mubr.f32.vlgmr.msra.gmra.mrb[10].mxu1 %v349_v61  ;;  %v235_v4 = vpop.f32.mrb[4].mxu0  ;;  %v353_v10 = vmax.f32 %v325_v62, 0.0 }
 0x10b   :  { %v354_v6 = vmax.f32 %v327_v2, 0.0  ;;  %v236_v7 = vadd.f32 %v235_v4, %v129_v63  ;;  %v330_v8 = vpop.f32.mrb[4].mxu1  ;;  %v237_v9 = vpop.f32.mrb[5].mxu0 }
 0x10c   :  { %v331_v11 = vadd.f32 %v330_v8, %v129_v63  ;;  %v238_v12 = vadd.f32 %v237_v9, %v129_v63  ;;  %v332_v13 = vpop.f32.mrb[5].mxu1  ;;  %500 = vmatprep.mubr.f32.mxu0 %v352_v3 }
 0x10d   :  { %v333_v14 = vadd.f32 %v332_v13, %v129_v63  ;;  %590 = vmatprep.mubr.f32.mxu1 %v354_v6  ;;  %501 = vmatmul.mubr.f32.gmra.mrb[12].mxu0 %v351_v5  ;;  %v355_v18 = vmax.f32 %v236_v7, 0.0 }
 0x10e   :  { %v356_v16 = vmax.f32 %v238_v12, 0.0  ;;  %591 = vmatmul.mubr.f32.gmra.mrb[12].mxu1 %v353_v10  ;;  %v241_v17 = vpop.f32.mrb[6].mxu0  ;;  %v357_v23 = vmax.f32 %v331_v11, 0.0 }
 0x10f   :  { %v358_v19 = vmax.f32 %v333_v14, 0.0  ;;  %v242_v20 = vadd.f32 %v241_v17, %v134_v15  ;;  %v336_v21 = vpop.f32.mrb[6].mxu1  ;;  %v243_v22 = vpop.f32.mrb[7].mxu0 }
 0x110   :  { %v337_v24 = vadd.f32 %v336_v21, %v134_v15  ;;  %v244_v25 = vadd.f32 %v243_v22, %v134_v15  ;;  %v338_v26 = vpop.f32.mrb[7].mxu1  ;;  %505 = vmatprep.mubr.f32.mxu0 %v356_v16 }
 0x111   :  { %v339_v27 = vadd.f32 %v338_v26, %v134_v15  ;;  %595 = vmatprep.mubr.f32.mxu1 %v358_v19  ;;  %506 = vmatmul.mubr.f32.gmra.mrb[14].mxu0 %v355_v18  ;;  %v359_v31 = vmax.f32 %v242_v20, 0.0 }
 0x112   :  { %v360_v29 = vmax.f32 %v244_v25, 0.0  ;;  %596 = vmatmul.mubr.f32.gmra.mrb[14].mxu1 %v357_v23  ;;  %v247_v30 = vpop.f32.mrb[8].mxu0  ;;  %v361_v36 = vmax.f32 %v337_v24, 0.0 }
 0x113   :  { %v362_v32 = vmax.f32 %v339_v27, 0.0  ;;  %v248_v33 = vadd.f32 %v247_v30, %v139_v28  ;;  %v342_v34 = vpop.f32.mrb[8].mxu1  ;;  %v249_v35 = vpop.f32.mrb[9].mxu0 }
 0x114   :  { %v343_v37 = vadd.f32 %v342_v34, %v139_v28  ;;  %v250_v38 = vadd.f32 %v249_v35, %v139_v28  ;;  %v344_v39 = vpop.f32.mrb[9].mxu1  ;;  %510 = vmatprep.mubr.f32.mxu0 %v360_v29 }
 0x115   :  { %v345_v40 = vadd.f32 %v344_v39, %v139_v28  ;;  %600 = vmatprep.mubr.f32.mxu1 %v362_v32  ;;  %511 = vmatmul.mubr.f32.gmra.mrb[16].mxu0 %v359_v31  ;;  %v363_v42 = vmax.f32 %v248_v33, 0.0 }
 0x116   :  { %v364_v41 = vmax.f32 %v250_v38, 0.0  ;;  %601 = vmatmul.mubr.f32.gmra.mrb[16].mxu1 %v361_v36  ;;  %v365_v44 = vmax.f32 %v343_v37, 0.0 }
 0x117   :  { %v366_v43 = vmax.f32 %v345_v40, 0.0 }
 0x118   :  { %515 = vmatprep.mubr.f32.mxu0 %v364_v41 }
 0x119   :  { %605 = vmatprep.mubr.f32.mxu1 %v366_v43  ;;  %516 = vmatmul.mubr.f32.gmra.mrb[18].mxu0 %v363_v42 }
 0x11a   :  { %606 = vmatmul.mubr.f32.gmra.mrb[18].mxu1 %v365_v44 }
 0x1dc   :  { %v663_v45 = vpop.f32.mrb[10].mxu0 }
 0x1dd   :  { %v710_v46 = vpop.f32.mrb[10].mxu1  ;;  %v664_v47 = vpop.f32.mrb[11].mxu0 }
 0x1de   :  { %v665_v48 = vadd.f32 %v664_v47, %v663_v45  ;;  %v711_v49 = vpop.f32.mrb[11].mxu1 }
 0x1df   :  { %v712_v50 = vadd.f32 %v711_v49, %v710_v46 }
 0x1e0   :  { %v666_v51 = vpop.f32.mrb[12].mxu0 }
 0x1e1   :  { %v588_v52 = vadd.f32 %v712_v50, %v665_v48  ;;  %v713_v53 = vpop.f32.mrb[12].mxu1  ;;  %v667_v54 = vpop.f32.mrb[13].mxu0 }
 0x1e2   :  { %v668_v55 = vadd.f32 %v667_v54, %v666_v51  ;;  %v714_v56 = vpop.f32.mrb[13].mxu1 }
 0x1e3   :  { %612 = vst.msk [vmem:[%s1421_s4] sm:$0xff] %vm611_vm1, %v588_v52  ;;  %v715_v57 = vadd.f32 %v714_v56, %v713_v53 }
 0x1e4   :  { %v669_v58 = vpop.f32.mrb[14].mxu0 }
 0x1e5   :  { %v593_v59 = vadd.f32 %v715_v57, %v668_v55  ;;  %v716_v60 = vpop.f32.mrb[14].mxu1  ;;  %v670_v61 = vpop.f32.mrb[15].mxu0 }
 0x1e6   :  { %v671_v62 = vadd.f32 %v670_v61, %v669_v58  ;;  %v717_v63 = vpop.f32.mrb[15].mxu1 }
 0x1e7   :  { %613 = vst.msk [vmem:[%s1421_s4 + $0x8] sm:$0xff] %vm611_vm1, %v593_v59  ;;  %v718_v0 = vadd.f32 %v717_v63, %v716_v60 }
 0x1e8   :  { %v672_v1 = vpop.f32.mrb[16].mxu0 }
 0x1e9   :  { %v598_v2 = vadd.f32 %v718_v0, %v671_v62  ;;  %v719_v3 = vpop.f32.mrb[16].mxu1  ;;  %v673_v4 = vpop.f32.mrb[17].mxu0 }
 0x1ea   :  { %v674_v5 = vadd.f32 %v673_v4, %v672_v1  ;;  %v720_v6 = vpop.f32.mrb[17].mxu1 }
 0x1eb   :  { %614 = vst.msk [vmem:[%s1421_s4 + $0x10] sm:$0xff] %vm611_vm1, %v598_v2  ;;  %v721_v7 = vadd.f32 %v720_v6, %v719_v3 }
 0x1ec   :  { %v675_v8 = vpop.f32.mrb[18].mxu0 }
 0x1ed   :  { %v603_v9 = vadd.f32 %v721_v7, %v674_v5  ;;  %v722_v10 = vpop.f32.mrb[18].mxu1  ;;  %v676_v11 = vpop.f32.mrb[19].mxu0 }
 0x1ee   :  { %v677_v12 = vadd.f32 %v676_v11, %v675_v8  ;;  %v723_v13 = vpop.f32.mrb[19].mxu1 }
 0x1ef   :  { %615 = vst.msk [vmem:[%s1421_s4 + $0x18] sm:$0xff] %vm611_vm1, %v603_v9  ;;  %v724_v14 = vadd.f32 %v723_v13, %v722_v10 }
 0x1f1   :  { %v608_v15 = vadd.f32 %v724_v14, %v677_v12 }
 0x1f3   :  { %616 = vst.msk [vmem:[%s1421_s4 + $0x20] sm:$0xff] %vm611_vm1, %v608_v15 }

// kernel: tile.18
= control target key start
LH: loop header
LB: loop body
LE: loop exit
PB: predicated region body
PF: predicated region fallthrough
CT: control target
= control target key end

     0   :  { %s22_s0 = inlined_call_operand.vmem [shape: f32[40], index: 0, kind: input, shape index: {}]   ;;  %s23_s1 = inlined_call_operand.vmem [shape: f32[2,40], index: 1, kind: output, shape index: {}]  }
   0x1   :  { %v4_v0 = vld [vmem:[%s22_s0] ss:$0 sm:$0xff] }
   0x2   :  { %5 = vst [vmem:[%s23_s1] sm:$0x3] %v4_v0 }

// kernel: tile.1
= control target key start
LH: loop header
LB: loop body
LE: loop exit
PB: predicated region body
PF: predicated region fallthrough
CT: control target
= control target key end

     0   :  { %s338_s8 = smov 125   ;;  %s339_s9 = smov 126   ;;  %vm7_vm0 = vcmask 7168   ;;  %s549_s0 = inlined_call_operand.vmem [shape: f32[2,40], index: 0, kind: input, shape index: {}]   ;;  %s550_s1 = inlined_call_operand.vmem [shape: f32[80,1], index: 1, kind: output, shape index: {}]  }
   0x1   :  { %v4_v0 = vld [vmem:[%s549_s0] sm:$0x3]  ;;  %s337_s0 = smov 127   ;;  %s340_s10 = smov 124  }
   0x2   :  { %5 = vst [vmem:[#allocation0] sm:$0x3] %v4_v0  ;;  %s341_s11 = smov 123   ;;  %s342_s12 = smov 122  }
   0x3   :  { %s343_s13 = smov 121   ;;  %s344_s14 = smov 120  }
   0x4   :  { %s345_s15 = smov 119   ;;  %s346_s16 = smov 118  }
   0x5   :  { %s347_s17 = smov 117   ;;  %s348_s18 = smov 116  }
   0x6   :  { %s349_s19 = smov 115   ;;  %s350_s20 = smov 114  }
   0x7   :  { %s351_s21 = smov 113   ;;  %s352_s22 = smov 112  }
   0x8   :  { %s353_s23 = smov 111   ;;  %s354_s24 = smov 110  }
   0x9   :  { %v9_v1 = vld [vmem:[#allocation0] sm:$0x3]   ;;  %s355_s25 = smov 109   ;;  %s356_s26 = smov 108  }
   0xa   :  { %v21_v2 = vld [vmem:[#allocation0] sm:$0x3]   ;;  %10 = vrot.lane.b32.xlu0 %v9_v1, %s337_s0  ;;  %s148_s27 = smov 3  ;;  %s357_s28 = smov 107  }
   0xb   :  { %22 = vrot.lane.b32.xlu1 %v21_v2, %s338_s8  ;;  %v15_v3 = vld [vmem:[#allocation0] sm:$0x3]   ;;  %s358_s29 = smov 106   ;;  %s156_s30 = smov 3 }
   0xc   :  { %v27_v4 = vld [vmem:[#allocation0] sm:$0x3]   ;;  %s164_s2 = smov 3  ;;  %s359_s3 = smov 105  }
   0xd   :  { %v33_v5 = vld [vmem:[#allocation0] sm:$0x3]   ;;  %s360_s4 = smov 104   ;;  %s172_s5 = smov 3 }
   0xe   :  { %16 = vrot.lane.b32.xlu0 %v15_v3, %s339_s9  ;;  %v39_v6 = vld [vmem:[#allocation0] sm:$0x3]   ;;  %s180_s6 = smov 3  ;;  %s361_s7 = smov 103  }
   0xf   :  { %28 = vrot.lane.b32.xlu1 %v27_v4, %s340_s10  ;;  %v45_v7 = vld [vmem:[#allocation0] sm:$0x3]   ;;  %s362_s0 = smov 102   ;;  %s188_s8 = smov 3 }
  0x10   :  { %v51_v8 = vld [vmem:[#allocation0] sm:$0x3]   ;;  %s196_s9 = smov 3  ;;  %s363_s10 = smov 101  }
  0x11   :  { %v57_v9 = vld [vmem:[#allocation0] sm:$0x3]  }
  0x12   :  { %34 = vrot.lane.b32.xlu0 %v33_v5, %s341_s11  ;;  %v63_v10 = vld [vmem:[#allocation0] sm:$0x3]   ;;  %s364_s11 = smov 100  }
  0x13   :  { %40 = vrot.lane.b32.xlu1 %v39_v6, %s342_s12  ;;  %v69_v11 = vld [vmem:[#allocation0] sm:$0x3]   ;;  %s204_s12 = smov 3 }
  0x14   :  { %v75_v12 = vld [vmem:[#allocation0] sm:$0x3]  }
  0x15   :  { %v81_v13 = vld [vmem:[#allocation0] sm:$0x3]  }
  0x16   :  { %46 = vrot.lane.b32.xlu0 %v45_v7, %s343_s13  ;;  %v87_v14 = vld [vmem:[#allocation0] sm:$0x3]   ;;  %s365_s13 = smov 99  }
  0x17   :  { %52 = vrot.lane.b32.xlu1 %v51_v8, %s344_s14  ;;  %v93_v15 = vld [vmem:[#allocation0] sm:$0x3]   ;;  %s366_s14 = smov 98  }
  0x18   :  { %v99_v16 = vld [vmem:[#allocation0] sm:$0x3]  }
  0x19   :  { %v105_v17 = vld [vmem:[#allocation0] sm:$0x3]  }
  0x1a   :  { %58 = vrot.lane.b32.xlu0 %v57_v9, %s345_s15  ;;  %v111_v18 = vld [vmem:[#allocation0] sm:$0x3]   ;;  %s367_s15 = smov 97  }
  0x1b   :  { %64 = vrot.lane.b32.xlu1 %v63_v10, %s346_s16  ;;  %v117_v19 = vld [vmem:[#allocation0] sm:$0x3]   ;;  %s368_s16 = smov 96  }
  0x1c   :  { %v123_v20 = vld [vmem:[#allocation0] sm:$0x3]  }
  0x1d   :  { %v129_v21 = vld [vmem:[#allocation0] sm:$0x3]  }
  0x1e   :  { %70 = vrot.lane.b32.xlu0 %v69_v11, %s347_s17  ;;  %v135_v22 = vld [vmem:[#allocation0] sm:$0x3]  }
  0x1f   :  { %76 = vrot.lane.b32.xlu1 %v75_v12, %s348_s18  ;;  %v141_v23 = vld [vmem:[#allocation0] sm:$0x3]  }
  0x20   :  { %v149_v24 = vld [vmem:[#allocation0 + $0x1] ss:$-1 sm:%s148_s27]  }
  0x21   :  { %v157_v25 = vld [vmem:[#allocation0 + $0x1] ss:$-1 sm:%s156_s30]  }
  0x22   :  { %82 = vrot.lane.b32.xlu0 %v81_v13, %s349_s19  ;;  %v165_v26 = vld [vmem:[#allocation0 + $0x1] ss:$-1 sm:%s164_s2]   ;;  %s369_s19 = smov 95  }
  0x23   :  { %88 = vrot.lane.b32.xlu1 %v87_v14, %s350_s20  ;;  %v173_v27 = vld [vmem:[#allocation0 + $0x1] ss:$-1 sm:%s172_s5]   ;;  %s370_s20 = smov 94  }
  0x24   :  { %v181_v28 = vld [vmem:[#allocation0 + $0x1] ss:$-1 sm:%s180_s6]  }
  0x25   :  { %v189_v29 = vld [vmem:[#allocation0 + $0x1] ss:$-1 sm:%s188_s8]  }
  0x26   :  { %94 = vrot.lane.b32.xlu0 %v93_v15, %s351_s21  ;;  %v197_v30 = vld [vmem:[#allocation0 + $0x1] ss:$-1 sm:%s196_s9]   ;;  %s371_s21 = smov 93  }
  0x27   :  { %100 = vrot.lane.b32.xlu1 %v99_v16, %s352_s22  ;;  %v205_v31 = vld [vmem:[#allocation0 + $0x1] ss:$-1 sm:%s204_s12]   ;;  %s372_s22 = smov 92  }
  0x28   :  { %v211_v32 = vld [vmem:[#allocation0] sm:$0x3]  }
  0x29   :  { %v217_v33 = vld [vmem:[#allocation0] sm:$0x3]  }
  0x2a   :  { %106 = vrot.lane.b32.xlu0 %v105_v17, %s353_s23  ;;  %v223_v34 = vld [vmem:[#allocation0] sm:$0x3]   ;;  %s373_s23 = smov 91  }
  0x2b   :  { %112 = vrot.lane.b32.xlu1 %v111_v18, %s354_s24  ;;  %v6_v35 = vld [vmem:[#allocation0] sm:$0x3]   ;;  %s374_s24 = smov 90  }
  0x2c   :  { %8 = vst.msk [vmem:[%s550_s1] ss:$40 sm:$0x3] %vm7_vm0, %v6_v35   ;;  %v229_v36 = vld [vmem:[#allocation0] sm:$0x3]  }
  0x2d   :  { %v235_v37 = vld [vmem:[#allocation0] sm:$0x3]  }
  0x2e   :  { %118 = vrot.lane.b32.xlu0 %v117_v19, %s355_s25  ;;  %v241_v38 = vld [vmem:[#allocation0] sm:$0x3]   ;;  %s375_s25 = smov 89  }
  0x2f   :  { %124 = vrot.lane.b32.xlu1 %v123_v20, %s356_s26  ;;  %v247_v39 = vld [vmem:[#allocation0] sm:$0x3]  }
  0x30   :  { %v253_v40 = vld [vmem:[#allocation0] sm:$0x3]  }
  0x32   :  { %130 = vrot.lane.b32.xlu0 %v129_v21, %s357_s28 }
  0x33   :  { %136 = vrot.lane.b32.xlu1 %v135_v22, %s358_s29 }
  0x36   :  { %142 = vrot.lane.b32.xlu0 %v141_v23, %s359_s3 }
  0x37   :  { %150 = vrot.lane.b32.xlu1 %v149_v24, %s360_s4 }
  0x3a   :  { %158 = vrot.lane.b32.xlu0 %v157_v25, %s361_s7 }
  0x3b   :  { %166 = vrot.lane.b32.xlu1 %v165_v26, %s362_s0 }
  0x3e   :  { %174 = vrot.lane.b32.xlu0 %v173_v27, %s363_s10 }
  0x3f   :  { %182 = vrot.lane.b32.xlu1 %v181_v28, %s364_s11 }
  0x42   :  { %190 = vrot.lane.b32.xlu0 %v189_v29, %s365_s13 }
  0x43   :  { %198 = vrot.lane.b32.xlu1 %v197_v30, %s366_s14 }
  0x46   :  { %206 = vrot.lane.b32.xlu0 %v205_v31, %s367_s15 }
  0x47   :  { %212 = vrot.lane.b32.xlu1 %v211_v32, %s368_s16 }
  0x4a   :  { %218 = vrot.lane.b32.xlu0 %v217_v33, %s369_s19 }
  0x4b   :  { %224 = vrot.lane.b32.xlu1 %v223_v34, %s370_s20 }
  0x4e   :  { %230 = vrot.lane.b32.xlu0 %v229_v36, %s371_s21 }
  0x4f   :  { %236 = vrot.lane.b32.xlu1 %v235_v37, %s372_s22 }
  0x52   :  { %242 = vrot.lane.b32.xlu0 %v241_v38, %s373_s23 }
  0x53   :  { %248 = vrot.lane.b32.xlu1 %v247_v39, %s374_s24 }
  0x56   :  { %254 = vrot.lane.b32.xlu0 %v253_v40, %s375_s25 }
  0x7c   :  { %v11_v41 = vpop.permute.xlu0 %10  }
  0x7d   :  { %v23_v42 = vpop.permute.xlu1 %22   ;;  %259 = vst.msk [vmem:[%s550_s1 + $0x1] ss:$40 sm:$0x3] %vm7_vm0, %v11_v41  }
  0x7e   :  { %261 = vst.msk [vmem:[%s550_s1 + $0x3] ss:$40 sm:$0x3] %vm7_vm0, %v23_v42  }
  0x80   :  { %v17_v43 = vpop.permute.xlu0 %16  }
  0x81   :  { %v29_v44 = vpop.permute.xlu1 %28   ;;  %260 = vst.msk [vmem:[%s550_s1 + $0x2] ss:$40 sm:$0x3] %vm7_vm0, %v17_v43  }
  0x82   :  { %262 = vst.msk [vmem:[%s550_s1 + $0x4] ss:$40 sm:$0x3] %vm7_vm0, %v29_v44  }
  0x84   :  { %v35_v45 = vpop.permute.xlu0 %34  }
  0x85   :  { %v41_v46 = vpop.permute.xlu1 %40   ;;  %263 = vst.msk [vmem:[%s550_s1 + $0x5] ss:$40 sm:$0x3] %vm7_vm0, %v35_v45  }
  0x86   :  { %264 = vst.msk [vmem:[%s550_s1 + $0x6] ss:$40 sm:$0x3] %vm7_vm0, %v41_v46  }
  0x88   :  { %v47_v47 = vpop.permute.xlu0 %46  }
  0x89   :  { %v53_v48 = vpop.permute.xlu1 %52   ;;  %265 = vst.msk [vmem:[%s550_s1 + $0x7] ss:$40 sm:$0x3] %vm7_vm0, %v47_v47  }
  0x8a   :  { %266 = vst.msk [vmem:[%s550_s1 + $0x8] ss:$40 sm:$0x3] %vm7_vm0, %v53_v48  }
  0x8c   :  { %v59_v49 = vpop.permute.xlu0 %58  }
  0x8d   :  { %v65_v50 = vpop.permute.xlu1 %64   ;;  %267 = vst.msk [vmem:[%s550_s1 + $0x9] ss:$40 sm:$0x3] %vm7_vm0, %v59_v49  }
  0x8e   :  { %268 = vst.msk [vmem:[%s550_s1 + $0xa] ss:$40 sm:$0x3] %vm7_vm0, %v65_v50  }
  0x90   :  { %v71_v51 = vpop.permute.xlu0 %70  }
  0x91   :  { %v77_v52 = vpop.permute.xlu1 %76   ;;  %269 = vst.msk [vmem:[%s550_s1 + $0xb] ss:$40 sm:$0x3] %vm7_vm0, %v71_v51  }
  0x92   :  { %270 = vst.msk [vmem:[%s550_s1 + $0xc] ss:$40 sm:$0x3] %vm7_vm0, %v77_v52  }
  0x94   :  { %v83_v53 = vpop.permute.xlu0 %82  }
  0x95   :  { %v89_v54 = vpop.permute.xlu1 %88   ;;  %271 = vst.msk [vmem:[%s550_s1 + $0xd] ss:$40 sm:$0x3] %vm7_vm0, %v83_v53  }
  0x96   :  { %272 = vst.msk [vmem:[%s550_s1 + $0xe] ss:$40 sm:$0x3] %vm7_vm0, %v89_v54  }
  0x98   :  { %v95_v55 = vpop.permute.xlu0 %94  }
  0x99   :  { %v101_v56 = vpop.permute.xlu1 %100   ;;  %273 = vst.msk [vmem:[%s550_s1 + $0xf] ss:$40 sm:$0x3] %vm7_vm0, %v95_v55  }
  0x9a   :  { %274 = vst.msk [vmem:[%s550_s1 + $0x10] ss:$40 sm:$0x3] %vm7_vm0, %v101_v56  }
  0x9c   :  { %v107_v57 = vpop.permute.xlu0 %106  }
  0x9d   :  { %v113_v58 = vpop.permute.xlu1 %112   ;;  %275 = vst.msk [vmem:[%s550_s1 + $0x11] ss:$40 sm:$0x3] %vm7_vm0, %v107_v57  }
  0x9e   :  { %276 = vst.msk [vmem:[%s550_s1 + $0x12] ss:$40 sm:$0x3] %vm7_vm0, %v113_v58  }
  0xa0   :  { %v119_v59 = vpop.permute.xlu0 %118  }
  0xa1   :  { %v125_v60 = vpop.permute.xlu1 %124   ;;  %277 = vst.msk [vmem:[%s550_s1 + $0x13] ss:$40 sm:$0x3] %vm7_vm0, %v119_v59  }
  0xa2   :  { %278 = vst.msk [vmem:[%s550_s1 + $0x14] ss:$40 sm:$0x3] %vm7_vm0, %v125_v60  }
  0xa4   :  { %v131_v61 = vpop.permute.xlu0 %130  }
  0xa5   :  { %v137_v62 = vpop.permute.xlu1 %136   ;;  %279 = vst.msk [vmem:[%s550_s1 + $0x15] ss:$40 sm:$0x3] %vm7_vm0, %v131_v61  }
  0xa6   :  { %280 = vst.msk [vmem:[%s550_s1 + $0x16] ss:$40 sm:$0x3] %vm7_vm0, %v137_v62  }
  0xa8   :  { %v143_v63 = vpop.permute.xlu0 %142  }
  0xa9   :  { %v151_v0 = vpop.permute.xlu1 %150   ;;  %281 = vst.msk [vmem:[%s550_s1 + $0x17] ss:$40 sm:$0x3] %vm7_vm0, %v143_v63  }
  0xaa   :  { %282 = vst.msk [vmem:[%s550_s1 + $0x40] ss:$-40 sm:$0x3] %vm7_vm0, %v151_v0  }
  0xac   :  { %v159_v1 = vpop.permute.xlu0 %158  }
  0xad   :  { %v167_v2 = vpop.permute.xlu1 %166   ;;  %283 = vst.msk [vmem:[%s550_s1 + $0x41] ss:$-40 sm:$0x3] %vm7_vm0, %v159_v1  }
  0xae   :  { %284 = vst.msk [vmem:[%s550_s1 + $0x42] ss:$-40 sm:$0x3] %vm7_vm0, %v167_v2  }
  0xb0   :  { %v175_v3 = vpop.permute.xlu0 %174  }
  0xb1   :  { %v183_v4 = vpop.permute.xlu1 %182   ;;  %285 = vst.msk [vmem:[%s550_s1 + $0x43] ss:$-40 sm:$0x3] %vm7_vm0, %v175_v3  }
  0xb2   :  { %286 = vst.msk [vmem:[%s550_s1 + $0x44] ss:$-40 sm:$0x3] %vm7_vm0, %v183_v4  }
  0xb4   :  { %v191_v5 = vpop.permute.xlu0 %190  }
  0xb5   :  { %v199_v6 = vpop.permute.xlu1 %198   ;;  %287 = vst.msk [vmem:[%s550_s1 + $0x45] ss:$-40 sm:$0x3] %vm7_vm0, %v191_v5  }
  0xb6   :  { %288 = vst.msk [vmem:[%s550_s1 + $0x46] ss:$-40 sm:$0x3] %vm7_vm0, %v199_v6  }
  0xb8   :  { %v207_v7 = vpop.permute.xlu0 %206  }
  0xb9   :  { %v213_v8 = vpop.permute.xlu1 %212   ;;  %289 = vst.msk [vmem:[%s550_s1 + $0x47] ss:$-40 sm:$0x3] %vm7_vm0, %v207_v7  }
  0xba   :  { %290 = vst.msk [vmem:[%s550_s1 + $0x20] ss:$40 sm:$0x3] %vm7_vm0, %v213_v8  }
  0xbc   :  { %v219_v9 = vpop.permute.xlu0 %218  }
  0xbd   :  { %v225_v10 = vpop.permute.xlu1 %224   ;;  %291 = vst.msk [vmem:[%s550_s1 + $0x21] ss:$40 sm:$0x3] %vm7_vm0, %v219_v9  }
  0xbe   :  { %292 = vst.msk [vmem:[%s550_s1 + $0x22] ss:$40 sm:$0x3] %vm7_vm0, %v225_v10  }
  0xc0   :  { %v231_v11 = vpop.permute.xlu0 %230  }
  0xc1   :  { %v237_v12 = vpop.permute.xlu1 %236   ;;  %293 = vst.msk [vmem:[%s550_s1 + $0x23] ss:$40 sm:$0x3] %vm7_vm0, %v231_v11  }
  0xc2   :  { %294 = vst.msk [vmem:[%s550_s1 + $0x24] ss:$40 sm:$0x3] %vm7_vm0, %v237_v12  }
  0xc4   :  { %v243_v13 = vpop.permute.xlu0 %242  }
  0xc5   :  { %v249_v14 = vpop.permute.xlu1 %248   ;;  %295 = vst.msk [vmem:[%s550_s1 + $0x25] ss:$40 sm:$0x3] %vm7_vm0, %v243_v13  }
  0xc6   :  { %296 = vst.msk [vmem:[%s550_s1 + $0x26] ss:$40 sm:$0x3] %vm7_vm0, %v249_v14  }
  0xc8   :  { %v255_v15 = vpop.permute.xlu0 %254  }
  0xc9   :  { %297 = vst.msk [vmem:[%s550_s1 + $0x27] ss:$40 sm:$0x3] %vm7_vm0, %v255_v15  }

// kernel: model_forward.10
= control target key start
LH: loop header
LB: loop body
LE: loop exit
PB: predicated region body
PF: predicated region fallthrough
CT: control target
= control target key end

     0   :  { %v1346_v0 = vmov 0.0|0.0   ;;  %vm229_vm0 = vcmask 130048   ;;  %vm1095_vm1 = vcmask 162816   ;;  %s2534_s1 = inlined_call_operand.vmem [shape: f32[144,20], index: 1, kind: input, shape index: {}]   ;;  %s2535_s0 = inlined_call_operand.vmem [shape: f32[800,144], index: 0, kind: input, shape index: {}]   ;;  %s2536_s2 = inlined_call_operand.vmem [shape: f32[800,20], index: 2, kind: output, shape index: {}]  }
   0x1   :  { %1300 = vmatprep.subr.bf16.mxu0 %v1346_v0  ;;  %1327 = vmatprep.subr.bf16.mxu1 %v1346_v0  ;;  %v211_v1 = vld [vmem:[%s2534_s1] sm:$0xff]  ;;  %v212_v2 = vld [vmem:[%s2534_s1 + $0x8] sm:$0xff]  ;;  %v213_v3 = vld [vmem:[%s2534_s1 + $0x10] sm:$0xff] }
   0x2   :  { %v1301_v4 = vpack.c.bf16 %v212_v2, %v211_v1  ;;  %v214_v5 = vld [vmem:[%s2534_s1 + $0x18] sm:$0xff]  ;;  %v215_v7 = vld [vmem:[%s2534_s1 + $0x20] sm:$0xff]  ;;  %v216_v8 = vld [vmem:[%s2534_s1 + $0x28] sm:$0xff] }
   0x3   :  { %v1304_v6 = vpack.c.bf16 %v214_v5, %v213_v3  ;;  %v12_v9 = vld [vmem:[%s2535_s0 + $0x8] sm:$0xff]  ;;  %v1307_v11 = vpack.c.bf16 %v216_v8, %v215_v7  ;;  %v217_v12 = vld [vmem:[%s2534_s1 + $0x30] sm:$0xff]  ;;  %v218_v13 = vld [vmem:[%s2534_s1 + $0x38] sm:$0xff] }
   0x4   :  { %1302 = vmatpush1.bf16.msra.mxu0 %v1301_v4  ;;  %1336 = vmatpush1.bf16.msra.mxu1 %v1301_v4  ;;  %v112_v10 = vld [vmem:[%s2535_s0 + $0x328] sm:$0xff]  ;;  %v1310_v14 = vpack.c.bf16 %v218_v13, %v217_v12  ;;  %v219_v15 = vld [vmem:[%s2534_s1 + $0x40] sm:$0xff]  ;;  %v221_v18 = vld [vmem:[%s2534_s1 + $0x50] sm:$0xff] }
   0x5   :  { %1303 = vmatprep.subr.bf16.mxu0 %v1346_v0  ;;  %1328 = vmatprep.subr.bf16.mxu1 %v1346_v0  ;;  %v220_v16 = vld [vmem:[%s2534_s1 + $0x48] sm:$0xff]  ;;  %v222_v19 = vld [vmem:[%s2534_s1 + $0x58] sm:$0xff]  ;;  %v223_v21 = vld [vmem:[%s2534_s1 + $0x60] sm:$0xff] }
   0x6   :  { %1200 = vmatprep.mubr.msk.f32.mxu0 %vm229_vm0, %v12_v9  ;;  %1250 = vmatprep.mubr.msk.f32.mxu1 %vm229_vm0, %v112_v10  ;;  %v1313_v17 = vpack.c.bf16 %v220_v16, %v219_v15  ;;  %v1316_v20 = vpack.c.bf16 %v222_v19, %v221_v18  ;;  %v224_v22 = vld [vmem:[%s2534_s1 + $0x68] sm:$0xff]  ;;  %v225_v24 = vld [vmem:[%s2534_s1 + $0x70] sm:$0xff]  ;;  %v226_v25 = vld [vmem:[%s2534_s1 + $0x78] sm:$0xff] }
   0x7   :  { %v1319_v23 = vpack.c.bf16 %v224_v22, %v223_v21  ;;  %v1322_v26 = vpack.c.bf16 %v226_v25, %v225_v24  ;;  %v227_v27 = vld [vmem:[%s2534_s1 + $0x80] sm:$0xff]  ;;  %v228_v28 = vld [vmem:[%s2534_s1 + $0x88] sm:$0xff]  ;;  %v14_v32 = vld [vmem:[%s2535_s0 + $0x18] sm:$0xff] }
   0x8   :  { %1305 = vmatpush1.bf16.msra.mxu0 %v1304_v6  ;;  %1337 = vmatpush1.bf16.msra.mxu1 %v1304_v6  ;;  %v1325_v29 = vpack.c.bf16 %v228_v28, %v227_v27  ;;  %v11_v30 = vld [vmem:[%s2535_s0] sm:$0xff]  ;;  %v114_v33 = vld [vmem:[%s2535_s0 + $0x338] sm:$0xff]  ;;  %v13_v34 = vld [vmem:[%s2535_s0 + $0x10] sm:$0xff] }
   0x9   :  { %1306 = vmatprep.subr.bf16.mxu0 %v1346_v0  ;;  %1329 = vmatprep.subr.bf16.mxu1 %v1346_v0  ;;  %v111_v31 = vld [vmem:[%s2535_s0 + $0x320] sm:$0xff]  ;;  %v113_v35 = vld [vmem:[%s2535_s0 + $0x330] sm:$0xff]  ;;  %v16_v36 = vld [vmem:[%s2535_s0 + $0x28] sm:$0xff] }
   0xa   :  { %v116_v37 = vld [vmem:[%s2535_s0 + $0x348] sm:$0xff]  ;;  %v15_v38 = vld [vmem:[%s2535_s0 + $0x20] sm:$0xff]  ;;  %v18_v40 = vld [vmem:[%s2535_s0 + $0x38] sm:$0xff] }
   0xb   :  { %v115_v39 = vld [vmem:[%s2535_s0 + $0x340] sm:$0xff]  ;;  %v118_v41 = vld [vmem:[%s2535_s0 + $0x358] sm:$0xff]  ;;  %v17_v42 = vld [vmem:[%s2535_s0 + $0x30] sm:$0xff] }
   0xc   :  { %1308 = vmatpush1.bf16.msra.mxu0 %v1307_v11  ;;  %1338 = vmatpush1.bf16.msra.mxu1 %v1307_v11  ;;  %v117_v43 = vld [vmem:[%s2535_s0 + $0x350] sm:$0xff]  ;;  %v20_v44 = vld [vmem:[%s2535_s0 + $0x48] sm:$0xff]  ;;  %v19_v46 = vld [vmem:[%s2535_s0 + $0x40] sm:$0xff] }
   0xd   :  { %1309 = vmatprep.subr.bf16.mxu0 %v1346_v0  ;;  %1330 = vmatprep.subr.bf16.mxu1 %v1346_v0  ;;  %v120_v45 = vld [vmem:[%s2535_s0 + $0x368] sm:$0xff]  ;;  %v119_v47 = vld [vmem:[%s2535_s0 + $0x360] sm:$0xff]  ;;  %v22_v48 = vld [vmem:[%s2535_s0 + $0x58] sm:$0xff] }
   0xe   :  { %v122_v49 = vld [vmem:[%s2535_s0 + $0x378] sm:$0xff]  ;;  %v21_v50 = vld [vmem:[%s2535_s0 + $0x50] sm:$0xff]  ;;  %v24_v52 = vld [vmem:[%s2535_s0 + $0x68] sm:$0xff] }
   0xf   :  { %v121_v51 = vld [vmem:[%s2535_s0 + $0x370] sm:$0xff]  ;;  %v124_v53 = vld [vmem:[%s2535_s0 + $0x388] sm:$0xff]  ;;  %v23_v54 = vld [vmem:[%s2535_s0 + $0x60] sm:$0xff] }
  0x10   :  { %1311 = vmatpush1.bf16.msra.mxu0 %v1310_v14  ;;  %1339 = vmatpush1.bf16.msra.mxu1 %v1310_v14  ;;  %v123_v55 = vld [vmem:[%s2535_s0 + $0x380] sm:$0xff]  ;;  %v26_v56 = vld [vmem:[%s2535_s0 + $0x78] sm:$0xff]  ;;  %v25_v58 = vld [vmem:[%s2535_s0 + $0x70] sm:$0xff] }
  0x11   :  { %1312 = vmatprep.subr.bf16.mxu0 %v1346_v0  ;;  %1331 = vmatprep.subr.bf16.mxu1 %v1346_v0  ;;  %v126_v57 = vld [vmem:[%s2535_s0 + $0x398] sm:$0xff]  ;;  %v125_v59 = vld [vmem:[%s2535_s0 + $0x390] sm:$0xff]  ;;  %v28_v60 = vld [vmem:[%s2535_s0 + $0x88] sm:$0xff] }
  0x12   :  { %v128_v61 = vld [vmem:[%s2535_s0 + $0x3a8] sm:$0xff]  ;;  %v27_v62 = vld [vmem:[%s2535_s0 + $0x80] sm:$0xff]  ;;  %v130_v1 = vld [vmem:[%s2535_s0 + $0x3b8] sm:$0xff] }
  0x13   :  { %v127_v63 = vld [vmem:[%s2535_s0 + $0x3a0] sm:$0xff]  ;;  %v29_v2 = vld [vmem:[%s2535_s0 + $0x90] sm:$0xff]  ;;  %v32_v4 = vld [vmem:[%s2535_s0 + $0xa8] sm:$0xff] }
  0x14   :  { %1314 = vmatpush1.bf16.msra.mxu0 %v1313_v17  ;;  %1340 = vmatpush1.bf16.msra.mxu1 %v1313_v17  ;;  %v129_v3 = vld [vmem:[%s2535_s0 + $0x3b0] sm:$0xff]  ;;  %v132_v5 = vld [vmem:[%s2535_s0 + $0x3c8] sm:$0xff]  ;;  %v31_v6 = vld [vmem:[%s2535_s0 + $0xa0] sm:$0xff] }
  0x15   :  { %1315 = vmatprep.subr.bf16.mxu0 %v1346_v0  ;;  %1332 = vmatprep.subr.bf16.mxu1 %v1346_v0  ;;  %v131_v7 = vld [vmem:[%s2535_s0 + $0x3c0] sm:$0xff]  ;;  %v34_v8 = vld [vmem:[%s2535_s0 + $0xb8] sm:$0xff]  ;;  %v33_v10 = vld [vmem:[%s2535_s0 + $0xb0] sm:$0xff] }
  0x16   :  { %v134_v9 = vld [vmem:[%s2535_s0 + $0x3d8] sm:$0xff]  ;;  %v133_v11 = vld [vmem:[%s2535_s0 + $0x3d0] sm:$0xff]  ;;  %v36_v12 = vld [vmem:[%s2535_s0 + $0xc8] sm:$0xff] }
  0x17   :  { %v136_v13 = vld [vmem:[%s2535_s0 + $0x3e8] sm:$0xff]  ;;  %v35_v14 = vld [vmem:[%s2535_s0 + $0xc0] sm:$0xff]  ;;  %v38_v16 = vld [vmem:[%s2535_s0 + $0xd8] sm:$0xff] }
  0x18   :  { %1317 = vmatpush1.bf16.msra.mxu0 %v1316_v20  ;;  %1341 = vmatpush1.bf16.msra.mxu1 %v1316_v20  ;;  %v135_v15 = vld [vmem:[%s2535_s0 + $0x3e0] sm:$0xff]  ;;  %v138_v17 = vld [vmem:[%s2535_s0 + $0x3f8] sm:$0xff]  ;;  %v37_v18 = vld [vmem:[%s2535_s0 + $0xd0] sm:$0xff] }
  0x19   :  { %1318 = vmatprep.subr.bf16.mxu0 %v1346_v0  ;;  %1333 = vmatprep.subr.bf16.mxu1 %v1346_v0  ;;  %v137_v19 = vld [vmem:[%s2535_s0 + $0x3f0] sm:$0xff]  ;;  %v40_v20 = vld [vmem:[%s2535_s0 + $0xe8] sm:$0xff]  ;;  %v39_v22 = vld [vmem:[%s2535_s0 + $0xe0] sm:$0xff] }
  0x1a   :  { %v140_v21 = vld [vmem:[%s2535_s0 + $0x408] sm:$0xff]  ;;  %v42_v24 = vld [vmem:[%s2535_s0 + $0xf8] sm:$0xff]  ;;  %v141_v27 = vld [vmem:[%s2535_s0 + $0x410] sm:$0xff] }
  0x1b   :  { %v142_v25 = vld [vmem:[%s2535_s0 + $0x418] sm:$0xff]  ;;  %v44_v28 = vld [vmem:[%s2535_s0 + $0x108] sm:$0xff] }
  0x1c   :  { %1320 = vmatpush1.bf16.msra.mxu0 %v1319_v23  ;;  %1342 = vmatpush1.bf16.msra.mxu1 %v1319_v23  ;;  %v139_v23 = vld [vmem:[%s2535_s0 + $0x400] sm:$0xff] }
  0x1d   :  { %1321 = vmatprep.subr.bf16.mxu0 %v1346_v0  ;;  %1334 = vmatprep.subr.bf16.mxu1 %v1346_v0 }
  0x20   :  { %1323 = vmatpush1.bf16.msra.mxu0 %v1322_v26  ;;  %1343 = vmatpush1.bf16.msra.mxu1 %v1322_v26  ;;  %v41_v26 = vld [vmem:[%s2535_s0 + $0xf0] sm:$0xff] }
  0x21   :  { %1324 = vmatprep.subr.bf16.mxu0 %v1346_v0  ;;  %1335 = vmatprep.subr.bf16.mxu1 %v1346_v0  ;;  %v30_v0 = vld [vmem:[%s2535_s0 + $0x98] sm:$0xff] }
  0x24   :  { %1326 = vmatpush1.bf16.msra.mxu0 %v1325_v29  ;;  %1344 = vmatpush1.bf16.msra.mxu1 %v1325_v29  ;;  %v144_v29 = vld [vmem:[%s2535_s0 + $0x428] sm:$0xff] }
  0x27   :  { %595 = vmatmul.mubr.f32.vlgmr.msra.gmra.mrb[0].mxu0 %v11_v30  ;;  %845 = vmatmul.mubr.f32.vlgmr.msra.gmra.mrb[0].mxu1 %v111_v31  ;;  %v43_v30 = vld [vmem:[%s2535_s0 + $0x100] sm:$0xff] }
  0x28   :  { %1201 = vmatprep.mubr.msk.f32.mxu0 %vm229_vm0, %v14_v32  ;;  %1251 = vmatprep.mubr.msk.f32.mxu1 %vm229_vm0, %v114_v33  ;;  %v143_v31 = vld [vmem:[%s2535_s0 + $0x420] sm:$0xff]  ;;  %v46_v32 = vld [vmem:[%s2535_s0 + $0x118] sm:$0xff] }
  0x29   :  { %v146_v33 = vld [vmem:[%s2535_s0 + $0x438] sm:$0xff] }
  0x2b   :  { %600 = vmatmul.mubr.f32.gmra.mrb[2].mxu0 %v13_v34  ;;  %850 = vmatmul.mubr.f32.gmra.mrb[2].mxu1 %v113_v35  ;;  %v45_v34 = vld [vmem:[%s2535_s0 + $0x110] sm:$0xff] }
  0x2c   :  { %1202 = vmatprep.mubr.msk.f32.mxu0 %vm229_vm0, %v16_v36  ;;  %1252 = vmatprep.mubr.msk.f32.mxu1 %vm229_vm0, %v116_v37  ;;  %v145_v35 = vld [vmem:[%s2535_s0 + $0x430] sm:$0xff]  ;;  %v48_v36 = vld [vmem:[%s2535_s0 + $0x128] sm:$0xff] }
  0x2d   :  { %v148_v37 = vld [vmem:[%s2535_s0 + $0x448] sm:$0xff] }
  0x2f   :  { %605 = vmatmul.mubr.f32.gmra.mrb[4].mxu0 %v15_v38  ;;  %855 = vmatmul.mubr.f32.gmra.mrb[4].mxu1 %v115_v39  ;;  %v47_v38 = vld [vmem:[%s2535_s0 + $0x120] sm:$0xff] }
  0x30   :  { %1203 = vmatprep.mubr.msk.f32.mxu0 %vm229_vm0, %v18_v40  ;;  %1253 = vmatprep.mubr.msk.f32.mxu1 %vm229_vm0, %v118_v41  ;;  %v147_v39 = vld [vmem:[%s2535_s0 + $0x440] sm:$0xff]  ;;  %v50_v40 = vld [vmem:[%s2535_s0 + $0x138] sm:$0xff] }
  0x31   :  { %v150_v41 = vld [vmem:[%s2535_s0 + $0x458] sm:$0xff] }
  0x33   :  { %610 = vmatmul.mubr.f32.gmra.mrb[6].mxu0 %v17_v42  ;;  %860 = vmatmul.mubr.f32.gmra.mrb[6].mxu1 %v117_v43  ;;  %v49_v42 = vld [vmem:[%s2535_s0 + $0x130] sm:$0xff] }
  0x34   :  { %1204 = vmatprep.mubr.msk.f32.mxu0 %vm229_vm0, %v20_v44  ;;  %1254 = vmatprep.mubr.msk.f32.mxu1 %vm229_vm0, %v120_v45  ;;  %v149_v43 = vld [vmem:[%s2535_s0 + $0x450] sm:$0xff]  ;;  %v52_v44 = vld [vmem:[%s2535_s0 + $0x148] sm:$0xff] }
  0x35   :  { %v152_v45 = vld [vmem:[%s2535_s0 + $0x468] sm:$0xff] }
  0x37   :  { %615 = vmatmul.mubr.f32.gmra.mrb[8].mxu0 %v19_v46  ;;  %865 = vmatmul.mubr.f32.gmra.mrb[8].mxu1 %v119_v47  ;;  %v51_v46 = vld [vmem:[%s2535_s0 + $0x140] sm:$0xff] }
  0x38   :  { %1205 = vmatprep.mubr.msk.f32.mxu0 %vm229_vm0, %v22_v48  ;;  %1255 = vmatprep.mubr.msk.f32.mxu1 %vm229_vm0, %v122_v49  ;;  %v151_v47 = vld [vmem:[%s2535_s0 + $0x460] sm:$0xff]  ;;  %v54_v48 = vld [vmem:[%s2535_s0 + $0x158] sm:$0xff] }
  0x39   :  { %v154_v49 = vld [vmem:[%s2535_s0 + $0x478] sm:$0xff] }
  0x3b   :  { %620 = vmatmul.mubr.f32.gmra.mrb[10].mxu0 %v21_v50  ;;  %870 = vmatmul.mubr.f32.gmra.mrb[10].mxu1 %v121_v51  ;;  %v53_v50 = vld [vmem:[%s2535_s0 + $0x150] sm:$0xff] }
  0x3c   :  { %1206 = vmatprep.mubr.msk.f32.mxu0 %vm229_vm0, %v24_v52  ;;  %1256 = vmatprep.mubr.msk.f32.mxu1 %vm229_vm0, %v124_v53  ;;  %v153_v51 = vld [vmem:[%s2535_s0 + $0x470] sm:$0xff]  ;;  %v56_v52 = vld [vmem:[%s2535_s0 + $0x168] sm:$0xff] }
  0x3d   :  { %v156_v53 = vld [vmem:[%s2535_s0 + $0x488] sm:$0xff] }
  0x3f   :  { %625 = vmatmul.mubr.f32.gmra.mrb[12].mxu0 %v23_v54  ;;  %875 = vmatmul.mubr.f32.gmra.mrb[12].mxu1 %v123_v55  ;;  %v55_v54 = vld [vmem:[%s2535_s0 + $0x160] sm:$0xff] }
  0x40   :  { %1207 = vmatprep.mubr.msk.f32.mxu0 %vm229_vm0, %v26_v56  ;;  %1257 = vmatprep.mubr.msk.f32.mxu1 %vm229_vm0, %v126_v57  ;;  %v155_v55 = vld [vmem:[%s2535_s0 + $0x480] sm:$0xff]  ;;  %v58_v56 = vld [vmem:[%s2535_s0 + $0x178] sm:$0xff] }
  0x41   :  { %v158_v57 = vld [vmem:[%s2535_s0 + $0x498] sm:$0xff] }
  0x43   :  { %630 = vmatmul.mubr.f32.gmra.mrb[14].mxu0 %v25_v58  ;;  %880 = vmatmul.mubr.f32.gmra.mrb[14].mxu1 %v125_v59  ;;  %v57_v58 = vld [vmem:[%s2535_s0 + $0x170] sm:$0xff] }
  0x44   :  { %1208 = vmatprep.mubr.msk.f32.mxu0 %vm229_vm0, %v28_v60  ;;  %1258 = vmatprep.mubr.msk.f32.mxu1 %vm229_vm0, %v128_v61  ;;  %v157_v59 = vld [vmem:[%s2535_s0 + $0x490] sm:$0xff]  ;;  %v60_v60 = vld [vmem:[%s2535_s0 + $0x188] sm:$0xff] }
  0x45   :  { %v160_v61 = vld [vmem:[%s2535_s0 + $0x4a8] sm:$0xff] }
  0x47   :  { %635 = vmatmul.mubr.f32.gmra.mrb[16].mxu0 %v27_v62  ;;  %885 = vmatmul.mubr.f32.gmra.mrb[16].mxu1 %v127_v63  ;;  %v59_v62 = vld [vmem:[%s2535_s0 + $0x180] sm:$0xff] }
  0x48   :  { %1209 = vmatprep.mubr.msk.f32.mxu0 %vm229_vm0, %v30_v0  ;;  %1259 = vmatprep.mubr.msk.f32.mxu1 %vm229_vm0, %v130_v1  ;;  %v159_v63 = vld [vmem:[%s2535_s0 + $0x4a0] sm:$0xff]  ;;  %v62_v0 = vld [vmem:[%s2535_s0 + $0x198] sm:$0xff] }
  0x49   :  { %v162_v1 = vld [vmem:[%s2535_s0 + $0x4b8] sm:$0xff] }
  0x4b   :  { %640 = vmatmul.mubr.f32.gmra.mrb[18].mxu0 %v29_v2  ;;  %890 = vmatmul.mubr.f32.gmra.mrb[18].mxu1 %v129_v3  ;;  %v61_v2 = vld [vmem:[%s2535_s0 + $0x190] sm:$0xff] }
  0x4c   :  { %1210 = vmatprep.mubr.msk.f32.mxu0 %vm229_vm0, %v32_v4  ;;  %1260 = vmatprep.mubr.msk.f32.mxu1 %vm229_vm0, %v132_v5  ;;  %v161_v3 = vld [vmem:[%s2535_s0 + $0x4b0] sm:$0xff]  ;;  %v64_v4 = vld [vmem:[%s2535_s0 + $0x1a8] sm:$0xff] }
  0x4d   :  { %v164_v5 = vld [vmem:[%s2535_s0 + $0x4c8] sm:$0xff] }
  0x4f   :  { %645 = vmatmul.mubr.f32.gmra.mrb[20].mxu0 %v31_v6  ;;  %895 = vmatmul.mubr.f32.gmra.mrb[20].mxu1 %v131_v7  ;;  %v63_v6 = vld [vmem:[%s2535_s0 + $0x1a0] sm:$0xff] }
  0x50   :  { %1211 = vmatprep.mubr.msk.f32.mxu0 %vm229_vm0, %v34_v8  ;;  %1261 = vmatprep.mubr.msk.f32.mxu1 %vm229_vm0, %v134_v9  ;;  %v163_v7 = vld [vmem:[%s2535_s0 + $0x4c0] sm:$0xff]  ;;  %v66_v8 = vld [vmem:[%s2535_s0 + $0x1b8] sm:$0xff] }
  0x51   :  { %v166_v9 = vld [vmem:[%s2535_s0 + $0x4d8] sm:$0xff] }
  0x53   :  { %650 = vmatmul.mubr.f32.gmra.mrb[22].mxu0 %v33_v10  ;;  %900 = vmatmul.mubr.f32.gmra.mrb[22].mxu1 %v133_v11  ;;  %v65_v10 = vld [vmem:[%s2535_s0 + $0x1b0] sm:$0xff] }
  0x54   :  { %1212 = vmatprep.mubr.msk.f32.mxu0 %vm229_vm0, %v36_v12  ;;  %1262 = vmatprep.mubr.msk.f32.mxu1 %vm229_vm0, %v136_v13  ;;  %v165_v11 = vld [vmem:[%s2535_s0 + $0x4d0] sm:$0xff]  ;;  %v68_v12 = vld [vmem:[%s2535_s0 + $0x1c8] sm:$0xff] }
  0x55   :  { %v168_v13 = vld [vmem:[%s2535_s0 + $0x4e8] sm:$0xff] }
  0x57   :  { %655 = vmatmul.mubr.f32.gmra.mrb[24].mxu0 %v35_v14  ;;  %905 = vmatmul.mubr.f32.gmra.mrb[24].mxu1 %v135_v15  ;;  %v67_v14 = vld [vmem:[%s2535_s0 + $0x1c0] sm:$0xff] }
  0x58   :  { %1213 = vmatprep.mubr.msk.f32.mxu0 %vm229_vm0, %v38_v16  ;;  %1263 = vmatprep.mubr.msk.f32.mxu1 %vm229_vm0, %v138_v17  ;;  %v167_v15 = vld [vmem:[%s2535_s0 + $0x4e0] sm:$0xff]  ;;  %v70_v16 = vld [vmem:[%s2535_s0 + $0x1d8] sm:$0xff] }
  0x59   :  { %v170_v17 = vld [vmem:[%s2535_s0 + $0x4f8] sm:$0xff] }
  0x5b   :  { %660 = vmatmul.mubr.f32.gmra.mrb[26].mxu0 %v37_v18  ;;  %910 = vmatmul.mubr.f32.gmra.mrb[26].mxu1 %v137_v19  ;;  %v69_v18 = vld [vmem:[%s2535_s0 + $0x1d0] sm:$0xff] }
  0x5c   :  { %1214 = vmatprep.mubr.msk.f32.mxu0 %vm229_vm0, %v40_v20  ;;  %1264 = vmatprep.mubr.msk.f32.mxu1 %vm229_vm0, %v140_v21  ;;  %v169_v19 = vld [vmem:[%s2535_s0 + $0x4f0] sm:$0xff]  ;;  %v72_v20 = vld [vmem:[%s2535_s0 + $0x1e8] sm:$0xff] }
  0x5d   :  { %v172_v21 = vld [vmem:[%s2535_s0 + $0x508] sm:$0xff] }
  0x5f   :  { %665 = vmatmul.mubr.f32.gmra.mrb[28].mxu0 %v39_v22  ;;  %915 = vmatmul.mubr.f32.gmra.mrb[28].mxu1 %v139_v23  ;;  %v71_v22 = vld [vmem:[%s2535_s0 + $0x1e0] sm:$0xff] }
  0x60   :  { %1215 = vmatprep.mubr.msk.f32.mxu0 %vm229_vm0, %v42_v24  ;;  %1265 = vmatprep.mubr.msk.f32.mxu1 %vm229_vm0, %v142_v25  ;;  %v171_v23 = vld [vmem:[%s2535_s0 + $0x500] sm:$0xff]  ;;  %v74_v24 = vld [vmem:[%s2535_s0 + $0x1f8] sm:$0xff] }
  0x61   :  { %v174_v25 = vld [vmem:[%s2535_s0 + $0x518] sm:$0xff] }
  0x63   :  { %670 = vmatmul.mubr.f32.gmra.mrb[30].mxu0 %v41_v26  ;;  %920 = vmatmul.mubr.f32.gmra.mrb[30].mxu1 %v141_v27  ;;  %v73_v26 = vld [vmem:[%s2535_s0 + $0x1f0] sm:$0xff] }
  0x64   :  { %1216 = vmatprep.mubr.msk.f32.mxu0 %vm229_vm0, %v44_v28  ;;  %1266 = vmatprep.mubr.msk.f32.mxu1 %vm229_vm0, %v144_v29  ;;  %v173_v27 = vld [vmem:[%s2535_s0 + $0x510] sm:$0xff]  ;;  %v76_v28 = vld [vmem:[%s2535_s0 + $0x208] sm:$0xff] }
  0x65   :  { %v176_v29 = vld [vmem:[%s2535_s0 + $0x528] sm:$0xff] }
  0x67   :  { %675 = vmatmul.mubr.f32.gmra.mrb[32].mxu0 %v43_v30  ;;  %925 = vmatmul.mubr.f32.gmra.mrb[32].mxu1 %v143_v31  ;;  %v75_v30 = vld [vmem:[%s2535_s0 + $0x200] sm:$0xff] }
  0x68   :  { %1217 = vmatprep.mubr.msk.f32.mxu0 %vm229_vm0, %v46_v32  ;;  %1267 = vmatprep.mubr.msk.f32.mxu1 %vm229_vm0, %v146_v33  ;;  %v175_v31 = vld [vmem:[%s2535_s0 + $0x520] sm:$0xff]  ;;  %v78_v32 = vld [vmem:[%s2535_s0 + $0x218] sm:$0xff] }
  0x69   :  { %v178_v33 = vld [vmem:[%s2535_s0 + $0x538] sm:$0xff] }
  0x6b   :  { %680 = vmatmul.mubr.f32.gmra.mrb[34].mxu0 %v45_v34  ;;  %930 = vmatmul.mubr.f32.gmra.mrb[34].mxu1 %v145_v35  ;;  %v77_v34 = vld [vmem:[%s2535_s0 + $0x210] sm:$0xff] }
  0x6c   :  { %1218 = vmatprep.mubr.msk.f32.mxu0 %vm229_vm0, %v48_v36  ;;  %1268 = vmatprep.mubr.msk.f32.mxu1 %vm229_vm0, %v148_v37  ;;  %v177_v35 = vld [vmem:[%s2535_s0 + $0x530] sm:$0xff]  ;;  %v80_v36 = vld [vmem:[%s2535_s0 + $0x228] sm:$0xff] }
  0x6d   :  { %v180_v37 = vld [vmem:[%s2535_s0 + $0x548] sm:$0xff] }
  0x6f   :  { %685 = vmatmul.mubr.f32.gmra.mrb[36].mxu0 %v47_v38  ;;  %935 = vmatmul.mubr.f32.gmra.mrb[36].mxu1 %v147_v39  ;;  %v79_v38 = vld [vmem:[%s2535_s0 + $0x220] sm:$0xff] }
  0x70   :  { %1219 = vmatprep.mubr.msk.f32.mxu0 %vm229_vm0, %v50_v40  ;;  %1269 = vmatprep.mubr.msk.f32.mxu1 %vm229_vm0, %v150_v41  ;;  %v179_v39 = vld [vmem:[%s2535_s0 + $0x540] sm:$0xff]  ;;  %v82_v40 = vld [vmem:[%s2535_s0 + $0x238] sm:$0xff] }
  0x71   :  { %v182_v41 = vld [vmem:[%s2535_s0 + $0x558] sm:$0xff] }
  0x73   :  { %690 = vmatmul.mubr.f32.gmra.mrb[38].mxu0 %v49_v42  ;;  %940 = vmatmul.mubr.f32.gmra.mrb[38].mxu1 %v149_v43  ;;  %v81_v42 = vld [vmem:[%s2535_s0 + $0x230] sm:$0xff] }
  0x74   :  { %1220 = vmatprep.mubr.msk.f32.mxu0 %vm229_vm0, %v52_v44  ;;  %1270 = vmatprep.mubr.msk.f32.mxu1 %vm229_vm0, %v152_v45  ;;  %v181_v43 = vld [vmem:[%s2535_s0 + $0x550] sm:$0xff]  ;;  %v84_v44 = vld [vmem:[%s2535_s0 + $0x248] sm:$0xff] }
  0x75   :  { %v184_v45 = vld [vmem:[%s2535_s0 + $0x568] sm:$0xff] }
  0x77   :  { %695 = vmatmul.mubr.f32.gmra.mrb[40].mxu0 %v51_v46  ;;  %945 = vmatmul.mubr.f32.gmra.mrb[40].mxu1 %v151_v47  ;;  %v83_v46 = vld [vmem:[%s2535_s0 + $0x240] sm:$0xff] }
  0x78   :  { %1221 = vmatprep.mubr.msk.f32.mxu0 %vm229_vm0, %v54_v48  ;;  %1271 = vmatprep.mubr.msk.f32.mxu1 %vm229_vm0, %v154_v49  ;;  %v183_v47 = vld [vmem:[%s2535_s0 + $0x560] sm:$0xff]  ;;  %v86_v48 = vld [vmem:[%s2535_s0 + $0x258] sm:$0xff] }
  0x79   :  { %v186_v49 = vld [vmem:[%s2535_s0 + $0x578] sm:$0xff] }
  0x7b   :  { %700 = vmatmul.mubr.f32.gmra.mrb[42].mxu0 %v53_v50  ;;  %950 = vmatmul.mubr.f32.gmra.mrb[42].mxu1 %v153_v51  ;;  %v85_v50 = vld [vmem:[%s2535_s0 + $0x250] sm:$0xff] }
  0x7c   :  { %1222 = vmatprep.mubr.msk.f32.mxu0 %vm229_vm0, %v56_v52  ;;  %1272 = vmatprep.mubr.msk.f32.mxu1 %vm229_vm0, %v156_v53  ;;  %v185_v51 = vld [vmem:[%s2535_s0 + $0x570] sm:$0xff]  ;;  %v88_v52 = vld [vmem:[%s2535_s0 + $0x268] sm:$0xff] }
  0x7d   :  { %v188_v53 = vld [vmem:[%s2535_s0 + $0x588] sm:$0xff] }
  0x7f   :  { %705 = vmatmul.mubr.f32.gmra.mrb[44].mxu0 %v55_v54  ;;  %955 = vmatmul.mubr.f32.gmra.mrb[44].mxu1 %v155_v55  ;;  %v87_v54 = vld [vmem:[%s2535_s0 + $0x260] sm:$0xff] }
  0x80   :  { %1223 = vmatprep.mubr.msk.f32.mxu0 %vm229_vm0, %v58_v56  ;;  %1273 = vmatprep.mubr.msk.f32.mxu1 %vm229_vm0, %v158_v57  ;;  %v187_v55 = vld [vmem:[%s2535_s0 + $0x580] sm:$0xff]  ;;  %v90_v56 = vld [vmem:[%s2535_s0 + $0x278] sm:$0xff] }
  0x81   :  { %v190_v57 = vld [vmem:[%s2535_s0 + $0x598] sm:$0xff] }
  0x83   :  { %710 = vmatmul.mubr.f32.gmra.mrb[46].mxu0 %v57_v58  ;;  %960 = vmatmul.mubr.f32.gmra.mrb[46].mxu1 %v157_v59  ;;  %v89_v58 = vld [vmem:[%s2535_s0 + $0x270] sm:$0xff] }
  0x84   :  { %1224 = vmatprep.mubr.msk.f32.mxu0 %vm229_vm0, %v60_v60  ;;  %1274 = vmatprep.mubr.msk.f32.mxu1 %vm229_vm0, %v160_v61  ;;  %v189_v59 = vld [vmem:[%s2535_s0 + $0x590] sm:$0xff]  ;;  %v92_v60 = vld [vmem:[%s2535_s0 + $0x288] sm:$0xff] }
  0x85   :  { %v192_v61 = vld [vmem:[%s2535_s0 + $0x5a8] sm:$0xff] }
  0x87   :  { %715 = vmatmul.mubr.f32.gmra.mrb[48].mxu0 %v59_v62  ;;  %965 = vmatmul.mubr.f32.gmra.mrb[48].mxu1 %v159_v63  ;;  %v91_v62 = vld [vmem:[%s2535_s0 + $0x280] sm:$0xff] }
  0x88   :  { %1225 = vmatprep.mubr.msk.f32.mxu0 %vm229_vm0, %v62_v0  ;;  %1275 = vmatprep.mubr.msk.f32.mxu1 %vm229_vm0, %v162_v1  ;;  %v191_v63 = vld [vmem:[%s2535_s0 + $0x5a0] sm:$0xff]  ;;  %v94_v0 = vld [vmem:[%s2535_s0 + $0x298] sm:$0xff] }
  0x89   :  { %v194_v1 = vld [vmem:[%s2535_s0 + $0x5b8] sm:$0xff] }
  0x8b   :  { %720 = vmatmul.mubr.f32.gmra.mrb[50].mxu0 %v61_v2  ;;  %970 = vmatmul.mubr.f32.gmra.mrb[50].mxu1 %v161_v3  ;;  %v93_v2 = vld [vmem:[%s2535_s0 + $0x290] sm:$0xff] }
  0x8c   :  { %1226 = vmatprep.mubr.msk.f32.mxu0 %vm229_vm0, %v64_v4  ;;  %1276 = vmatprep.mubr.msk.f32.mxu1 %vm229_vm0, %v164_v5  ;;  %v193_v3 = vld [vmem:[%s2535_s0 + $0x5b0] sm:$0xff]  ;;  %v96_v4 = vld [vmem:[%s2535_s0 + $0x2a8] sm:$0xff] }
  0x8d   :  { %v196_v5 = vld [vmem:[%s2535_s0 + $0x5c8] sm:$0xff] }
  0x8f   :  { %725 = vmatmul.mubr.f32.gmra.mrb[52].mxu0 %v63_v6  ;;  %975 = vmatmul.mubr.f32.gmra.mrb[52].mxu1 %v163_v7  ;;  %v95_v6 = vld [vmem:[%s2535_s0 + $0x2a0] sm:$0xff] }
  0x90   :  { %1227 = vmatprep.mubr.msk.f32.mxu0 %vm229_vm0, %v66_v8  ;;  %1277 = vmatprep.mubr.msk.f32.mxu1 %vm229_vm0, %v166_v9  ;;  %v195_v7 = vld [vmem:[%s2535_s0 + $0x5c0] sm:$0xff]  ;;  %v98_v8 = vld [vmem:[%s2535_s0 + $0x2b8] sm:$0xff] }
  0x91   :  { %v198_v9 = vld [vmem:[%s2535_s0 + $0x5d8] sm:$0xff] }
  0x93   :  { %730 = vmatmul.mubr.f32.gmra.mrb[54].mxu0 %v65_v10  ;;  %980 = vmatmul.mubr.f32.gmra.mrb[54].mxu1 %v165_v11  ;;  %v97_v10 = vld [vmem:[%s2535_s0 + $0x2b0] sm:$0xff] }
  0x94   :  { %1228 = vmatprep.mubr.msk.f32.mxu0 %vm229_vm0, %v68_v12  ;;  %1278 = vmatprep.mubr.msk.f32.mxu1 %vm229_vm0, %v168_v13  ;;  %v197_v11 = vld [vmem:[%s2535_s0 + $0x5d0] sm:$0xff]  ;;  %v100_v12 = vld [vmem:[%s2535_s0 + $0x2c8] sm:$0xff] }
  0x95   :  { %v200_v13 = vld [vmem:[%s2535_s0 + $0x5e8] sm:$0xff] }
  0x97   :  { %735 = vmatmul.mubr.f32.gmra.mrb[56].mxu0 %v67_v14  ;;  %985 = vmatmul.mubr.f32.gmra.mrb[56].mxu1 %v167_v15  ;;  %v99_v14 = vld [vmem:[%s2535_s0 + $0x2c0] sm:$0xff] }
  0x98   :  { %1229 = vmatprep.mubr.msk.f32.mxu0 %vm229_vm0, %v70_v16  ;;  %1279 = vmatprep.mubr.msk.f32.mxu1 %vm229_vm0, %v170_v17  ;;  %v199_v15 = vld [vmem:[%s2535_s0 + $0x5e0] sm:$0xff]  ;;  %v102_v16 = vld [vmem:[%s2535_s0 + $0x2d8] sm:$0xff] }
  0x99   :  { %v202_v17 = vld [vmem:[%s2535_s0 + $0x5f8] sm:$0xff] }
  0x9b   :  { %740 = vmatmul.mubr.f32.gmra.mrb[58].mxu0 %v69_v18  ;;  %990 = vmatmul.mubr.f32.gmra.mrb[58].mxu1 %v169_v19  ;;  %v101_v18 = vld [vmem:[%s2535_s0 + $0x2d0] sm:$0xff] }
  0x9c   :  { %1230 = vmatprep.mubr.msk.f32.mxu0 %vm229_vm0, %v72_v20  ;;  %1280 = vmatprep.mubr.msk.f32.mxu1 %vm229_vm0, %v172_v21  ;;  %v201_v19 = vld [vmem:[%s2535_s0 + $0x5f0] sm:$0xff]  ;;  %v104_v20 = vld [vmem:[%s2535_s0 + $0x2e8] sm:$0xff] }
  0x9d   :  { %v204_v21 = vld [vmem:[%s2535_s0 + $0x608] sm:$0xff] }
  0x9f   :  { %745 = vmatmul.mubr.f32.gmra.mrb[60].mxu0 %v71_v22  ;;  %995 = vmatmul.mubr.f32.gmra.mrb[60].mxu1 %v171_v23  ;;  %v103_v22 = vld [vmem:[%s2535_s0 + $0x2e0] sm:$0xff] }
  0xa0   :  { %1231 = vmatprep.mubr.msk.f32.mxu0 %vm229_vm0, %v74_v24  ;;  %1281 = vmatprep.mubr.msk.f32.mxu1 %vm229_vm0, %v174_v25  ;;  %v203_v23 = vld [vmem:[%s2535_s0 + $0x600] sm:$0xff]  ;;  %v106_v24 = vld [vmem:[%s2535_s0 + $0x2f8] sm:$0xff] }
  0xa1   :  { %v206_v25 = vld [vmem:[%s2535_s0 + $0x618] sm:$0xff] }
  0xa3   :  { %750 = vmatmul.mubr.f32.gmra.mrb[62].mxu0 %v73_v26  ;;  %1000 = vmatmul.mubr.f32.gmra.mrb[62].mxu1 %v173_v27  ;;  %v105_v26 = vld [vmem:[%s2535_s0 + $0x2f0] sm:$0xff] }
  0xa4   :  { %1232 = vmatprep.mubr.msk.f32.mxu0 %vm229_vm0, %v76_v28  ;;  %1282 = vmatprep.mubr.msk.f32.mxu1 %vm229_vm0, %v176_v29  ;;  %v205_v27 = vld [vmem:[%s2535_s0 + $0x610] sm:$0xff]  ;;  %v108_v28 = vld [vmem:[%s2535_s0 + $0x308] sm:$0xff] }
  0xa5   :  { %v208_v29 = vld [vmem:[%s2535_s0 + $0x628] sm:$0xff] }
  0xa7   :  { %755 = vmatmul.mubr.f32.gmra.mrb[64].mxu0 %v75_v30  ;;  %1005 = vmatmul.mubr.f32.gmra.mrb[64].mxu1 %v175_v31  ;;  %v107_v30 = vld [vmem:[%s2535_s0 + $0x300] sm:$0xff] }
  0xa8   :  { %1233 = vmatprep.mubr.msk.f32.mxu0 %vm229_vm0, %v78_v32  ;;  %1283 = vmatprep.mubr.msk.f32.mxu1 %vm229_vm0, %v178_v33  ;;  %v207_v31 = vld [vmem:[%s2535_s0 + $0x620] sm:$0xff]  ;;  %v110_v32 = vld [vmem:[%s2535_s0 + $0x318] sm:$0xff] }
  0xa9   :  { %v210_v33 = vld [vmem:[%s2535_s0 + $0x638] sm:$0xff] }
  0xab   :  { %760 = vmatmul.mubr.f32.gmra.mrb[66].mxu0 %v77_v34  ;;  %1010 = vmatmul.mubr.f32.gmra.mrb[66].mxu1 %v177_v35  ;;  %v109_v34 = vld [vmem:[%s2535_s0 + $0x310] sm:$0xff] }
  0xac   :  { %1234 = vmatprep.mubr.msk.f32.mxu0 %vm229_vm0, %v80_v36  ;;  %1284 = vmatprep.mubr.msk.f32.mxu1 %vm229_vm0, %v180_v37  ;;  %v209_v35 = vld [vmem:[%s2535_s0 + $0x630] sm:$0xff] }
  0xaf   :  { %765 = vmatmul.mubr.f32.gmra.mrb[68].mxu0 %v79_v38  ;;  %1015 = vmatmul.mubr.f32.gmra.mrb[68].mxu1 %v179_v39 }
  0xb0   :  { %1235 = vmatprep.mubr.msk.f32.mxu0 %vm229_vm0, %v82_v40  ;;  %1285 = vmatprep.mubr.msk.f32.mxu1 %vm229_vm0, %v182_v41 }
  0xb3   :  { %770 = vmatmul.mubr.f32.gmra.mrb[70].mxu0 %v81_v42  ;;  %1020 = vmatmul.mubr.f32.gmra.mrb[70].mxu1 %v181_v43 }
  0xb4   :  { %1236 = vmatprep.mubr.msk.f32.mxu0 %vm229_vm0, %v84_v44  ;;  %1286 = vmatprep.mubr.msk.f32.mxu1 %vm229_vm0, %v184_v45 }
  0xb7   :  { %775 = vmatmul.mubr.f32.gmra.mrb[72].mxu0 %v83_v46  ;;  %1025 = vmatmul.mubr.f32.gmra.mrb[72].mxu1 %v183_v47 }
  0xb8   :  { %1237 = vmatprep.mubr.msk.f32.mxu0 %vm229_vm0, %v86_v48  ;;  %1287 = vmatprep.mubr.msk.f32.mxu1 %vm229_vm0, %v186_v49 }
  0xbb   :  { %780 = vmatmul.mubr.f32.gmra.mrb[74].mxu0 %v85_v50  ;;  %1030 = vmatmul.mubr.f32.gmra.mrb[74].mxu1 %v185_v51 }
  0xbc   :  { %1238 = vmatprep.mubr.msk.f32.mxu0 %vm229_vm0, %v88_v52  ;;  %1288 = vmatprep.mubr.msk.f32.mxu1 %vm229_vm0, %v188_v53 }
  0xbf   :  { %785 = vmatmul.mubr.f32.gmra.mrb[76].mxu0 %v87_v54  ;;  %1035 = vmatmul.mubr.f32.gmra.mrb[76].mxu1 %v187_v55 }
  0xc0   :  { %1239 = vmatprep.mubr.msk.f32.mxu0 %vm229_vm0, %v90_v56  ;;  %1289 = vmatprep.mubr.msk.f32.mxu1 %vm229_vm0, %v190_v57 }
  0xc3   :  { %790 = vmatmul.mubr.f32.gmra.mrb[78].mxu0 %v89_v58  ;;  %1040 = vmatmul.mubr.f32.gmra.mrb[78].mxu1 %v189_v59 }
  0xc4   :  { %1240 = vmatprep.mubr.msk.f32.mxu0 %vm229_vm0, %v92_v60  ;;  %1290 = vmatprep.mubr.msk.f32.mxu1 %vm229_vm0, %v192_v61 }
  0xc7   :  { %795 = vmatmul.mubr.f32.gmra.mrb[80].mxu0 %v91_v62  ;;  %1045 = vmatmul.mubr.f32.gmra.mrb[80].mxu1 %v191_v63 }
  0xc8   :  { %1241 = vmatprep.mubr.msk.f32.mxu0 %vm229_vm0, %v94_v0  ;;  %1291 = vmatprep.mubr.msk.f32.mxu1 %vm229_vm0, %v194_v1 }
  0xcb   :  { %800 = vmatmul.mubr.f32.gmra.mrb[82].mxu0 %v93_v2  ;;  %1050 = vmatmul.mubr.f32.gmra.mrb[82].mxu1 %v193_v3 }
  0xcc   :  { %1242 = vmatprep.mubr.msk.f32.mxu0 %vm229_vm0, %v96_v4  ;;  %1292 = vmatprep.mubr.msk.f32.mxu1 %vm229_vm0, %v196_v5 }
  0xcf   :  { %805 = vmatmul.mubr.f32.gmra.mrb[84].mxu0 %v95_v6  ;;  %1055 = vmatmul.mubr.f32.gmra.mrb[84].mxu1 %v195_v7 }
  0xd0   :  { %1243 = vmatprep.mubr.msk.f32.mxu0 %vm229_vm0, %v98_v8  ;;  %1293 = vmatprep.mubr.msk.f32.mxu1 %vm229_vm0, %v198_v9 }
  0xd3   :  { %810 = vmatmul.mubr.f32.gmra.mrb[86].mxu0 %v97_v10  ;;  %1060 = vmatmul.mubr.f32.gmra.mrb[86].mxu1 %v197_v11 }
  0xd4   :  { %1244 = vmatprep.mubr.msk.f32.mxu0 %vm229_vm0, %v100_v12  ;;  %1294 = vmatprep.mubr.msk.f32.mxu1 %vm229_vm0, %v200_v13 }
  0xd7   :  { %815 = vmatmul.mubr.f32.gmra.mrb[88].mxu0 %v99_v14  ;;  %1065 = vmatmul.mubr.f32.gmra.mrb[88].mxu1 %v199_v15 }
  0xd8   :  { %1245 = vmatprep.mubr.msk.f32.mxu0 %vm229_vm0, %v102_v16  ;;  %1295 = vmatprep.mubr.msk.f32.mxu1 %vm229_vm0, %v202_v17 }
  0xdb   :  { %820 = vmatmul.mubr.f32.gmra.mrb[90].mxu0 %v101_v18  ;;  %1070 = vmatmul.mubr.f32.gmra.mrb[90].mxu1 %v201_v19 }
  0xdc   :  { %1246 = vmatprep.mubr.msk.f32.mxu0 %vm229_vm0, %v104_v20  ;;  %1296 = vmatprep.mubr.msk.f32.mxu1 %vm229_vm0, %v204_v21 }
  0xdf   :  { %825 = vmatmul.mubr.f32.gmra.mrb[92].mxu0 %v103_v22  ;;  %1075 = vmatmul.mubr.f32.gmra.mrb[92].mxu1 %v203_v23 }
  0xe0   :  { %1247 = vmatprep.mubr.msk.f32.mxu0 %vm229_vm0, %v106_v24  ;;  %1297 = vmatprep.mubr.msk.f32.mxu1 %vm229_vm0, %v206_v25 }
  0xe3   :  { %830 = vmatmul.mubr.f32.gmra.mrb[94].mxu0 %v105_v26  ;;  %1080 = vmatmul.mubr.f32.gmra.mrb[94].mxu1 %v205_v27 }
  0xe4   :  { %1248 = vmatprep.mubr.msk.f32.mxu0 %vm229_vm0, %v108_v28  ;;  %1298 = vmatprep.mubr.msk.f32.mxu1 %vm229_vm0, %v208_v29 }
  0xe7   :  { %835 = vmatmul.mubr.f32.gmra.mrb[96].mxu0 %v107_v30  ;;  %1085 = vmatmul.mubr.f32.gmra.mrb[96].mxu1 %v207_v31 }
  0xe8   :  { %1249 = vmatprep.mubr.msk.f32.mxu0 %vm229_vm0, %v110_v32  ;;  %1299 = vmatprep.mubr.msk.f32.mxu1 %vm229_vm0, %v210_v33 }
  0xeb   :  { %840 = vmatmul.mubr.f32.gmra.mrb[98].mxu0 %v109_v34  ;;  %1090 = vmatmul.mubr.f32.gmra.mrb[98].mxu1 %v209_v35 }
  0xfa   :  { %v596_v36 = vpop.f32.mrb[0].mxu0  ;;  %v846_v37 = vpop.f32.mrb[0].mxu1 }
  0xfb   :  { %1096 = vst.msk [vmem:[%s2536_s2] sm:$0xff] %vm1095_vm1, %v596_v36  ;;  %1146 = vst.msk [vmem:[%s2536_s2 + $0x190] sm:$0xff] %vm1095_vm1, %v846_v37  ;;  %v598_v38 = vpop.f32.mrb[1].mxu0  ;;  %v848_v39 = vpop.f32.mrb[1].mxu1 }
  0xfe   :  { %v601_v40 = vpop.f32.mrb[2].mxu0  ;;  %v851_v41 = vpop.f32.mrb[2].mxu1 }
  0xff   :  { %1097 = vst.msk [vmem:[%s2536_s2 + $0x8] sm:$0xff] %vm1095_vm1, %v601_v40  ;;  %1147 = vst.msk [vmem:[%s2536_s2 + $0x198] sm:$0xff] %vm1095_vm1, %v851_v41  ;;  %v603_v42 = vpop.f32.mrb[3].mxu0  ;;  %v853_v43 = vpop.f32.mrb[3].mxu1 }
 0x102   :  { %v606_v44 = vpop.f32.mrb[4].mxu0  ;;  %v856_v45 = vpop.f32.mrb[4].mxu1 }
 0x103   :  { %1098 = vst.msk [vmem:[%s2536_s2 + $0x10] sm:$0xff] %vm1095_vm1, %v606_v44  ;;  %1148 = vst.msk [vmem:[%s2536_s2 + $0x1a0] sm:$0xff] %vm1095_vm1, %v856_v45  ;;  %v608_v46 = vpop.f32.mrb[5].mxu0  ;;  %v858_v47 = vpop.f32.mrb[5].mxu1 }
 0x106   :  { %v611_v48 = vpop.f32.mrb[6].mxu0  ;;  %v861_v49 = vpop.f32.mrb[6].mxu1 }
 0x107   :  { %1099 = vst.msk [vmem:[%s2536_s2 + $0x18] sm:$0xff] %vm1095_vm1, %v611_v48  ;;  %1149 = vst.msk [vmem:[%s2536_s2 + $0x1a8] sm:$0xff] %vm1095_vm1, %v861_v49  ;;  %v613_v50 = vpop.f32.mrb[7].mxu0  ;;  %v863_v51 = vpop.f32.mrb[7].mxu1 }
 0x10a   :  { %v616_v52 = vpop.f32.mrb[8].mxu0  ;;  %v866_v53 = vpop.f32.mrb[8].mxu1 }
 0x10b   :  { %1100 = vst.msk [vmem:[%s2536_s2 + $0x20] sm:$0xff] %vm1095_vm1, %v616_v52  ;;  %1150 = vst.msk [vmem:[%s2536_s2 + $0x1b0] sm:$0xff] %vm1095_vm1, %v866_v53  ;;  %v618_v54 = vpop.f32.mrb[9].mxu0  ;;  %v868_v55 = vpop.f32.mrb[9].mxu1 }
 0x10e   :  { %v621_v56 = vpop.f32.mrb[10].mxu0  ;;  %v871_v57 = vpop.f32.mrb[10].mxu1 }
 0x10f   :  { %1101 = vst.msk [vmem:[%s2536_s2 + $0x28] sm:$0xff] %vm1095_vm1, %v621_v56  ;;  %1151 = vst.msk [vmem:[%s2536_s2 + $0x1b8] sm:$0xff] %vm1095_vm1, %v871_v57  ;;  %v623_v58 = vpop.f32.mrb[11].mxu0  ;;  %v873_v59 = vpop.f32.mrb[11].mxu1 }
 0x112   :  { %v626_v60 = vpop.f32.mrb[12].mxu0  ;;  %v876_v61 = vpop.f32.mrb[12].mxu1 }
 0x113   :  { %1102 = vst.msk [vmem:[%s2536_s2 + $0x30] sm:$0xff] %vm1095_vm1, %v626_v60  ;;  %1152 = vst.msk [vmem:[%s2536_s2 + $0x1c0] sm:$0xff] %vm1095_vm1, %v876_v61  ;;  %v628_v62 = vpop.f32.mrb[13].mxu0  ;;  %v878_v63 = vpop.f32.mrb[13].mxu1 }
 0x116   :  { %v631_v0 = vpop.f32.mrb[14].mxu0  ;;  %v881_v1 = vpop.f32.mrb[14].mxu1 }
 0x117   :  { %1103 = vst.msk [vmem:[%s2536_s2 + $0x38] sm:$0xff] %vm1095_vm1, %v631_v0  ;;  %1153 = vst.msk [vmem:[%s2536_s2 + $0x1c8] sm:$0xff] %vm1095_vm1, %v881_v1  ;;  %v633_v2 = vpop.f32.mrb[15].mxu0  ;;  %v883_v3 = vpop.f32.mrb[15].mxu1 }
 0x11a   :  { %v636_v4 = vpop.f32.mrb[16].mxu0  ;;  %v886_v5 = vpop.f32.mrb[16].mxu1 }
 0x11b   :  { %1104 = vst.msk [vmem:[%s2536_s2 + $0x40] sm:$0xff] %vm1095_vm1, %v636_v4  ;;  %1154 = vst.msk [vmem:[%s2536_s2 + $0x1d0] sm:$0xff] %vm1095_vm1, %v886_v5  ;;  %v638_v6 = vpop.f32.mrb[17].mxu0  ;;  %v888_v7 = vpop.f32.mrb[17].mxu1 }
 0x11e   :  { %v641_v8 = vpop.f32.mrb[18].mxu0  ;;  %v891_v9 = vpop.f32.mrb[18].mxu1 }
 0x11f   :  { %1105 = vst.msk [vmem:[%s2536_s2 + $0x48] sm:$0xff] %vm1095_vm1, %v641_v8  ;;  %1155 = vst.msk [vmem:[%s2536_s2 + $0x1d8] sm:$0xff] %vm1095_vm1, %v891_v9  ;;  %v643_v10 = vpop.f32.mrb[19].mxu0  ;;  %v893_v11 = vpop.f32.mrb[19].mxu1 }
 0x122   :  { %v646_v12 = vpop.f32.mrb[20].mxu0  ;;  %v896_v13 = vpop.f32.mrb[20].mxu1 }
 0x123   :  { %1106 = vst.msk [vmem:[%s2536_s2 + $0x50] sm:$0xff] %vm1095_vm1, %v646_v12  ;;  %1156 = vst.msk [vmem:[%s2536_s2 + $0x1e0] sm:$0xff] %vm1095_vm1, %v896_v13  ;;  %v648_v14 = vpop.f32.mrb[21].mxu0  ;;  %v898_v15 = vpop.f32.mrb[21].mxu1 }
 0x126   :  { %v651_v16 = vpop.f32.mrb[22].mxu0  ;;  %v901_v17 = vpop.f32.mrb[22].mxu1 }
 0x127   :  { %1107 = vst.msk [vmem:[%s2536_s2 + $0x58] sm:$0xff] %vm1095_vm1, %v651_v16  ;;  %1157 = vst.msk [vmem:[%s2536_s2 + $0x1e8] sm:$0xff] %vm1095_vm1, %v901_v17  ;;  %v653_v18 = vpop.f32.mrb[23].mxu0  ;;  %v903_v19 = vpop.f32.mrb[23].mxu1 }
 0x12a   :  { %v656_v20 = vpop.f32.mrb[24].mxu0  ;;  %v906_v21 = vpop.f32.mrb[24].mxu1 }
 0x12b   :  { %1108 = vst.msk [vmem:[%s2536_s2 + $0x60] sm:$0xff] %vm1095_vm1, %v656_v20  ;;  %1158 = vst.msk [vmem:[%s2536_s2 + $0x1f0] sm:$0xff] %vm1095_vm1, %v906_v21  ;;  %v658_v22 = vpop.f32.mrb[25].mxu0  ;;  %v908_v23 = vpop.f32.mrb[25].mxu1 }
 0x12e   :  { %v661_v24 = vpop.f32.mrb[26].mxu0  ;;  %v911_v25 = vpop.f32.mrb[26].mxu1 }
 0x12f   :  { %1109 = vst.msk [vmem:[%s2536_s2 + $0x68] sm:$0xff] %vm1095_vm1, %v661_v24  ;;  %1159 = vst.msk [vmem:[%s2536_s2 + $0x1f8] sm:$0xff] %vm1095_vm1, %v911_v25  ;;  %v663_v26 = vpop.f32.mrb[27].mxu0  ;;  %v913_v27 = vpop.f32.mrb[27].mxu1 }
 0x132   :  { %v666_v28 = vpop.f32.mrb[28].mxu0  ;;  %v916_v29 = vpop.f32.mrb[28].mxu1 }
 0x133   :  { %1110 = vst.msk [vmem:[%s2536_s2 + $0x70] sm:$0xff] %vm1095_vm1, %v666_v28  ;;  %1160 = vst.msk [vmem:[%s2536_s2 + $0x200] sm:$0xff] %vm1095_vm1, %v916_v29  ;;  %v668_v30 = vpop.f32.mrb[29].mxu0  ;;  %v918_v31 = vpop.f32.mrb[29].mxu1 }
 0x136   :  { %v671_v32 = vpop.f32.mrb[30].mxu0  ;;  %v921_v33 = vpop.f32.mrb[30].mxu1 }
 0x137   :  { %1111 = vst.msk [vmem:[%s2536_s2 + $0x78] sm:$0xff] %vm1095_vm1, %v671_v32  ;;  %1161 = vst.msk [vmem:[%s2536_s2 + $0x208] sm:$0xff] %vm1095_vm1, %v921_v33  ;;  %v673_v34 = vpop.f32.mrb[31].mxu0  ;;  %v923_v35 = vpop.f32.mrb[31].mxu1 }
 0x13a   :  { %v676_v36 = vpop.f32.mrb[32].mxu0  ;;  %v926_v37 = vpop.f32.mrb[32].mxu1 }
 0x13b   :  { %1112 = vst.msk [vmem:[%s2536_s2 + $0x80] sm:$0xff] %vm1095_vm1, %v676_v36  ;;  %1162 = vst.msk [vmem:[%s2536_s2 + $0x210] sm:$0xff] %vm1095_vm1, %v926_v37  ;;  %v678_v38 = vpop.f32.mrb[33].mxu0  ;;  %v928_v39 = vpop.f32.mrb[33].mxu1 }
 0x13e   :  { %v681_v40 = vpop.f32.mrb[34].mxu0  ;;  %v931_v41 = vpop.f32.mrb[34].mxu1 }
 0x13f   :  { %1113 = vst.msk [vmem:[%s2536_s2 + $0x88] sm:$0xff] %vm1095_vm1, %v681_v40  ;;  %1163 = vst.msk [vmem:[%s2536_s2 + $0x218] sm:$0xff] %vm1095_vm1, %v931_v41  ;;  %v683_v42 = vpop.f32.mrb[35].mxu0  ;;  %v933_v43 = vpop.f32.mrb[35].mxu1 }
 0x142   :  { %v686_v44 = vpop.f32.mrb[36].mxu0  ;;  %v936_v45 = vpop.f32.mrb[36].mxu1 }
 0x143   :  { %1114 = vst.msk [vmem:[%s2536_s2 + $0x90] sm:$0xff] %vm1095_vm1, %v686_v44  ;;  %1164 = vst.msk [vmem:[%s2536_s2 + $0x220] sm:$0xff] %vm1095_vm1, %v936_v45  ;;  %v688_v46 = vpop.f32.mrb[37].mxu0  ;;  %v938_v47 = vpop.f32.mrb[37].mxu1 }
 0x146   :  { %v691_v48 = vpop.f32.mrb[38].mxu0  ;;  %v941_v49 = vpop.f32.mrb[38].mxu1 }
 0x147   :  { %1115 = vst.msk [vmem:[%s2536_s2 + $0x98] sm:$0xff] %vm1095_vm1, %v691_v48  ;;  %1165 = vst.msk [vmem:[%s2536_s2 + $0x228] sm:$0xff] %vm1095_vm1, %v941_v49  ;;  %v693_v50 = vpop.f32.mrb[39].mxu0  ;;  %v943_v51 = vpop.f32.mrb[39].mxu1 }
 0x14a   :  { %v696_v52 = vpop.f32.mrb[40].mxu0  ;;  %v946_v53 = vpop.f32.mrb[40].mxu1 }
 0x14b   :  { %1116 = vst.msk [vmem:[%s2536_s2 + $0xa0] sm:$0xff] %vm1095_vm1, %v696_v52  ;;  %1166 = vst.msk [vmem:[%s2536_s2 + $0x230] sm:$0xff] %vm1095_vm1, %v946_v53  ;;  %v698_v54 = vpop.f32.mrb[41].mxu0  ;;  %v948_v55 = vpop.f32.mrb[41].mxu1 }
 0x14e   :  { %v701_v56 = vpop.f32.mrb[42].mxu0  ;;  %v951_v57 = vpop.f32.mrb[42].mxu1 }
 0x14f   :  { %1117 = vst.msk [vmem:[%s2536_s2 + $0xa8] sm:$0xff] %vm1095_vm1, %v701_v56  ;;  %1167 = vst.msk [vmem:[%s2536_s2 + $0x238] sm:$0xff] %vm1095_vm1, %v951_v57  ;;  %v703_v58 = vpop.f32.mrb[43].mxu0  ;;  %v953_v59 = vpop.f32.mrb[43].mxu1 }
 0x152   :  { %v706_v60 = vpop.f32.mrb[44].mxu0  ;;  %v956_v61 = vpop.f32.mrb[44].mxu1 }
 0x153   :  { %1118 = vst.msk [vmem:[%s2536_s2 + $0xb0] sm:$0xff] %vm1095_vm1, %v706_v60  ;;  %1168 = vst.msk [vmem:[%s2536_s2 + $0x240] sm:$0xff] %vm1095_vm1, %v956_v61  ;;  %v708_v62 = vpop.f32.mrb[45].mxu0  ;;  %v958_v63 = vpop.f32.mrb[45].mxu1 }
 0x156   :  { %v711_v0 = vpop.f32.mrb[46].mxu0  ;;  %v961_v1 = vpop.f32.mrb[46].mxu1 }
 0x157   :  { %1119 = vst.msk [vmem:[%s2536_s2 + $0xb8] sm:$0xff] %vm1095_vm1, %v711_v0  ;;  %1169 = vst.msk [vmem:[%s2536_s2 + $0x248] sm:$0xff] %vm1095_vm1, %v961_v1  ;;  %v713_v2 = vpop.f32.mrb[47].mxu0  ;;  %v963_v3 = vpop.f32.mrb[47].mxu1 }
 0x15a   :  { %v716_v4 = vpop.f32.mrb[48].mxu0  ;;  %v966_v5 = vpop.f32.mrb[48].mxu1 }
 0x15b   :  { %1120 = vst.msk [vmem:[%s2536_s2 + $0xc0] sm:$0xff] %vm1095_vm1, %v716_v4  ;;  %1170 = vst.msk [vmem:[%s2536_s2 + $0x250] sm:$0xff] %vm1095_vm1, %v966_v5  ;;  %v718_v6 = vpop.f32.mrb[49].mxu0  ;;  %v968_v7 = vpop.f32.mrb[49].mxu1 }
 0x15e   :  { %v721_v8 = vpop.f32.mrb[50].mxu0  ;;  %v971_v9 = vpop.f32.mrb[50].mxu1 }
 0x15f   :  { %1121 = vst.msk [vmem:[%s2536_s2 + $0xc8] sm:$0xff] %vm1095_vm1, %v721_v8  ;;  %1171 = vst.msk [vmem:[%s2536_s2 + $0x258] sm:$0xff] %vm1095_vm1, %v971_v9  ;;  %v723_v10 = vpop.f32.mrb[51].mxu0  ;;  %v973_v11 = vpop.f32.mrb[51].mxu1 }
 0x162   :  { %v726_v12 = vpop.f32.mrb[52].mxu0  ;;  %v976_v13 = vpop.f32.mrb[52].mxu1 }
 0x163   :  { %1122 = vst.msk [vmem:[%s2536_s2 + $0xd0] sm:$0xff] %vm1095_vm1, %v726_v12  ;;  %1172 = vst.msk [vmem:[%s2536_s2 + $0x260] sm:$0xff] %vm1095_vm1, %v976_v13  ;;  %v728_v14 = vpop.f32.mrb[53].mxu0  ;;  %v978_v15 = vpop.f32.mrb[53].mxu1 }
 0x166   :  { %v731_v16 = vpop.f32.mrb[54].mxu0  ;;  %v981_v17 = vpop.f32.mrb[54].mxu1 }
 0x167   :  { %1123 = vst.msk [vmem:[%s2536_s2 + $0xd8] sm:$0xff] %vm1095_vm1, %v731_v16  ;;  %1173 = vst.msk [vmem:[%s2536_s2 + $0x268] sm:$0xff] %vm1095_vm1, %v981_v17  ;;  %v733_v18 = vpop.f32.mrb[55].mxu0  ;;  %v983_v19 = vpop.f32.mrb[55].mxu1 }
 0x16a   :  { %v736_v20 = vpop.f32.mrb[56].mxu0  ;;  %v986_v21 = vpop.f32.mrb[56].mxu1 }
 0x16b   :  { %1124 = vst.msk [vmem:[%s2536_s2 + $0xe0] sm:$0xff] %vm1095_vm1, %v736_v20  ;;  %1174 = vst.msk [vmem:[%s2536_s2 + $0x270] sm:$0xff] %vm1095_vm1, %v986_v21  ;;  %v738_v22 = vpop.f32.mrb[57].mxu0  ;;  %v988_v23 = vpop.f32.mrb[57].mxu1 }
 0x16e   :  { %v741_v24 = vpop.f32.mrb[58].mxu0  ;;  %v991_v25 = vpop.f32.mrb[58].mxu1 }
 0x16f   :  { %1125 = vst.msk [vmem:[%s2536_s2 + $0xe8] sm:$0xff] %vm1095_vm1, %v741_v24  ;;  %1175 = vst.msk [vmem:[%s2536_s2 + $0x278] sm:$0xff] %vm1095_vm1, %v991_v25  ;;  %v743_v26 = vpop.f32.mrb[59].mxu0  ;;  %v993_v27 = vpop.f32.mrb[59].mxu1 }
 0x172   :  { %v746_v28 = vpop.f32.mrb[60].mxu0  ;;  %v996_v29 = vpop.f32.mrb[60].mxu1 }
 0x173   :  { %1126 = vst.msk [vmem:[%s2536_s2 + $0xf0] sm:$0xff] %vm1095_vm1, %v746_v28  ;;  %1176 = vst.msk [vmem:[%s2536_s2 + $0x280] sm:$0xff] %vm1095_vm1, %v996_v29  ;;  %v748_v30 = vpop.f32.mrb[61].mxu0  ;;  %v998_v31 = vpop.f32.mrb[61].mxu1 }
 0x176   :  { %v751_v32 = vpop.f32.mrb[62].mxu0  ;;  %v1001_v33 = vpop.f32.mrb[62].mxu1 }
 0x177   :  { %1127 = vst.msk [vmem:[%s2536_s2 + $0xf8] sm:$0xff] %vm1095_vm1, %v751_v32  ;;  %1177 = vst.msk [vmem:[%s2536_s2 + $0x288] sm:$0xff] %vm1095_vm1, %v1001_v33  ;;  %v753_v34 = vpop.f32.mrb[63].mxu0  ;;  %v1003_v35 = vpop.f32.mrb[63].mxu1 }
 0x17a   :  { %v756_v36 = vpop.f32.mrb[64].mxu0  ;;  %v1006_v37 = vpop.f32.mrb[64].mxu1 }
 0x17b   :  { %1128 = vst.msk [vmem:[%s2536_s2 + $0x100] sm:$0xff] %vm1095_vm1, %v756_v36  ;;  %1178 = vst.msk [vmem:[%s2536_s2 + $0x290] sm:$0xff] %vm1095_vm1, %v1006_v37  ;;  %v758_v38 = vpop.f32.mrb[65].mxu0  ;;  %v1008_v39 = vpop.f32.mrb[65].mxu1 }
 0x17e   :  { %v761_v40 = vpop.f32.mrb[66].mxu0  ;;  %v1011_v41 = vpop.f32.mrb[66].mxu1 }
 0x17f   :  { %1129 = vst.msk [vmem:[%s2536_s2 + $0x108] sm:$0xff] %vm1095_vm1, %v761_v40  ;;  %1179 = vst.msk [vmem:[%s2536_s2 + $0x298] sm:$0xff] %vm1095_vm1, %v1011_v41  ;;  %v763_v42 = vpop.f32.mrb[67].mxu0  ;;  %v1013_v43 = vpop.f32.mrb[67].mxu1 }
 0x182   :  { %v766_v44 = vpop.f32.mrb[68].mxu0  ;;  %v1016_v45 = vpop.f32.mrb[68].mxu1 }
 0x183   :  { %1130 = vst.msk [vmem:[%s2536_s2 + $0x110] sm:$0xff] %vm1095_vm1, %v766_v44  ;;  %1180 = vst.msk [vmem:[%s2536_s2 + $0x2a0] sm:$0xff] %vm1095_vm1, %v1016_v45  ;;  %v768_v46 = vpop.f32.mrb[69].mxu0  ;;  %v1018_v47 = vpop.f32.mrb[69].mxu1 }
 0x186   :  { %v771_v48 = vpop.f32.mrb[70].mxu0  ;;  %v1021_v49 = vpop.f32.mrb[70].mxu1 }
 0x187   :  { %1131 = vst.msk [vmem:[%s2536_s2 + $0x118] sm:$0xff] %vm1095_vm1, %v771_v48  ;;  %1181 = vst.msk [vmem:[%s2536_s2 + $0x2a8] sm:$0xff] %vm1095_vm1, %v1021_v49  ;;  %v773_v50 = vpop.f32.mrb[71].mxu0  ;;  %v1023_v51 = vpop.f32.mrb[71].mxu1 }
 0x18a   :  { %v776_v52 = vpop.f32.mrb[72].mxu0  ;;  %v1026_v53 = vpop.f32.mrb[72].mxu1 }
 0x18b   :  { %1132 = vst.msk [vmem:[%s2536_s2 + $0x120] sm:$0xff] %vm1095_vm1, %v776_v52  ;;  %1182 = vst.msk [vmem:[%s2536_s2 + $0x2b0] sm:$0xff] %vm1095_vm1, %v1026_v53  ;;  %v778_v54 = vpop.f32.mrb[73].mxu0  ;;  %v1028_v55 = vpop.f32.mrb[73].mxu1 }
 0x18e   :  { %v781_v56 = vpop.f32.mrb[74].mxu0  ;;  %v1031_v57 = vpop.f32.mrb[74].mxu1 }
 0x18f   :  { %1133 = vst.msk [vmem:[%s2536_s2 + $0x128] sm:$0xff] %vm1095_vm1, %v781_v56  ;;  %1183 = vst.msk [vmem:[%s2536_s2 + $0x2b8] sm:$0xff] %vm1095_vm1, %v1031_v57  ;;  %v783_v58 = vpop.f32.mrb[75].mxu0  ;;  %v1033_v59 = vpop.f32.mrb[75].mxu1 }
 0x192   :  { %v786_v60 = vpop.f32.mrb[76].mxu0  ;;  %v1036_v61 = vpop.f32.mrb[76].mxu1 }
 0x193   :  { %1134 = vst.msk [vmem:[%s2536_s2 + $0x130] sm:$0xff] %vm1095_vm1, %v786_v60  ;;  %1184 = vst.msk [vmem:[%s2536_s2 + $0x2c0] sm:$0xff] %vm1095_vm1, %v1036_v61  ;;  %v788_v62 = vpop.f32.mrb[77].mxu0  ;;  %v1038_v63 = vpop.f32.mrb[77].mxu1 }
 0x196   :  { %v791_v0 = vpop.f32.mrb[78].mxu0  ;;  %v1041_v1 = vpop.f32.mrb[78].mxu1 }
 0x197   :  { %1135 = vst.msk [vmem:[%s2536_s2 + $0x138] sm:$0xff] %vm1095_vm1, %v791_v0  ;;  %1185 = vst.msk [vmem:[%s2536_s2 + $0x2c8] sm:$0xff] %vm1095_vm1, %v1041_v1  ;;  %v793_v2 = vpop.f32.mrb[79].mxu0  ;;  %v1043_v3 = vpop.f32.mrb[79].mxu1 }
 0x19a   :  { %v796_v4 = vpop.f32.mrb[80].mxu0  ;;  %v1046_v5 = vpop.f32.mrb[80].mxu1 }
 0x19b   :  { %1136 = vst.msk [vmem:[%s2536_s2 + $0x140] sm:$0xff] %vm1095_vm1, %v796_v4  ;;  %1186 = vst.msk [vmem:[%s2536_s2 + $0x2d0] sm:$0xff] %vm1095_vm1, %v1046_v5  ;;  %v798_v6 = vpop.f32.mrb[81].mxu0  ;;  %v1048_v7 = vpop.f32.mrb[81].mxu1 }
 0x19e   :  { %v801_v8 = vpop.f32.mrb[82].mxu0  ;;  %v1051_v9 = vpop.f32.mrb[82].mxu1 }
 0x19f   :  { %1137 = vst.msk [vmem:[%s2536_s2 + $0x148] sm:$0xff] %vm1095_vm1, %v801_v8  ;;  %1187 = vst.msk [vmem:[%s2536_s2 + $0x2d8] sm:$0xff] %vm1095_vm1, %v1051_v9  ;;  %v803_v10 = vpop.f32.mrb[83].mxu0  ;;  %v1053_v11 = vpop.f32.mrb[83].mxu1 }
 0x1a2   :  { %v806_v12 = vpop.f32.mrb[84].mxu0  ;;  %v1056_v13 = vpop.f32.mrb[84].mxu1 }
 0x1a3   :  { %1138 = vst.msk [vmem:[%s2536_s2 + $0x150] sm:$0xff] %vm1095_vm1, %v806_v12  ;;  %1188 = vst.msk [vmem:[%s2536_s2 + $0x2e0] sm:$0xff] %vm1095_vm1, %v1056_v13  ;;  %v808_v14 = vpop.f32.mrb[85].mxu0  ;;  %v1058_v15 = vpop.f32.mrb[85].mxu1 }
 0x1a6   :  { %v811_v16 = vpop.f32.mrb[86].mxu0  ;;  %v1061_v17 = vpop.f32.mrb[86].mxu1 }
 0x1a7   :  { %1139 = vst.msk [vmem:[%s2536_s2 + $0x158] sm:$0xff] %vm1095_vm1, %v811_v16  ;;  %1189 = vst.msk [vmem:[%s2536_s2 + $0x2e8] sm:$0xff] %vm1095_vm1, %v1061_v17  ;;  %v813_v18 = vpop.f32.mrb[87].mxu0  ;;  %v1063_v19 = vpop.f32.mrb[87].mxu1 }
 0x1aa   :  { %v816_v20 = vpop.f32.mrb[88].mxu0  ;;  %v1066_v21 = vpop.f32.mrb[88].mxu1 }
 0x1ab   :  { %1140 = vst.msk [vmem:[%s2536_s2 + $0x160] sm:$0xff] %vm1095_vm1, %v816_v20  ;;  %1190 = vst.msk [vmem:[%s2536_s2 + $0x2f0] sm:$0xff] %vm1095_vm1, %v1066_v21  ;;  %v818_v22 = vpop.f32.mrb[89].mxu0  ;;  %v1068_v23 = vpop.f32.mrb[89].mxu1 }
 0x1ae   :  { %v821_v24 = vpop.f32.mrb[90].mxu0  ;;  %v1071_v25 = vpop.f32.mrb[90].mxu1 }
 0x1af   :  { %1141 = vst.msk [vmem:[%s2536_s2 + $0x168] sm:$0xff] %vm1095_vm1, %v821_v24  ;;  %1191 = vst.msk [vmem:[%s2536_s2 + $0x2f8] sm:$0xff] %vm1095_vm1, %v1071_v25  ;;  %v823_v26 = vpop.f32.mrb[91].mxu0  ;;  %v1073_v27 = vpop.f32.mrb[91].mxu1 }
 0x1b2   :  { %v826_v28 = vpop.f32.mrb[92].mxu0  ;;  %v1076_v29 = vpop.f32.mrb[92].mxu1 }
 0x1b3   :  { %1142 = vst.msk [vmem:[%s2536_s2 + $0x170] sm:$0xff] %vm1095_vm1, %v826_v28  ;;  %1192 = vst.msk [vmem:[%s2536_s2 + $0x300] sm:$0xff] %vm1095_vm1, %v1076_v29  ;;  %v828_v30 = vpop.f32.mrb[93].mxu0  ;;  %v1078_v31 = vpop.f32.mrb[93].mxu1 }
 0x1b6   :  { %v831_v32 = vpop.f32.mrb[94].mxu0  ;;  %v1081_v33 = vpop.f32.mrb[94].mxu1 }
 0x1b7   :  { %1143 = vst.msk [vmem:[%s2536_s2 + $0x178] sm:$0xff] %vm1095_vm1, %v831_v32  ;;  %1193 = vst.msk [vmem:[%s2536_s2 + $0x308] sm:$0xff] %vm1095_vm1, %v1081_v33  ;;  %v833_v34 = vpop.f32.mrb[95].mxu0  ;;  %v1083_v35 = vpop.f32.mrb[95].mxu1 }
 0x1ba   :  { %v836_v36 = vpop.f32.mrb[96].mxu0  ;;  %v1086_v37 = vpop.f32.mrb[96].mxu1 }
 0x1bb   :  { %1144 = vst.msk [vmem:[%s2536_s2 + $0x180] sm:$0xff] %vm1095_vm1, %v836_v36  ;;  %1194 = vst.msk [vmem:[%s2536_s2 + $0x310] sm:$0xff] %vm1095_vm1, %v1086_v37  ;;  %v838_v38 = vpop.f32.mrb[97].mxu0  ;;  %v1088_v39 = vpop.f32.mrb[97].mxu1 }
 0x1be   :  { %v841_v40 = vpop.f32.mrb[98].mxu0  ;;  %v1091_v41 = vpop.f32.mrb[98].mxu1 }
 0x1bf   :  { %1145 = vst.msk [vmem:[%s2536_s2 + $0x188] sm:$0xff] %vm1095_vm1, %v841_v40  ;;  %1195 = vst.msk [vmem:[%s2536_s2 + $0x318] sm:$0xff] %vm1095_vm1, %v1091_v41  ;;  %v843_v42 = vpop.f32.mrb[99].mxu0  ;;  %v1093_v43 = vpop.f32.mrb[99].mxu1 }

// kernel: model_forward.11
= control target key start
LH: loop header
LB: loop body
LE: loop exit
PB: predicated region body
PF: predicated region fallthrough
CT: control target
= control target key end

     0   :  { %v299_v2 = vmov 0.0|0.0   ;;  %vm73_vm0 = vcmask 261120   ;;  %vm220_vm1 = vcmask 523264   ;;  %s522_s1 = inlined_call_operand.vmem [shape: f32[160,320], index: 1, kind: input, shape index: {}]   ;;  %s523_s0 = inlined_call_operand.vmem [shape: f32[8,160], index: 0, kind: input, shape index: {}]   ;;  %s524_s2 = inlined_call_operand.vmem [shape: f32[8,320], index: 2, kind: output, shape index: {}]  }
   0x1   :  { %v14_v0 = vld [vmem:[%s522_s1 + $0x8] sm:$0xff]  ;;  %v17_v1 = vld [vmem:[%s522_s1 + $0x20] sm:$0xff]  ;;  %268 = vmatprep.subr.bf16.mxu1 %v299_v2  ;;  %v16_v5 = vld [vmem:[%s522_s1 + $0x18] sm:$0xff] }
   0x2   :  { %v13_v3 = vld [vmem:[%s522_s1] sm:$0xff]  ;;  %v228_v4 = vpack.c.bf16 %v17_v1, %v14_v0  ;;  %v15_v6 = vld [vmem:[%s522_s1 + $0x10] sm:$0xff]  ;;  %v18_v7 = vld [vmem:[%s522_s1 + $0x28] sm:$0xff] }
   0x3   :  { %v230_v8 = vpack.c.bf16 %v16_v5, %v13_v3  ;;  %v269_v9 = vpack.c.bf16 %v18_v7, %v15_v6  ;;  %v20_v10 = vld [vmem:[%s522_s1 + $0x38] sm:$0xff]  ;;  %v23_v11 = vld [vmem:[%s522_s1 + $0x50] sm:$0xff]  ;;  %v22_v14 = vld [vmem:[%s522_s1 + $0x48] sm:$0xff] }
   0x4   :  { %v19_v12 = vld [vmem:[%s522_s1 + $0x30] sm:$0xff]  ;;  %229 = vmatprep.subr.bf16.mxu0 %v228_v4  ;;  %v232_v13 = vpack.c.bf16 %v23_v11, %v20_v10  ;;  %v21_v15 = vld [vmem:[%s522_s1 + $0x40] sm:$0xff]  ;;  %v24_v16 = vld [vmem:[%s522_s1 + $0x58] sm:$0xff] }
   0x5   :  { %231 = vmatpush1.bf16.msra.mxu0 %v230_v8  ;;  %270 = vmatpush1.bf16.msra.mxu1 %v269_v9  ;;  %v234_v17 = vpack.c.bf16 %v22_v14, %v19_v12  ;;  %v272_v18 = vpack.c.bf16 %v24_v16, %v21_v15  ;;  %v26_v19 = vld [vmem:[%s522_s1 + $0x68] sm:$0xff]  ;;  %v29_v20 = vld [vmem:[%s522_s1 + $0x80] sm:$0xff]  ;;  %v28_v23 = vld [vmem:[%s522_s1 + $0x78] sm:$0xff] }
   0x6   :  { %v25_v21 = vld [vmem:[%s522_s1 + $0x60] sm:$0xff]  ;;  %233 = vmatprep.subr.bf16.mxu0 %v232_v13  ;;  %271 = vmatprep.subr.bf16.mxu1 %v299_v2  ;;  %v236_v22 = vpack.c.bf16 %v29_v20, %v26_v19  ;;  %v27_v24 = vld [vmem:[%s522_s1 + $0x70] sm:$0xff]  ;;  %v30_v25 = vld [vmem:[%s522_s1 + $0x88] sm:$0xff] }
   0x7   :  { %v32_v26 = vld [vmem:[%s522_s1 + $0x98] sm:$0xff]  ;;  %v35_v27 = vld [vmem:[%s522_s1 + $0xb0] sm:$0xff]  ;;  %v238_v28 = vpack.c.bf16 %v28_v23, %v25_v21  ;;  %v275_v29 = vpack.c.bf16 %v30_v25, %v27_v24  ;;  %v34_v32 = vld [vmem:[%s522_s1 + $0xa8] sm:$0xff] }
   0x8   :  { %v31_v30 = vld [vmem:[%s522_s1 + $0x90] sm:$0xff]  ;;  %v240_v31 = vpack.c.bf16 %v35_v27, %v32_v26  ;;  %v33_v33 = vld [vmem:[%s522_s1 + $0xa0] sm:$0xff]  ;;  %v36_v34 = vld [vmem:[%s522_s1 + $0xb8] sm:$0xff] }
   0x9   :  { %235 = vmatpush1.bf16.msra.mxu0 %v234_v17  ;;  %273 = vmatpush1.bf16.msra.mxu1 %v272_v18  ;;  %v38_v35 = vld [vmem:[%s522_s1 + $0xc8] sm:$0xff]  ;;  %v41_v36 = vld [vmem:[%s522_s1 + $0xe0] sm:$0xff]  ;;  %v242_v37 = vpack.c.bf16 %v34_v32, %v31_v30  ;;  %v278_v38 = vpack.c.bf16 %v36_v34, %v33_v33  ;;  %v40_v41 = vld [vmem:[%s522_s1 + $0xd8] sm:$0xff] }
   0xa   :  { %237 = vmatprep.subr.bf16.mxu0 %v236_v22  ;;  %274 = vmatprep.subr.bf16.mxu1 %v299_v2  ;;  %v37_v39 = vld [vmem:[%s522_s1 + $0xc0] sm:$0xff]  ;;  %v244_v40 = vpack.c.bf16 %v41_v36, %v38_v35  ;;  %v39_v42 = vld [vmem:[%s522_s1 + $0xd0] sm:$0xff]  ;;  %v42_v43 = vld [vmem:[%s522_s1 + $0xe8] sm:$0xff] }
   0xb   :  { %v44_v44 = vld [vmem:[%s522_s1 + $0xf8] sm:$0xff]  ;;  %v47_v45 = vld [vmem:[%s522_s1 + $0x110] sm:$0xff]  ;;  %v246_v46 = vpack.c.bf16 %v40_v41, %v37_v39  ;;  %v281_v47 = vpack.c.bf16 %v42_v43, %v39_v42  ;;  %v46_v50 = vld [vmem:[%s522_s1 + $0x108] sm:$0xff] }
   0xc   :  { %v43_v48 = vld [vmem:[%s522_s1 + $0xf0] sm:$0xff]  ;;  %v248_v49 = vpack.c.bf16 %v47_v45, %v44_v44  ;;  %v45_v51 = vld [vmem:[%s522_s1 + $0x100] sm:$0xff]  ;;  %v48_v52 = vld [vmem:[%s522_s1 + $0x118] sm:$0xff] }
   0xd   :  { %239 = vmatpush1.bf16.msra.mxu0 %v238_v28  ;;  %276 = vmatpush1.bf16.msra.mxu1 %v275_v29  ;;  %v50_v53 = vld [vmem:[%s522_s1 + $0x128] sm:$0xff]  ;;  %v53_v54 = vld [vmem:[%s522_s1 + $0x140] sm:$0xff]  ;;  %v250_v55 = vpack.c.bf16 %v46_v50, %v43_v48  ;;  %v284_v56 = vpack.c.bf16 %v48_v52, %v45_v51  ;;  %v52_v60 = vld [vmem:[%s522_s1 + $0x138] sm:$0xff] }
   0xe   :  { %241 = vmatprep.subr.bf16.mxu0 %v240_v31  ;;  %277 = vmatprep.subr.bf16.mxu1 %v299_v2  ;;  %v49_v57 = vld [vmem:[%s522_s1 + $0x120] sm:$0xff]  ;;  %v12_v58 = vld [vmem:[%s523_s0 + $0x8] sm:$0xff]  ;;  %v252_v59 = vpack.c.bf16 %v53_v54, %v50_v53  ;;  %v51_v61 = vld [vmem:[%s522_s1 + $0x130] sm:$0xff] }
   0xf   :  { %v54_v62 = vld [vmem:[%s522_s1 + $0x148] sm:$0xff]  ;;  %v56_v63 = vld [vmem:[%s522_s1 + $0x158] sm:$0xff]  ;;  %v59_v0 = vld [vmem:[%s522_s1 + $0x170] sm:$0xff]  ;;  %226 = vmatprep.mubr.msk.f32.mxu0 %vm73_vm0, %v12_v58  ;;  %227 = vmatprep.mubr.msk.f32.mxu1 %vm73_vm0, %v12_v58  ;;  %v254_v1 = vpack.c.bf16 %v52_v60, %v49_v57 }
  0x10   :  { %v287_v3 = vpack.c.bf16 %v54_v62, %v51_v61  ;;  %v55_v4 = vld [vmem:[%s522_s1 + $0x150] sm:$0xff]  ;;  %v256_v5 = vpack.c.bf16 %v59_v0, %v56_v63  ;;  %v58_v6 = vld [vmem:[%s522_s1 + $0x168] sm:$0xff]  ;;  %v57_v7 = vld [vmem:[%s522_s1 + $0x160] sm:$0xff] }
  0x11   :  { %243 = vmatpush1.bf16.msra.mxu0 %v242_v37  ;;  %279 = vmatpush1.bf16.msra.mxu1 %v278_v38  ;;  %v60_v8 = vld [vmem:[%s522_s1 + $0x178] sm:$0xff]  ;;  %v62_v9 = vld [vmem:[%s522_s1 + $0x188] sm:$0xff]  ;;  %v65_v10 = vld [vmem:[%s522_s1 + $0x1a0] sm:$0xff]  ;;  %v258_v11 = vpack.c.bf16 %v58_v6, %v55_v4 }
  0x12   :  { %245 = vmatprep.subr.bf16.mxu0 %v244_v40  ;;  %280 = vmatprep.subr.bf16.mxu1 %v299_v2  ;;  %v290_v12 = vpack.c.bf16 %v60_v8, %v57_v7  ;;  %v61_v13 = vld [vmem:[%s522_s1 + $0x180] sm:$0xff]  ;;  %v260_v14 = vpack.c.bf16 %v65_v10, %v62_v9  ;;  %v64_v15 = vld [vmem:[%s522_s1 + $0x198] sm:$0xff]  ;;  %v63_v16 = vld [vmem:[%s522_s1 + $0x190] sm:$0xff] }
  0x13   :  { %v66_v17 = vld [vmem:[%s522_s1 + $0x1a8] sm:$0xff]  ;;  %v68_v18 = vld [vmem:[%s522_s1 + $0x1b8] sm:$0xff]  ;;  %v71_v19 = vld [vmem:[%s522_s1 + $0x1d0] sm:$0xff]  ;;  %v262_v20 = vpack.c.bf16 %v64_v15, %v61_v13 }
  0x14   :  { %v293_v21 = vpack.c.bf16 %v66_v17, %v63_v16  ;;  %v67_v22 = vld [vmem:[%s522_s1 + $0x1b0] sm:$0xff]  ;;  %v264_v23 = vpack.c.bf16 %v71_v19, %v68_v18  ;;  %v70_v24 = vld [vmem:[%s522_s1 + $0x1c8] sm:$0xff]  ;;  %v69_v25 = vld [vmem:[%s522_s1 + $0x1c0] sm:$0xff] }
  0x15   :  { %247 = vmatpush1.bf16.msra.mxu0 %v246_v46  ;;  %282 = vmatpush1.bf16.msra.mxu1 %v281_v47  ;;  %v72_v26 = vld [vmem:[%s522_s1 + $0x1d8] sm:$0xff]  ;;  %v266_v27 = vpack.c.bf16 %v70_v24, %v67_v22  ;;  %v11_v29 = vld [vmem:[%s523_s0] sm:$0xff] }
  0x16   :  { %249 = vmatprep.subr.bf16.mxu0 %v248_v49  ;;  %283 = vmatprep.subr.bf16.mxu1 %v299_v2  ;;  %v296_v28 = vpack.c.bf16 %v72_v26, %v69_v25 }
  0x19   :  { %251 = vmatpush1.bf16.msra.mxu0 %v250_v55  ;;  %285 = vmatpush1.bf16.msra.mxu1 %v284_v56 }
  0x1a   :  { %253 = vmatprep.subr.bf16.mxu0 %v252_v59  ;;  %286 = vmatprep.subr.bf16.mxu1 %v299_v2 }
  0x1d   :  { %255 = vmatpush1.bf16.msra.mxu0 %v254_v1  ;;  %288 = vmatpush1.bf16.msra.mxu1 %v287_v3 }
  0x1e   :  { %257 = vmatprep.subr.bf16.mxu0 %v256_v5  ;;  %289 = vmatprep.subr.bf16.mxu1 %v299_v2 }
  0x21   :  { %259 = vmatpush1.bf16.msra.mxu0 %v258_v11  ;;  %291 = vmatpush1.bf16.msra.mxu1 %v290_v12 }
  0x22   :  { %261 = vmatprep.subr.bf16.mxu0 %v260_v14  ;;  %292 = vmatprep.subr.bf16.mxu1 %v299_v2 }
  0x25   :  { %263 = vmatpush1.bf16.msra.mxu0 %v262_v20  ;;  %294 = vmatpush1.bf16.msra.mxu1 %v293_v21 }
  0x26   :  { %265 = vmatprep.subr.bf16.mxu0 %v264_v23  ;;  %295 = vmatprep.subr.bf16.mxu1 %v299_v2 }
  0x29   :  { %267 = vmatpush1.bf16.msra.mxu0 %v266_v27  ;;  %297 = vmatpush1.bf16.msra.mxu1 %v296_v28 }
  0x2c   :  { %142 = vmatmul.mubr.f32.vlgmr.msra.gmra.mrb[0].mxu0 %v11_v29  ;;  %213 = vmatmul.mubr.f32.vlgmr.msra.gmra.mrb[0].mxu1 %v11_v29 }
  0xff   :  { %v143_v30 = vpop.f32.mrb[0].mxu0  ;;  %v214_v31 = vpop.f32.mrb[0].mxu1 }
 0x100   :  { %218 = vst [vmem:[%s524_s2] sm:$0xff] %v143_v30  ;;  %221 = vst.msk [vmem:[%s524_s2 + $0x10] sm:$0xff] %vm220_vm1, %v214_v31  ;;  %v145_v2 = vpop.f32.mrb[1].mxu0  ;;  %v216_v32 = vpop.f32.mrb[1].mxu1 }
 0x101   :  { %219 = vst [vmem:[%s524_s2 + $0x8] sm:$0xff] %v145_v2 }

// kernel: model_forward.12
= control target key start
LH: loop header
LB: loop body
LE: loop exit
PB: predicated region body
PF: predicated region fallthrough
CT: control target
= control target key end

     0   :  { %vm90_vm0 = vcmask 162816   ;;  %v370_v2 = vmov 0   ;;  %vm121_vm1 = vcmask 1043456   ;;  %vm267_vm2 = vcmask 523264   ;;  %s532_s1 = inlined_call_operand.vmem [shape: f32[20,64], index: 1, kind: input, shape index: {}]   ;;  %s533_s0 = inlined_call_operand.vmem [shape: f32[80,20], index: 0, kind: input, shape index: {}]   ;;  %s534_s2 = inlined_call_operand.vmem [shape: f32[80,1], index: 2, kind: input, shape index: {}]   ;;  %s535_s3 = inlined_call_operand.vmem [shape: f32[1,64], index: 3, kind: input, shape index: {}]   ;;  %s536_s4 = inlined_call_operand.vmem [shape: f32[80,1], index: 4, kind: output, shape index: {}]  }
   0x1   :  { %v27_v0 = vld [vmem:[%s532_s1] sm:$0xff]  ;;  %v28_v1 = vld [vmem:[%s532_s1 + $0x8] sm:$0xff]  ;;  %369 = vset.pattern.permute.xlu1 %v370_v2  ;;  %368 = vset.pattern.permute.xlu0 %v370_v2  ;;  %v23_v5 = vld [vmem:[%s533_s0 + $0x30] sm:$0xff]  ;;  %vm298_vm3 = vcmask 7168  }
   0x2   :  { %v359_v3 = vpack.c.bf16 %v28_v1, %v27_v0  ;;  %v17_v4 = vld [vmem:[%s533_s0] sm:$0xff]  ;;  %v29_v6 = vld [vmem:[%s532_s1 + $0x10] sm:$0xf]  ;;  %353 = vmatprep.mubr.msk.f32.mxu1 %vm90_vm0, %v23_v5  ;;  %v18_v9 = vld [vmem:[%s533_s0 + $0x8] sm:$0xff] }
   0x3   :  { %344 = vmatprep.mubr.msk.f32.mxu0 %vm90_vm0, %v17_v4  ;;  %v32_v7 = vld [vmem:[%s534_s2 + $0x10] sm:$0xff]  ;;  %v30_v8 = vld [vmem:[%s534_s2] sm:$0xff]  ;;  %v24_v10 = vld [vmem:[%s533_s0 + $0x38] sm:$0xff] }
   0x4   :  { %360 = vmatprep.subr.bf16.mxu0 %v359_v3  ;;  %363 = vmatprep.subr.bf16.mxu1 %v359_v3  ;;  %v19_v11 = vld [vmem:[%s533_s0 + $0x10] sm:$0xff]  ;;  %v25_v12 = vld [vmem:[%s533_s0 + $0x40] sm:$0xff]  ;;  %v33_v13 = vld [vmem:[%s534_s2 + $0x18] sm:$0xff] }
   0x5   :  { %362 = vmatpush3.bf16.msra.mxu0 %v359_v3  ;;  %365 = vmatpush3.bf16.msra.mxu1 %v359_v3  ;;  %v31_v14 = vld [vmem:[%s534_s2 + $0x8] sm:$0xff]  ;;  %v20_v15 = vld [vmem:[%s533_s0 + $0x18] sm:$0xff]  ;;  %v21_v17 = vld [vmem:[%s533_s0 + $0x20] sm:$0xff] }
   0x6   :  { %342 = vmatprep.subr.msk.mxu0 %vm121_vm1, %v29_v6  ;;  %364 = vmatprep.subr.msk.mxu1 %vm121_vm1, %v29_v6  ;;  %v26_v16 = vld [vmem:[%s533_s0 + $0x48] sm:$0xff]  ;;  %v34_v19 = vld [vmem:[%s534_s2 + $0x20] sm:$0xff]  ;;  %v37_v21 = vld [vmem:[%s534_s2 + $0x38] sm:$0xff] }
   0x7   :  { %52 = vperm.xlu1 %369, %v32_v7   ;;  %42 = vperm.xlu0 %368, %v30_v8   ;;  %v35_v18 = vld [vmem:[%s534_s2 + $0x28] sm:$0xff]  ;;  %v36_v22 = vld [vmem:[%s534_s2 + $0x30] sm:$0xff]  ;;  %v38_v24 = vld [vmem:[%s534_s2 + $0x40] sm:$0xff] }
   0x8   :  { %v22_v20 = vld [vmem:[%s533_s0 + $0x28] sm:$0xff]  ;;  %v324_v41 = vld [vmem:[%s535_s3] ss:$0 sm:$0xff] }
   0x9   :  { %343 = vmatpush3.msk.msra.mxu0 %vm121_vm1, %v29_v6  ;;  %366 = vmatpush3.msk.msra.mxu1 %vm121_vm1, %v29_v6  ;;  %v39_v23 = vld [vmem:[%s534_s2 + $0x48] sm:$0xff] }
   0xa   :  { %345 = vmatmul.mubr.msk.f32.vlgmr.msra.gmra.mrb[0].mxu0 %vm90_vm0, %v18_v9  ;;  %354 = vmatmul.mubr.msk.f32.vlgmr.msra.gmra.mrb[0].mxu1 %vm90_vm0, %v24_v10 }
   0xb   :  { %347 = vmatprep.mubr.msk.f32.mxu0 %vm90_vm0, %v19_v11  ;;  %356 = vmatprep.mubr.msk.f32.mxu1 %vm90_vm0, %v25_v12 }
   0xc   :  { %57 = vperm.xlu1 %369, %v33_v13   ;;  %47 = vperm.xlu0 %368, %v31_v14  }
   0xe   :  { %348 = vmatmul.mubr.msk.f32.gmra.mrb[2].mxu0 %vm90_vm0, %v20_v15  ;;  %357 = vmatmul.mubr.msk.f32.gmra.mrb[2].mxu1 %vm90_vm0, %v26_v16 }
   0xf   :  { %350 = vmatprep.mubr.msk.f32.mxu0 %vm90_vm0, %v21_v17 }
  0x10   :  { %67 = vperm.xlu1 %369, %v35_v18   ;;  %62 = vperm.xlu0 %368, %v34_v19  }
  0x12   :  { %351 = vmatmul.mubr.msk.f32.gmra.mrb[4].mxu0 %vm90_vm0, %v22_v20 }
  0x14   :  { %77 = vperm.xlu1 %369, %v37_v21   ;;  %72 = vperm.xlu0 %368, %v36_v22  }
  0x18   :  { %87 = vperm.xlu1 %369, %v39_v23   ;;  %82 = vperm.xlu0 %368, %v38_v24  }
  0x86   :  { %v53_v25 = vpop.permute.xlu1 %52  ;;  %v43_v26 = vpop.permute.xlu0 %42 }
  0x8b   :  { %v58_v27 = vpop.permute.xlu1 %57  ;;  %v48_v28 = vpop.permute.xlu0 %47 }
  0x8f   :  { %v68_v29 = vpop.permute.xlu1 %67  ;;  %v63_v30 = vpop.permute.xlu0 %62 }
  0x93   :  { %v78_v31 = vpop.permute.xlu1 %77  ;;  %v73_v32 = vpop.permute.xlu0 %72 }
  0x97   :  { %v83_v55 = vpop.permute.xlu0 %82  ;;  %v88_v7 = vpop.permute.xlu1 %87 }
  0xdd   :  { %v346_v33 = vpop.f32.mrb[0].mxu0  ;;  %v355_v34 = vpop.f32.mrb[0].mxu1 }
  0xde   :  { %v197_v35 = vadd.f32 %v346_v33, %v48_v28  ;;  %v227_v36 = vadd.f32 %v355_v34, %v78_v31  ;;  %v191_v37 = vpop.f32.mrb[1].mxu0  ;;  %v221_v38 = vpop.f32.mrb[1].mxu1 }
  0xdf   :  { %v192_v39 = vadd.f32 %v191_v37, %v43_v26  ;;  %v222_v40 = vadd.f32 %v221_v38, %v73_v32 }
  0xe0   :  { %v241_v42 = vmax.f32 %v197_v35, 0.0  ;;  %v247_v43 = vmax.f32 %v227_v36, 0.0 }
  0xe1   :  { %v240_v44 = vmax.f32 %v192_v39, 0.0  ;;  %v246_v45 = vmax.f32 %v222_v40, 0.0  ;;  %v349_v46 = vpop.f32.mrb[2].mxu0  ;;  %v358_v47 = vpop.f32.mrb[2].mxu1 }
  0xe2   :  { %v207_v48 = vadd.f32 %v349_v46, %v58_v27  ;;  %v201_v49 = vpop.f32.mrb[3].mxu0  ;;  %v231_v50 = vpop.f32.mrb[3].mxu1  ;;  %v264_v51 = vmul.f32 %v324_v41, %v247_v43  ;;  %v258_v52 = vmul.f32 %v324_v41, %v241_v42  ;;  %v237_v9 = vadd.f32 %v358_v47, %v88_v7 }
  0xe3   :  { %v202_v53 = vadd.f32 %v201_v49, %v53_v25  ;;  %v263_v54 = vmul.f32 %v324_v41, %v246_v45  ;;  %v257_v59 = vmul.f32 %v324_v41, %v240_v44  ;;  %v232_v60 = vadd.f32 %v231_v50, %v83_v55 }
  0xe4   :  { %v243_v56 = vmax.f32 %v207_v48, 0.0  ;;  %v289_v57 = vsel %vm267_vm2, %v264_v51, 0.0  ;;  %v271_v58 = vsel %vm267_vm2, %v258_v52, 0.0  ;;  %v249_v15 = vmax.f32 %v237_v9, 0.0 }
  0xe5   :  { %290 = vadd.xlane.f32.xlu0 %v289_v57  ;;  %272 = vadd.xlane.f32.xlu1 %v271_v58  ;;  %v352_v61 = vpop.f32.mrb[4].mxu0  ;;  %v242_v63 = vmax.f32 %v202_v53, 0.0  ;;  %v286_v2 = vsel %vm267_vm2, %v263_v54, 0.0  ;;  %v268_v3 = vsel %vm267_vm2, %v257_v59, 0.0  ;;  %v248_v5 = vmax.f32 %v232_v60, 0.0 }
  0xe6   :  { %v211_v62 = vpop.f32.mrb[5].mxu0  ;;  %v217_v1 = vadd.f32 %v352_v61, %v68_v29  ;;  %v260_v4 = vmul.f32 %v324_v41, %v243_v56  ;;  %v266_v20 = vmul.f32 %v324_v41, %v249_v15 }
  0xe7   :  { %v212_v0 = vadd.f32 %v211_v62, %v63_v30  ;;  %v259_v12 = vmul.f32 %v324_v41, %v242_v63  ;;  %v265_v14 = vmul.f32 %v324_v41, %v248_v5 }
  0xe8   :  { %v245_v10 = vmax.f32 %v217_v1, 0.0  ;;  %v277_v11 = vsel %vm267_vm2, %v260_v4, 0.0  ;;  %v295_v21 = vsel %vm267_vm2, %v266_v20, 0.0 }
  0xe9   :  { %v244_v6 = vmax.f32 %v212_v0, 0.0  ;;  %287 = vadd.xlane.f32.xlu1 %v286_v2  ;;  %269 = vadd.xlane.f32.xlu0 %v268_v3  ;;  %v274_v16 = vsel %vm267_vm2, %v259_v12, 0.0  ;;  %v292_v18 = vsel %vm267_vm2, %v265_v14, 0.0 }
  0xea   :  { %v262_v17 = vmul.f32 %v324_v41, %v245_v10 }
  0xeb   :  { %v261_v8 = vmul.f32 %v324_v41, %v244_v6 }
  0xec   :  { %v283_v19 = vsel %vm267_vm2, %v262_v17, 0.0 }
  0xed   :  { %278 = vadd.xlane.f32.xlu0 %v277_v11  ;;  %v280_v13 = vsel %vm267_vm2, %v261_v8, 0.0 }
  0xee   :  { %281 = vadd.xlane.f32.xlu1 %v280_v13 }
  0xf1   :  { %275 = vadd.xlane.f32.xlu0 %v274_v16 }
  0xf2   :  { %293 = vadd.xlane.f32.xlu1 %v292_v18 }
  0xf5   :  { %284 = vadd.xlane.f32.xlu0 %v283_v19 }
  0xf9   :  { %296 = vadd.xlane.f32.xlu0 %v295_v21 }
 0x172   :  { %v291_v22 = vpop.xlane.xlu0 %290  ;;  %v273_v23 = vpop.xlane.xlu1 %272 }
 0x173   :  { %306 = vst.msk [vmem:[%s536_s4 + $0x38] sm:$0xff] %vm298_vm3, %v291_v22  ;;  %300 = vst.msk [vmem:[%s536_s4 + $0x8] sm:$0xff] %vm298_vm3, %v273_v23 }
 0x176   :  { %v288_v24 = vpop.xlane.xlu1 %287  ;;  %v270_v25 = vpop.xlane.xlu0 %269 }
 0x177   :  { %305 = vst.msk [vmem:[%s536_s4 + $0x30] sm:$0xff] %vm298_vm3, %v288_v24  ;;  %299 = vst.msk [vmem:[%s536_s4] sm:$0xff] %vm298_vm3, %v270_v25 }
 0x17a   :  { %v279_v26 = vpop.xlane.xlu0 %278 }
 0x17b   :  { %302 = vst.msk [vmem:[%s536_s4 + $0x18] sm:$0xff] %vm298_vm3, %v279_v26  ;;  %v282_v27 = vpop.xlane.xlu1 %281 }
 0x17c   :  { %303 = vst.msk [vmem:[%s536_s4 + $0x20] sm:$0xff] %vm298_vm3, %v282_v27 }
 0x17e   :  { %v276_v28 = vpop.xlane.xlu0 %275 }
 0x17f   :  { %301 = vst.msk [vmem:[%s536_s4 + $0x10] sm:$0xff] %vm298_vm3, %v276_v28  ;;  %v294_v29 = vpop.xlane.xlu1 %293 }
 0x180   :  { %307 = vst.msk [vmem:[%s536_s4 + $0x40] sm:$0xff] %vm298_vm3, %v294_v29 }
 0x182   :  { %v285_v30 = vpop.xlane.xlu0 %284 }
 0x183   :  { %304 = vst.msk [vmem:[%s536_s4 + $0x28] sm:$0xff] %vm298_vm3, %v285_v30 }
 0x186   :  { %v297_v31 = vpop.xlane.xlu0 %296 }
 0x187   :  { %308 = vst.msk [vmem:[%s536_s4 + $0x48] sm:$0xff] %vm298_vm3, %v297_v31 }

// kernel: model_forward.13
= control target key start
LH: loop header
LB: loop body
LE: loop exit
PB: predicated region body
PF: predicated region fallthrough
CT: control target
= control target key end

     0   :  { %v173_v3 = vmov 0.0|0.0   ;;  %vm174_vm0 = vmmov 0   ;;  %v175_v6 = vmov 0.0   ;;  %s230_s0 = inlined_call_operand.vmem [shape: f32[2,40], index: 0, kind: input, shape index: {}]   ;;  %s231_s1 = inlined_call_operand.vmem [shape: f32[40,10], index: 1, kind: input, shape index: {}]   ;;  %s232_s2 = inlined_call_operand.vmem [shape: f32[1,10], index: 2, kind: input, shape index: {}]   ;;  %s233_s3 = inlined_call_operand.hbm [shape: f32[2,10], index: 3, kind: output, shape index: {}]  }
   0x1   :  { %v16_v0 = vld [vmem:[%s231_s1] sm:$0xff]  ;;  %v17_v1 = vld [vmem:[%s231_s1 + $0x8] sm:$0xff]  ;;  %v18_v2 = vld [vmem:[%s231_s1 + $0x10] sm:$0xff]  ;;  %139 = vmatprep.subr.bf16.mxu0 %v173_v3  ;;  %136 = vmatprep.mubr.msk.f32.mxu0 %vm174_vm0, %v175_v6 }
   0x2   :  { %v140_v4 = vpack.c.bf16 %v17_v1, %v16_v0  ;;  %v19_v5 = vld [vmem:[%s231_s1 + $0x18] sm:$0xff] }
   0x3   :  { %8 = vsyncpa [#allocation3], 0  ;;  %v143_v7 = vpack.c.bf16 %v19_v5, %v18_v2  ;;  %v20_v8 = vld [vmem:[%s231_s1 + $0x20] sm:$0xff]  ;;  %vm28_vm1 = vcmask 326656   ;;  %s176_s26 = smov [#allocation2]   ;;  %vm102_vm2 = vcmask 74752  }
   0x4   :  { %141 = vmatpush3.bf16.msra.mxu0 %v140_v4  ;;  %v15_v9 = vld [vmem:[%s230_s0] sm:$0x3]  ;;  %s110_s27 = sshll.u32 %s176_s26, 4  ;;  %s111_s27 = int_to_ptr.vmem [resolvable:$true] %s110_s27 }
   0x5   :  { %142 = vmatprep.subr.bf16.mxu0 %v173_v3  ;;  %v118_v10 = vld [vmem:[%s232_s2] ss:$0 sm:$0xff]  ;;  %s149_s1 = scalar_lea.vmem %s111_s27, 32  ;;  %p154_p1 = scmp.lt.s32.totalorder %s111_s27, %s111_s27 }
   0x6   :  { %p150_p0 = scmp.ne.s32.totalorder %s111_s27, %s149_s1  ;;  %p155_p2 = scmp.lt.s32.totalorder %s149_s1, %s149_s1 }
   0x8   :  { %144 = vmatpush3.bf16.msra.mxu0 %v143_v7  ;;  %p156_p3 = por %p155_p2, %p154_p1 }
   0x9   :  { %134 = vmatprep.subr.mxu0 %v175_v6 }
   0xa   :  { %p157_p4 = pnand %p156_p3, %p150_p0 }
   0xc   :  { %135 = vmatpush3.msra.mxu0 %v20_v8 }
   0xd   :  { %137 = vmatmul.mubr.msk.f32.vlgmr.msra.gmra.mrb[0].mxu0 %vm28_vm1, %v15_v9 }
  0xe0   :  { %v98_v11 = vpop.f32.mrb[0].mxu0 }
  0xe1   :  { %v99_v12 = vadd.f32 %v118_v10, %v98_v11  ;;  %v138_v13 = vpop.f32.mrb[1].mxu0 }
  0xe3   :  { %103 = vst.msk [vmem:[#allocation2] sm:$0x3] %vm102_vm2, %v99_v12 }
  0xe4   :  { %160 = shalt.err (!%p157_p4)
}
  0xe5   :  { %s161_s29 = scalar_lea.hbm %s233_s3, 32 }
  0xe6   :  { %p162_p5 = scmp.ne.s32.totalorder %s233_s3, %s161_s29  ;;  %p165_p6 = scmp.lt.u32.totalorder %s161_s29, %s233_s3 }
  0xe8   :  { %p167_p7 = pnand %p165_p6, %p162_p5 }
  0xea   :  { %170 = shalt.err (!%p167_p7)
}
  0xeb   :  { %113 = dma.vmem_to_hbm [thread:$0]  %s111_s27, 32, %s233_s3, [#allocation3]  }
  0xec   :  { %171 = dma.done.wait [#allocation3], 32  }
  0xed   :  { %172 = vsyncadd [#allocation3], 4294967264 }
  0xee   :  { %117 = vsyncpa [#allocation3], 1 }

</bundles_post_ra>
